<compile_context>
chip_gen: v6e
topology: v6e:2x2x1
jax: 0.10.0
libtpu: 0.0.40
codegen_flags: <defaults>
</compile_context>

<pallas_src>
import functools
import math

import jax
import jax.numpy as jnp
from jax import lax
from jax.experimental import pallas as pl
from jax.experimental.pallas import tpu as pltpu


BN_EPS = 1e-5

# (Cin, Cout, K, stride, pad, groups) -- mirrors DiscriminatorS.convs
CONV_CFGS = [
    (1, 16, 15, 1, 7, 1),
    (16, 64, 41, 4, 20, 4),
    (64, 256, 41, 4, 20, 16),
    (256, 1024, 41, 4, 20, 64),
    (1024, 1024, 41, 4, 20, 256),
    (1024, 1024, 5, 1, 2, 1),
]
POST_CFG = (1024, 1, 3, 1, 1, 1)   # conv_post (no BN, no activation)


# ----------------------------- compiler params / tiling ---------------------------

def _compiler_params(grid_rank=2):
    vmem_limit = None
    try:  # per-generation budget (v5e/v6e: 128 MiB, v7x: 64 MiB per TensorCore)
        cap = getattr(pltpu.get_tpu_info(), "vmem_capacity_bytes", None)
        if cap:
            vmem_limit = int(cap) * 3 // 4
    except Exception:
        vmem_limit = None
    return pltpu.CompilerParams(
        dimension_semantics=("parallel",) * grid_rank,
        vmem_limit_bytes=vmem_limit,
    )


def _group_block(groups):
    # Partial blocks along the (minor) group axis must be multiples of 128.
    if groups > 128 and groups % 128 == 0:
        return 128
    return groups


def _cout_block(cout):
    for cb in (256, 128):
        if cout > cb and cout % cb == 0:
            return cb
    return cout


# ----------------------------- Pallas kernels -------------------------------------

def _grouped_conv_kernel(x_ref, w_ref, sh_ref, o_ref, *, stride, ksize, cin_g, lout,
                         apply_act):
    """Grouped conv as K*Cin_g broadcast-FMAs on the VPU (no in-kernel relayouts).

    x_ref : (1, stride, Cin_g, G_blk, T)  bf16 phase-split input slab
    w_ref : (Cout_g, G_blk, Cin_g*K)      bf16, BN scale folded in (lane index = c*K+k)
    sh_ref: (Cout_g, G_blk, 1)            f32 per-channel shift (scale*bias)
    o_ref : (1, Cout_g, G_blk, Lout)      f32
    """
    cout_g, g_blk = o_ref.shape[1], o_ref.shape[2]
    acc = jnp.zeros((cout_g, g_blk, lout), jnp.float32)
    for k in range(ksize):                       # static unroll over taps
        q, r = k // stride, k % stride
        for c in range(cin_g):
            xs = x_ref[0, r, c, :, pl.ds(q, lout)].astype(jnp.float32)      # (G_blk, Lout)
            wk = w_ref[:, :, pl.ds(c * ksize + k, 1)].astype(jnp.float32)   # (Cout_g, G_blk, 1)
            acc = acc + wk * xs[None, :, :]
    y = acc + sh_ref[...]
    if apply_act:
        y = jnp.where(y >= 0.0, y, 0.1 * y)      # leaky_relu(0.1)
    o_ref[0] = y.astype(o_ref.dtype)


def _dense_conv_kernel(x_ref, w_ref, sh_ref, o_ref, *, stride, ksize, lout, apply_act):
    """Dense conv as K accumulating MXU matmuls.

    x_ref : (1, stride, Cin, T)   bf16 phase-split input slab
    w_ref : (K, Cout_blk, Cin)    bf16, BN scale folded in
    sh_ref: (Cout_blk, 1)         f32
    o_ref : (1, Cout_blk, Lout)   f32
    """
    acc = jnp.zeros(o_ref.shape[1:], jnp.float32)
    for k in range(ksize):
        q, r = k // stride, k % stride
        xk = x_ref[0, r, :, pl.ds(q, lout)]                                 # (Cin, Lout) bf16
        acc = acc + jnp.dot(w_ref[k], xk, preferred_element_type=jnp.float32)
    y = acc + sh_ref[...]
    if apply_act:
        y = jnp.where(y >= 0.0, y, 0.1 * y)
    o_ref[0] = y.astype(o_ref.dtype)


# ----------------------------- conv wrappers ---------------------------------------

def _phase_pad(x, stride, padding, ksize, lout):
    """Zero-pad so x_pad[t*stride + r] covers every tap; returns (x_pad, T)."""
    N, C, L = x.shape
    qmax = (ksize - 1) // stride
    T = lout + qmax
    right = stride * T - (L + padding)
    assert right >= 0
    xp = jnp.pad(x, ((0, 0), (0, 0), (padding, right)))
    return xp, T


def _grouped_conv(x, weight, scale, shift, *, stride, padding, groups, apply_act):
    N, Cin, L = x.shape
    Cout, Cin_g, K = weight.shape
    G = groups
    Cout_g = Cout // G
    Lout = (L + 2 * padding - K) // stride + 1
    xp, T = _phase_pad(x, stride, padding, K, Lout)

    # (N, stride, Cin_g, G, T) : xr[n,r,c,g,t] = x_pad[n, g*Cin_g + c, t*stride + r]
    xr = jnp.transpose(xp.reshape(N, G, Cin_g, T, stride), (0, 4, 2, 1, 3))
    xr = xr.astype(jnp.bfloat16)

    # weight -> (Cout_g, G, Cin_g*K) with BN scale folded in; lane index = c*K + k
    wf = (weight * scale[:, None, None]).reshape(G, Cout_g, Cin_g, K)
    wt = jnp.transpose(wf, (1, 0, 2, 3)).reshape(Cout_g, G, Cin_g * K)
    wt = wt.astype(jnp.bfloat16)
    sh = shift.reshape(G, Cout_g).T.reshape(Cout_g, G, 1).astype(jnp.float32)

    GB = _group_block(G)
    kernel = functools.partial(_grouped_conv_kernel, stride=stride, ksize=K,
                               cin_g=Cin_g, lout=Lout, apply_act=apply_act)
    out = pl.pallas_call(
        kernel,
        out_shape=jax.ShapeDtypeStruct((N, Cout_g, G, Lout), jnp.float32),
        grid_spec=pltpu.PrefetchScalarGridSpec(
            num_scalar_prefetch=0,
            grid=(G // GB, N),            # batch innermost: weight block stays resident
            in_specs=[
                pl.BlockSpec((1, stride, Cin_g, GB, T), lambda gb, n: (n, 0, 0, gb, 0)),
                pl.BlockSpec((Cout_g, GB, Cin_g * K), lambda gb, n: (0, gb, 0)),
                pl.BlockSpec((Cout_g, GB, 1), lambda gb, n: (0, gb, 0)),
            ],
            out_specs=pl.BlockSpec((1, Cout_g, GB, Lout), lambda gb, n: (n, 0, gb, 0)),
        ),
        compiler_params=_compiler_params(),
    )(xr, wt, sh)
    # (N, Cout_g, G, Lout) -> (N, Cout, Lout) with channel = g*Cout_g + o
    return jnp.transpose(out, (0, 2, 1, 3)).reshape(N, Cout, Lout)


def _dense_conv(x, weight, scale, shift, *, stride, padding, apply_act):
    N, Cin, L = x.shape
    Cout, _, K = weight.shape
    Lout = (L + 2 * padding - K) // stride + 1
    xp, T = _phase_pad(x, stride, padding, K, Lout)

    xr = jnp.transpose(xp.reshape(N, Cin, T, stride), (0, 3, 1, 2)).astype(jnp.bfloat16)
    wt = jnp.transpose(weight * scale[:, None, None], (2, 0, 1)).astype(jnp.bfloat16)
    sh = shift.reshape(Cout, 1).astype(jnp.float32)

    CB = _cout_block(Cout)
    kernel = functools.partial(_dense_conv_kernel, stride=stride, ksize=K,
                               lout=Lout, apply_act=apply_act)
    out = pl.pallas_call(
        kernel,
        out_shape=jax.ShapeDtypeStruct((N, Cout, Lout), jnp.float32),
        grid_spec=pltpu.PrefetchScalarGridSpec(
            num_scalar_prefetch=0,
            grid=(Cout // CB, N),
            in_specs=[
                pl.BlockSpec((1, stride, Cin, T), lambda cb, n: (n, 0, 0, 0)),
                pl.BlockSpec((K, CB, Cin), lambda cb, n: (0, cb, 0)),
                pl.BlockSpec((CB, 1), lambda cb, n: (cb, 0)),
            ],
            out_specs=pl.BlockSpec((1, CB, Lout), lambda cb, n: (n, cb, 0)),
        ),
        compiler_params=_compiler_params(),
    )(xr, wt, sh)
    return out


def _bn_affine(bias, cout, with_bn):
    # eval-mode BatchNorm1d at init: gamma=1, beta=0, running_mean=0, running_var=1
    s = 1.0 / math.sqrt(1.0 + BN_EPS) if with_bn else 1.0
    scale = jnp.full((cout,), s, jnp.float32)
    shift = bias.astype(jnp.float32) * s
    return scale, shift


def conv1d_bn_act(x, weight, bias, *, stride, padding, groups, with_bn, apply_act):
    """Conv1d (+ eval-BN affine) (+ leaky_relu 0.1) -- Pallas hot path."""
    Cout, Cin_g, _ = weight.shape
    scale, shift = _bn_affine(bias, Cout, with_bn)
    if groups == 1 and Cin_g >= 8:
        return _dense_conv(x, weight, scale, shift, stride=stride, padding=padding,
                           apply_act=apply_act)
    # TODO(synk): for the deepest grouped layers (Lout < 128 << G) a G-on-lanes output
    # layout would give fully lane-dense stores; Lout-on-lanes kept for a single layout.
    return _grouped_conv(x, weight, scale, shift, stride=stride, padding=padding,
                         groups=groups, apply_act=apply_act)


def conv1d_bn_act_ref(x, weight, bias, *, stride, padding, groups, with_bn, apply_act):
    """Pure-JAX reference with matching numerics (bf16-rounded operands, f32 math)."""
    Cout = weight.shape[0]
    scale, shift = _bn_affine(bias, Cout, with_bn)
    xb = x.astype(jnp.bfloat16).astype(jnp.float32)
    wb = (weight * scale[:, None, None]).astype(jnp.bfloat16).astype(jnp.float32)
    out = lax.conv_general_dilated(
        xb, wb, window_strides=(stride,), padding=[(padding, padding)],
        dimension_numbers=("NCH", "OIH", "NCH"), feature_group_count=groups,
        precision=lax.Precision.HIGHEST)
    out = out + shift[None, :, None]
    if apply_act:
        out = jnp.where(out >= 0.0, out, 0.1 * out)
    return out


def avg_pool1d_4_2_2(x):
    """nn.AvgPool1d(4, 2, padding=2), count_include_pad=True.  Plain JAX (memory-bound)."""
    N, C, L = x.shape
    Lout = L // 2 + 1
    xp = jnp.pad(x, ((0, 0), (0, 0), (2, 2)))
    acc = jnp.zeros((N, C, Lout), x.dtype)
    for k in range(4):
        acc = acc + lax.slice_in_dim(xp, k, k + 2 * (Lout - 1) + 1, stride=2, axis=2)
    return acc * 0.25


# ----------------------------- model definition ------------------------------------

def init_discriminator_params(key):
    """kaiming_normal_(fan_out, leaky_relu) init; bias = 0; weight_norm == identity at init."""
    params = []
    for (cin, cout, k, _s, _p, g) in CONV_CFGS + [POST_CFG]:
        key, wk = jax.random.split(key)
        std = math.sqrt(2.0) / math.sqrt(cout * k)    # gain=sqrt(2), fan_out = Cout*K
        w = std * jax.random.normal(wk, (cout, cin // g, k), dtype=jnp.float32)
        params.append({"w": w, "b": jnp.zeros((cout,), jnp.float32)})
    return params


def discriminator_s_forward(params, x, conv_fn):
    """DiscriminatorS.forward (eval semantics: dropout = identity)."""
    fmap = []
    for layer, (_cin, _cout, _k, s, p, g) in zip(params[:-1], CONV_CFGS):
        x = conv_fn(x, layer["w"], layer["b"], stride=s, padding=p, groups=g,
                    with_bn=True, apply_act=True)
        fmap.append(x)
    _cin, _cout, _k, s, p, g = POST_CFG
    x = conv_fn(x, params[-1]["w"], params[-1]["b"], stride=s, padding=p, groups=g,
                with_bn=False, apply_act=False)
    fmap.append(x)
    return x.reshape(x.shape[0], -1), fmap          # torch.flatten(x, 1, -1)


def multi_scale_discriminator_forward(all_params, y, y_hat, conv_fn=conv1d_bn_act):
    y_d_rs, y_d_gs, fmap_rs, fmap_gs = [], [], [], []
    for i, params in enumerate(all_params):
        if i != 0:
            y = avg_pool1d_4_2_2(y)
            y_hat = avg_pool1d_4_2_2(y_hat)
        y_d_r, fmap_r = discriminator_s_forward(params, y, conv_fn)
        y_d_g, fmap_g = discriminator_s_forward(params, y_hat, conv_fn)
        y_d_rs.append(y_d_r)
        fmap_rs.append(fmap_r)
        y_d_gs.append(y_d_g)
        fmap_gs.append(fmap_g)
    return y_d_rs, y_d_gs, fmap_rs, fmap_gs


# ----------------------------- demo / smoke test ------------------------------------

if __name__ == "__main__":
    key = jax.random.PRNGKey(0)
    pkey, ykey, gkey = jax.random.split(key, 3)

    # 3 independent DiscriminatorS parameter sets (MultiScaleDiscriminator)
    all_params = [init_discriminator_params(k) for k in jax.random.split(pkey, 3)]

    N, L = 2, 64                      # small waveform: (batch, 1 channel, length)
    y = jax.random.normal(ykey, (N, 1, L), dtype=jnp.float32)
    y_hat = jax.random.normal(gkey, (N, 1, L), dtype=jnp.float32)

    outs = multi_scale_discriminator_forward(all_params, y, y_hat, conv1d_bn_act)
    jax.block_until_ready(outs)
    y_d_rs, y_d_gs, fmap_rs, fmap_gs = outs

    # structure checks
    assert len(y_d_rs) == 3 and len(y_d_gs) == 3
    assert all(len(fm) == 7 for fm in fmap_rs) and all(len(fm) == 7 for fm in fmap_gs)

    # numerical check against a pure-JAX reference with matching (bf16-operand) numerics
    r_rs, r_gs, rf_rs, rf_gs = multi_scale_discriminator_forward(
        all_params, y, y_hat, conv1d_bn_act_ref)

    def _check(a, b, name):
        assert a.shape == b.shape, f"{name}: shape {a.shape} vs {b.shape}"
        tol = 1e-2 * (1.0 + float(jnp.max(jnp.abs(b))))
        diff = float(jnp.max(jnp.abs(a - b)))
        assert diff <= tol, f"{name}: max|diff|={diff} > tol={tol}"

    for i in range(3):
        _check(y_d_rs[i], r_rs[i], f"y_d_r[{i}]")
        _check(y_d_gs[i], r_gs[i], f"y_d_g[{i}]")
    for j in range(7):
        _check(fmap_rs[0][j], rf_rs[0][j], f"fmap_r[0][{j}]")

    print("KERNEL_OK")
</pallas_src>

<mosaic_0001>
module attributes {stable_mosaic.version = 11 : i64} {
  func.func @_grouped_conv_kernel(%arg0: i32, %arg1: i32, %arg2: memref<1x1x1x1x78xbf16, #tpu.memory_space<vmem>>, %arg3: memref<16x1x15xbf16, #tpu.memory_space<vmem>>, %arg4: memref<16x1x1xf32, #tpu.memory_space<vmem>>, %arg5: memref<1x16x1x64xf32, #tpu.memory_space<vmem>>) attributes {dimension_semantics = [#tpu.dimension_semantics<parallel>, #tpu.dimension_semantics<parallel>], iteration_bounds = array<i64: 1, 2>, scalar_prefetch = 0 : i64, scratch_operands = 0 : i64, tpu.core_type = #tpu.core_type<tc>, window_params = [{transform_indices = @transform_0, window_bounds = array<i64: 1, 1, 1, 1, 78>}, {transform_indices = @transform_1, window_bounds = array<i64: 16, 1, 15>}, {transform_indices = @transform_2, window_bounds = array<i64: 16, 1, 1>}, {transform_indices = @transform_3, window_bounds = array<i64: 1, 16, 1, 64>}]} {
    %cst = arith.constant 0.000000e+00 : f32
    %0 = vector.broadcast %cst : f32 to vector<16x1x64xf32>
    %c0 = arith.constant 0 : index
    %c0_0 = arith.constant 0 : index
    %c0_1 = arith.constant 0 : index
    %c0_2 = arith.constant 0 : index
    %c0_3 = arith.constant 0 : index
    %1 = vector.load %arg2[%c0, %c0_0, %c0_1, %c0_2, %c0_3] : memref<1x1x1x1x78xbf16, #tpu.memory_space<vmem>>, vector<1x1x1x1x64xbf16>
    %2 = vector.shape_cast %1 : vector<1x1x1x1x64xbf16> to vector<1x64xbf16>
    %3 = arith.extf %2 : vector<1x64xbf16> to vector<1x64xf32>
    %c0_4 = arith.constant 0 : index
    %c0_5 = arith.constant 0 : index
    %c0_6 = arith.constant 0 : index
    %4 = vector.load %arg3[%c0_4, %c0_5, %c0_6] : memref<16x1x15xbf16, #tpu.memory_space<vmem>>, vector<16x1x1xbf16>
    %5 = arith.extf %4 : vector<16x1x1xbf16> to vector<16x1x1xf32>
    %6 = vector.shape_cast %3 : vector<1x64xf32> to vector<1x1x64xf32>
    %7 = vector.broadcast %5 : vector<16x1x1xf32> to vector<16x1x64xf32>
    %8 = vector.broadcast %6 : vector<1x1x64xf32> to vector<16x1x64xf32>
    %9 = arith.mulf %7, %8 : vector<16x1x64xf32>
    %10 = arith.addf %0, %9 : vector<16x1x64xf32>
    %c0_7 = arith.constant 0 : index
    %c0_8 = arith.constant 0 : index
    %c0_9 = arith.constant 0 : index
    %c0_10 = arith.constant 0 : index
    %c1 = arith.constant 1 : index
    %11 = vector.load %arg2[%c0_7, %c0_8, %c0_9, %c0_10, %c1] : memref<1x1x1x1x78xbf16, #tpu.memory_space<vmem>>, vector<1x1x1x1x64xbf16>
    %12 = vector.shape_cast %11 : vector<1x1x1x1x64xbf16> to vector<1x64xbf16>
    %13 = arith.extf %12 : vector<1x64xbf16> to vector<1x64xf32>
    %c0_11 = arith.constant 0 : index
    %c0_12 = arith.constant 0 : index
    %c1_13 = arith.constant 1 : index
    %14 = vector.load %arg3[%c0_11, %c0_12, %c1_13] : memref<16x1x15xbf16, #tpu.memory_space<vmem>>, vector<16x1x1xbf16>
    %15 = arith.extf %14 : vector<16x1x1xbf16> to vector<16x1x1xf32>
    %16 = vector.shape_cast %13 : vector<1x64xf32> to vector<1x1x64xf32>
    %17 = vector.broadcast %15 : vector<16x1x1xf32> to vector<16x1x64xf32>
    %18 = vector.broadcast %16 : vector<1x1x64xf32> to vector<16x1x64xf32>
    %19 = arith.mulf %17, %18 : vector<16x1x64xf32>
    %20 = arith.addf %10, %19 : vector<16x1x64xf32>
    %c0_14 = arith.constant 0 : index
    %c0_15 = arith.constant 0 : index
    %c0_16 = arith.constant 0 : index
    %c0_17 = arith.constant 0 : index
    %c2 = arith.constant 2 : index
    %21 = vector.load %arg2[%c0_14, %c0_15, %c0_16, %c0_17, %c2] : memref<1x1x1x1x78xbf16, #tpu.memory_space<vmem>>, vector<1x1x1x1x64xbf16>
    %22 = vector.shape_cast %21 : vector<1x1x1x1x64xbf16> to vector<1x64xbf16>
    %23 = arith.extf %22 : vector<1x64xbf16> to vector<1x64xf32>
    %c0_18 = arith.constant 0 : index
    %c0_19 = arith.constant 0 : index
    %c2_20 = arith.constant 2 : index
    %24 = vector.load %arg3[%c0_18, %c0_19, %c2_20] : memref<16x1x15xbf16, #tpu.memory_space<vmem>>, vector<16x1x1xbf16>
    %25 = arith.extf %24 : vector<16x1x1xbf16> to vector<16x1x1xf32>
    %26 = vector.shape_cast %23 : vector<1x64xf32> to vector<1x1x64xf32>
    %27 = vector.broadcast %25 : vector<16x1x1xf32> to vector<16x1x64xf32>
    %28 = vector.broadcast %26 : vector<1x1x64xf32> to vector<16x1x64xf32>
    %29 = arith.mulf %27, %28 : vector<16x1x64xf32>
    %30 = arith.addf %20, %29 : vector<16x1x64xf32>
    %c0_21 = arith.constant 0 : index
    %c0_22 = arith.constant 0 : index
    %c0_23 = arith.constant 0 : index
    %c0_24 = arith.constant 0 : index
    %c3 = arith.constant 3 : index
    %31 = vector.load %arg2[%c0_21, %c0_22, %c0_23, %c0_24, %c3] : memref<1x1x1x1x78xbf16, #tpu.memory_space<vmem>>, vector<1x1x1x1x64xbf16>
    %32 = vector.shape_cast %31 : vector<1x1x1x1x64xbf16> to vector<1x64xbf16>
    %33 = arith.extf %32 : vector<1x64xbf16> to vector<1x64xf32>
    %c0_25 = arith.constant 0 : index
    %c0_26 = arith.constant 0 : index
    %c3_27 = arith.constant 3 : index
    %34 = vector.load %arg3[%c0_25, %c0_26, %c3_27] : memref<16x1x15xbf16, #tpu.memory_space<vmem>>, vector<16x1x1xbf16>
    %35 = arith.extf %34 : vector<16x1x1xbf16> to vector<16x1x1xf32>
    %36 = vector.shape_cast %33 : vector<1x64xf32> to vector<1x1x64xf32>
    %37 = vector.broadcast %35 : vector<16x1x1xf32> to vector<16x1x64xf32>
    %38 = vector.broadcast %36 : vector<1x1x64xf32> to vector<16x1x64xf32>
    %39 = arith.mulf %37, %38 : vector<16x1x64xf32>
    %40 = arith.addf %30, %39 : vector<16x1x64xf32>
    %c0_28 = arith.constant 0 : index
    %c0_29 = arith.constant 0 : index
    %c0_30 = arith.constant 0 : index
    %c0_31 = arith.constant 0 : index
    %c4 = arith.constant 4 : index
    %41 = vector.load %arg2[%c0_28, %c0_29, %c0_30, %c0_31, %c4] : memref<1x1x1x1x78xbf16, #tpu.memory_space<vmem>>, vector<1x1x1x1x64xbf16>
    %42 = vector.shape_cast %41 : vector<1x1x1x1x64xbf16> to vector<1x64xbf16>
    %43 = arith.extf %42 : vector<1x64xbf16> to vector<1x64xf32>
    %c0_32 = arith.constant 0 : index
    %c0_33 = arith.constant 0 : index
    %c4_34 = arith.constant 4 : index
    %44 = vector.load %arg3[%c0_32, %c0_33, %c4_34] : memref<16x1x15xbf16, #tpu.memory_space<vmem>>, vector<16x1x1xbf16>
    %45 = arith.extf %44 : vector<16x1x1xbf16> to vector<16x1x1xf32>
    %46 = vector.shape_cast %43 : vector<1x64xf32> to vector<1x1x64xf32>
    %47 = vector.broadcast %45 : vector<16x1x1xf32> to vector<16x1x64xf32>
    %48 = vector.broadcast %46 : vector<1x1x64xf32> to vector<16x1x64xf32>
    %49 = arith.mulf %47, %48 : vector<16x1x64xf32>
    %50 = arith.addf %40, %49 : vector<16x1x64xf32>
    %c0_35 = arith.constant 0 : index
    %c0_36 = arith.constant 0 : index
    %c0_37 = arith.constant 0 : index
    %c0_38 = arith.constant 0 : index
    %c5 = arith.constant 5 : index
    %51 = vector.load %arg2[%c0_35, %c0_36, %c0_37, %c0_38, %c5] : memref<1x1x1x1x78xbf16, #tpu.memory_space<vmem>>, vector<1x1x1x1x64xbf16>
    %52 = vector.shape_cast %51 : vector<1x1x1x1x64xbf16> to vector<1x64xbf16>
    %53 = arith.extf %52 : vector<1x64xbf16> to vector<1x64xf32>
    %c0_39 = arith.constant 0 : index
    %c0_40 = arith.constant 0 : index
    %c5_41 = arith.constant 5 : index
    %54 = vector.load %arg3[%c0_39, %c0_40, %c5_41] : memref<16x1x15xbf16, #tpu.memory_space<vmem>>, vector<16x1x1xbf16>
    %55 = arith.extf %54 : vector<16x1x1xbf16> to vector<16x1x1xf32>
    %56 = vector.shape_cast %53 : vector<1x64xf32> to vector<1x1x64xf32>
    %57 = vector.broadcast %55 : vector<16x1x1xf32> to vector<16x1x64xf32>
    %58 = vector.broadcast %56 : vector<1x1x64xf32> to vector<16x1x64xf32>
    %59 = arith.mulf %57, %58 : vector<16x1x64xf32>
    %60 = arith.addf %50, %59 : vector<16x1x64xf32>
    %c0_42 = arith.constant 0 : index
    %c0_43 = arith.constant 0 : index
    %c0_44 = arith.constant 0 : index
    %c0_45 = arith.constant 0 : index
    %c6 = arith.constant 6 : index
    %61 = vector.load %arg2[%c0_42, %c0_43, %c0_44, %c0_45, %c6] : memref<1x1x1x1x78xbf16, #tpu.memory_space<vmem>>, vector<1x1x1x1x64xbf16>
    %62 = vector.shape_cast %61 : vector<1x1x1x1x64xbf16> to vector<1x64xbf16>
    %63 = arith.extf %62 : vector<1x64xbf16> to vector<1x64xf32>
    %c0_46 = arith.constant 0 : index
    %c0_47 = arith.constant 0 : index
    %c6_48 = arith.constant 6 : index
    %64 = vector.load %arg3[%c0_46, %c0_47, %c6_48] : memref<16x1x15xbf16, #tpu.memory_space<vmem>>, vector<16x1x1xbf16>
    %65 = arith.extf %64 : vector<16x1x1xbf16> to vector<16x1x1xf32>
    %66 = vector.shape_cast %63 : vector<1x64xf32> to vector<1x1x64xf32>
    %67 = vector.broadcast %65 : vector<16x1x1xf32> to vector<16x1x64xf32>
    %68 = vector.broadcast %66 : vector<1x1x64xf32> to vector<16x1x64xf32>
    %69 = arith.mulf %67, %68 : vector<16x1x64xf32>
    %70 = arith.addf %60, %69 : vector<16x1x64xf32>
    %c0_49 = arith.constant 0 : index
    %c0_50 = arith.constant 0 : index
    %c0_51 = arith.constant 0 : index
    %c0_52 = arith.constant 0 : index
    %c7 = arith.constant 7 : index
    %71 = vector.load %arg2[%c0_49, %c0_50, %c0_51, %c0_52, %c7] : memref<1x1x1x1x78xbf16, #tpu.memory_space<vmem>>, vector<1x1x1x1x64xbf16>
    %72 = vector.shape_cast %71 : vector<1x1x1x1x64xbf16> to vector<1x64xbf16>
    %73 = arith.extf %72 : vector<1x64xbf16> to vector<1x64xf32>
    %c0_53 = arith.constant 0 : index
    %c0_54 = arith.constant 0 : index
    %c7_55 = arith.constant 7 : index
    %74 = vector.load %arg3[%c0_53, %c0_54, %c7_55] : memref<16x1x15xbf16, #tpu.memory_space<vmem>>, vector<16x1x1xbf16>
    %75 = arith.extf %74 : vector<16x1x1xbf16> to vector<16x1x1xf32>
    %76 = vector.shape_cast %73 : vector<1x64xf32> to vector<1x1x64xf32>
    %77 = vector.broadcast %75 : vector<16x1x1xf32> to vector<16x1x64xf32>
    %78 = vector.broadcast %76 : vector<1x1x64xf32> to vector<16x1x64xf32>
    %79 = arith.mulf %77, %78 : vector<16x1x64xf32>
    %80 = arith.addf %70, %79 : vector<16x1x64xf32>
    %c0_56 = arith.constant 0 : index
    %c0_57 = arith.constant 0 : index
    %c0_58 = arith.constant 0 : index
    %c0_59 = arith.constant 0 : index
    %c8 = arith.constant 8 : index
    %81 = vector.load %arg2[%c0_56, %c0_57, %c0_58, %c0_59, %c8] : memref<1x1x1x1x78xbf16, #tpu.memory_space<vmem>>, vector<1x1x1x1x64xbf16>
    %82 = vector.shape_cast %81 : vector<1x1x1x1x64xbf16> to vector<1x64xbf16>
    %83 = arith.extf %82 : vector<1x64xbf16> to vector<1x64xf32>
    %c0_60 = arith.constant 0 : index
    %c0_61 = arith.constant 0 : index
    %c8_62 = arith.constant 8 : index
    %84 = vector.load %arg3[%c0_60, %c0_61, %c8_62] : memref<16x1x15xbf16, #tpu.memory_space<vmem>>, vector<16x1x1xbf16>
    %85 = arith.extf %84 : vector<16x1x1xbf16> to vector<16x1x1xf32>
    %86 = vector.shape_cast %83 : vector<1x64xf32> to vector<1x1x64xf32>
    %87 = vector.broadcast %85 : vector<16x1x1xf32> to vector<16x1x64xf32>
    %88 = vector.broadcast %86 : vector<1x1x64xf32> to vector<16x1x64xf32>
    %89 = arith.mulf %87, %88 : vector<16x1x64xf32>
    %90 = arith.addf %80, %89 : vector<16x1x64xf32>
    %c0_63 = arith.constant 0 : index
    %c0_64 = arith.constant 0 : index
    %c0_65 = arith.constant 0 : index
    %c0_66 = arith.constant 0 : index
    %c9 = arith.constant 9 : index
    %91 = vector.load %arg2[%c0_63, %c0_64, %c0_65, %c0_66, %c9] : memref<1x1x1x1x78xbf16, #tpu.memory_space<vmem>>, vector<1x1x1x1x64xbf16>
    %92 = vector.shape_cast %91 : vector<1x1x1x1x64xbf16> to vector<1x64xbf16>
    %93 = arith.extf %92 : vector<1x64xbf16> to vector<1x64xf32>
    %c0_67 = arith.constant 0 : index
    %c0_68 = arith.constant 0 : index
    %c9_69 = arith.constant 9 : index
    %94 = vector.load %arg3[%c0_67, %c0_68, %c9_69] : memref<16x1x15xbf16, #tpu.memory_space<vmem>>, vector<16x1x1xbf16>
    %95 = arith.extf %94 : vector<16x1x1xbf16> to vector<16x1x1xf32>
    %96 = vector.shape_cast %93 : vector<1x64xf32> to vector<1x1x64xf32>
    %97 = vector.broadcast %95 : vector<16x1x1xf32> to vector<16x1x64xf32>
    %98 = vector.broadcast %96 : vector<1x1x64xf32> to vector<16x1x64xf32>
    %99 = arith.mulf %97, %98 : vector<16x1x64xf32>
    %100 = arith.addf %90, %99 : vector<16x1x64xf32>
    %c0_70 = arith.constant 0 : index
    %c0_71 = arith.constant 0 : index
    %c0_72 = arith.constant 0 : index
    %c0_73 = arith.constant 0 : index
    %c10 = arith.constant 10 : index
    %101 = vector.load %arg2[%c0_70, %c0_71, %c0_72, %c0_73, %c10] : memref<1x1x1x1x78xbf16, #tpu.memory_space<vmem>>, vector<1x1x1x1x64xbf16>
    %102 = vector.shape_cast %101 : vector<1x1x1x1x64xbf16> to vector<1x64xbf16>
    %103 = arith.extf %102 : vector<1x64xbf16> to vector<1x64xf32>
    %c0_74 = arith.constant 0 : index
    %c0_75 = arith.constant 0 : index
    %c10_76 = arith.constant 10 : index
    %104 = vector.load %arg3[%c0_74, %c0_75, %c10_76] : memref<16x1x15xbf16, #tpu.memory_space<vmem>>, vector<16x1x1xbf16>
    %105 = arith.extf %104 : vector<16x1x1xbf16> to vector<16x1x1xf32>
    %106 = vector.shape_cast %103 : vector<1x64xf32> to vector<1x1x64xf32>
    %107 = vector.broadcast %105 : vector<16x1x1xf32> to vector<16x1x64xf32>
    %108 = vector.broadcast %106 : vector<1x1x64xf32> to vector<16x1x64xf32>
    %109 = arith.mulf %107, %108 : vector<16x1x64xf32>
    %110 = arith.addf %100, %109 : vector<16x1x64xf32>
    %c0_77 = arith.constant 0 : index
    %c0_78 = arith.constant 0 : index
    %c0_79 = arith.constant 0 : index
    %c0_80 = arith.constant 0 : index
    %c11 = arith.constant 11 : index
    %111 = vector.load %arg2[%c0_77, %c0_78, %c0_79, %c0_80, %c11] : memref<1x1x1x1x78xbf16, #tpu.memory_space<vmem>>, vector<1x1x1x1x64xbf16>
    %112 = vector.shape_cast %111 : vector<1x1x1x1x64xbf16> to vector<1x64xbf16>
    %113 = arith.extf %112 : vector<1x64xbf16> to vector<1x64xf32>
    %c0_81 = arith.constant 0 : index
    %c0_82 = arith.constant 0 : index
    %c11_83 = arith.constant 11 : index
    %114 = vector.load %arg3[%c0_81, %c0_82, %c11_83] : memref<16x1x15xbf16, #tpu.memory_space<vmem>>, vector<16x1x1xbf16>
    %115 = arith.extf %114 : vector<16x1x1xbf16> to vector<16x1x1xf32>
    %116 = vector.shape_cast %113 : vector<1x64xf32> to vector<1x1x64xf32>
    %117 = vector.broadcast %115 : vector<16x1x1xf32> to vector<16x1x64xf32>
    %118 = vector.broadcast %116 : vector<1x1x64xf32> to vector<16x1x64xf32>
    %119 = arith.mulf %117, %118 : vector<16x1x64xf32>
    %120 = arith.addf %110, %119 : vector<16x1x64xf32>
    %c0_84 = arith.constant 0 : index
    %c0_85 = arith.constant 0 : index
    %c0_86 = arith.constant 0 : index
    %c0_87 = arith.constant 0 : index
    %c12 = arith.constant 12 : index
    %121 = vector.load %arg2[%c0_84, %c0_85, %c0_86, %c0_87, %c12] : memref<1x1x1x1x78xbf16, #tpu.memory_space<vmem>>, vector<1x1x1x1x64xbf16>
    %122 = vector.shape_cast %121 : vector<1x1x1x1x64xbf16> to vector<1x64xbf16>
    %123 = arith.extf %122 : vector<1x64xbf16> to vector<1x64xf32>
    %c0_88 = arith.constant 0 : index
    %c0_89 = arith.constant 0 : index
    %c12_90 = arith.constant 12 : index
    %124 = vector.load %arg3[%c0_88, %c0_89, %c12_90] : memref<16x1x15xbf16, #tpu.memory_space<vmem>>, vector<16x1x1xbf16>
    %125 = arith.extf %124 : vector<16x1x1xbf16> to vector<16x1x1xf32>
    %126 = vector.shape_cast %123 : vector<1x64xf32> to vector<1x1x64xf32>
    %127 = vector.broadcast %125 : vector<16x1x1xf32> to vector<16x1x64xf32>
    %128 = vector.broadcast %126 : vector<1x1x64xf32> to vector<16x1x64xf32>
    %129 = arith.mulf %127, %128 : vector<16x1x64xf32>
    %130 = arith.addf %120, %129 : vector<16x1x64xf32>
    %c0_91 = arith.constant 0 : index
    %c0_92 = arith.constant 0 : index
    %c0_93 = arith.constant 0 : index
    %c0_94 = arith.constant 0 : index
    %c13 = arith.constant 13 : index
    %131 = vector.load %arg2[%c0_91, %c0_92, %c0_93, %c0_94, %c13] : memref<1x1x1x1x78xbf16, #tpu.memory_space<vmem>>, vector<1x1x1x1x64xbf16>
    %132 = vector.shape_cast %131 : vector<1x1x1x1x64xbf16> to vector<1x64xbf16>
    %133 = arith.extf %132 : vector<1x64xbf16> to vector<1x64xf32>
    %c0_95 = arith.constant 0 : index
    %c0_96 = arith.constant 0 : index
    %c13_97 = arith.constant 13 : index
    %134 = vector.load %arg3[%c0_95, %c0_96, %c13_97] : memref<16x1x15xbf16, #tpu.memory_space<vmem>>, vector<16x1x1xbf16>
    %135 = arith.extf %134 : vector<16x1x1xbf16> to vector<16x1x1xf32>
    %136 = vector.shape_cast %133 : vector<1x64xf32> to vector<1x1x64xf32>
    %137 = vector.broadcast %135 : vector<16x1x1xf32> to vector<16x1x64xf32>
    %138 = vector.broadcast %136 : vector<1x1x64xf32> to vector<16x1x64xf32>
    %139 = arith.mulf %137, %138 : vector<16x1x64xf32>
    %140 = arith.addf %130, %139 : vector<16x1x64xf32>
    %c0_98 = arith.constant 0 : index
    %c0_99 = arith.constant 0 : index
    %c0_100 = arith.constant 0 : index
    %c0_101 = arith.constant 0 : index
    %c14 = arith.constant 14 : index
    %141 = vector.load %arg2[%c0_98, %c0_99, %c0_100, %c0_101, %c14] : memref<1x1x1x1x78xbf16, #tpu.memory_space<vmem>>, vector<1x1x1x1x64xbf16>
    %142 = vector.shape_cast %141 : vector<1x1x1x1x64xbf16> to vector<1x64xbf16>
    %143 = arith.extf %142 : vector<1x64xbf16> to vector<1x64xf32>
    %c0_102 = arith.constant 0 : index
    %c0_103 = arith.constant 0 : index
    %c14_104 = arith.constant 14 : index
    %144 = vector.load %arg3[%c0_102, %c0_103, %c14_104] : memref<16x1x15xbf16, #tpu.memory_space<vmem>>, vector<16x1x1xbf16>
    %145 = arith.extf %144 : vector<16x1x1xbf16> to vector<16x1x1xf32>
    %146 = vector.shape_cast %143 : vector<1x64xf32> to vector<1x1x64xf32>
    %147 = vector.broadcast %145 : vector<16x1x1xf32> to vector<16x1x64xf32>
    %148 = vector.broadcast %146 : vector<1x1x64xf32> to vector<16x1x64xf32>
    %149 = arith.mulf %147, %148 : vector<16x1x64xf32>
    %150 = arith.addf %140, %149 : vector<16x1x64xf32>
    %c0_105 = arith.constant 0 : index
    %c0_106 = arith.constant 0 : index
    %c0_107 = arith.constant 0 : index
    %151 = vector.load %arg4[%c0_105, %c0_106, %c0_107] : memref<16x1x1xf32, #tpu.memory_space<vmem>>, vector<16x1x1xf32>
    %152 = vector.broadcast %151 : vector<16x1x1xf32> to vector<16x1x64xf32>
    %153 = arith.addf %150, %152 : vector<16x1x64xf32>
    %cst_108 = arith.constant 0.000000e+00 : f32
    %154 = vector.broadcast %cst_108 : f32 to vector<16x1x64xf32>
    %155 = arith.cmpf oge, %153, %154 : vector<16x1x64xf32>
    %cst_109 = arith.constant 1.000000e-01 : f32
    %156 = vector.broadcast %cst_109 : f32 to vector<16x1x64xf32>
    %157 = arith.mulf %156, %153 : vector<16x1x64xf32>
    %158 = arith.select %155, %153, %157 : vector<16x1x64xi1>, vector<16x1x64xf32>
    %c0_110 = arith.constant 0 : index
    %c0_111 = arith.constant 0 : index
    %c0_112 = arith.constant 0 : index
    %c0_113 = arith.constant 0 : index
    %159 = vector.load %arg5[%c0_110, %c0_111, %c0_112, %c0_113] : memref<1x16x1x64xf32, #tpu.memory_space<vmem>>, vector<1x16x1x64xf32>
    %160 = vector.shape_cast %159 : vector<1x16x1x64xf32> to vector<16x1x64xf32>
    %161 = vector.shape_cast %158 : vector<16x1x64xf32> to vector<1x16x1x64xf32>
    tpu.vector_store %arg5[%c0_110, %c0_111, %c0_112, %c0_113], %161 {strides = array<i32>} : memref<1x16x1x64xf32, #tpu.memory_space<vmem>>, vector<1x16x1x64xf32>,
    return
  }
  func.func @transform_0(%arg0: i32, %arg1: i32) -> (i32, i32, i32, i32, i32) {
    %c0_i32 = arith.constant 0 : i32
    %c0_i32_0 = arith.constant 0 : i32
    %c0_i32_1 = arith.constant 0 : i32
    %c0_i32_2 = arith.constant 0 : i32
    return %arg1, %c0_i32, %c0_i32_0, %arg0, %c0_i32_1 : i32, i32, i32, i32, i32
  }
  func.func @transform_1(%arg0: i32, %arg1: i32) -> (i32, i32, i32) {
    %c0_i32 = arith.constant 0 : i32
    %c0_i32_0 = arith.constant 0 : i32
    %c0_i32_1 = arith.constant 0 : i32
    return %c0_i32, %arg0, %c0_i32_0 : i32, i32, i32
  }
  func.func @transform_2(%arg0: i32, %arg1: i32) -> (i32, i32, i32) {
    %c0_i32 = arith.constant 0 : i32
    %c0_i32_0 = arith.constant 0 : i32
    %c0_i32_1 = arith.constant 0 : i32
    return %c0_i32, %arg0, %c0_i32_0 : i32, i32, i32
  }
  func.func @transform_3(%arg0: i32, %arg1: i32) -> (i32, i32, i32, i32) {
    %c0_i32 = arith.constant 0 : i32
    %c0_i32_0 = arith.constant 0 : i32
    %c0_i32_1 = arith.constant 0 : i32
    return %arg1, %c0_i32, %arg0, %c0_i32_0 : i32, i32, i32, i32
  }
}

</mosaic_0001>

<bundles_post_ra>
// kernel: tpu_custom_call.1
= control target key start
LH: loop header
LB: loop body
LE: loop exit
PB: predicated region body
PF: predicated region fallthrough
CT: control target
= control target key end

     0   :  { %8 = vsyncpa [#allocation3], 0  ;;  %s7294_s0 = inlined_call_operand.vmem [shape: bf16[2,1,1,1,78], index: 0, kind: input, shape index: {}]   ;;  %s7295_s1 = inlined_call_operand.vmem [shape: bf16[16,1,15], index: 1, kind: input, shape index: {}]   ;;  %s7296_s2 = inlined_call_operand.vmem [shape: f32[16,1,1], index: 2, kind: input, shape index: {}]   ;;  %s7297_s3 = inlined_call_operand.hbm [shape: f32[2,16,1,64], index: 3, kind: output, shape index: {}]  }
   0x1   :  { %10 = vsyncpa [#allocation3 + $0x1], 0  ;;  %s5497_s12 = smov 0   ;;  %s5499_s13 = smov 0  }
   0x2   :  { %s5501_s14 = smov 0   ;;  %s5503_s15 = smov 0  }
   0x3   :  { %s5505_s16 = smov 0   ;;  %s5507_s17 = smov 0  }
   0x4 LB: > { %s4634_s18 = sadd.s32 4294967295, %s5442_s17   ;;  %s4635_s19 = sadd.s32 4294967294, %s5442_s17   ;;  %s5442_s17 = sphi %s5507_s17, %s16_s17   ;;  %s5438_s16 = sphi %s5505_s16, %s7598_s16   ;;  %s5434_s15 = sphi %s5503_s15, %s7597_s15   ;;  %s5430_s14 = sphi %s5501_s14, %s7596_s14   ;;  %s5426_s13 = sphi %s5499_s13, %s7595_s13   ;;  %s5422_s12 = sphi %s5497_s12, %s7594_s12  }
   0x5   : > { %s25_s20 = sadd.s32 1, %s5438_s16  ;;  %s117_s21 = sadd.s32 1, %s5430_s14 }
   0x6   : > { %p26_p0 = scmp.ge.s32.totalorder %s25_s20, 2  ;;  %p127_p1 = scmp.ne.s32.totalorder %s5430_s14, %s5426_s13 }
   0x7   : > { %p128_p2 = scmp.eq.s32.totalorder %s4634_s18, 1  ;;  %p133_p3 = scmp.ne.s32.totalorder %s5426_s13, %s5422_s12 }
   0x8   : > { %s7600_s20 = smov (%p26_p0, %s25_s20), 0  ;;  %p134_p5 = scmp.eq.s32.totalorder %s4635_s19, 1 }
   0x9   : > { %p5537_p4 = por %p128_p2, %p127_p1  ;;  %s112_s23 = ssub.s32 %s5438_s16, %s7600_s20 }
   0xa   : > { %p4640_p6 = scmp.ge.s32.totalorder %s5442_s17, 1  ;;  %p115_p7 = scmp.eq.s32.totalorder %s112_s23, 0 }
   0xb   : > { %p5544_p8 = por %p134_p5, %p133_p3  ;;  %p173_p9 = scmp.lt.s32.totalorder %s5442_s17, 3 }
   0xc   : > { %s5550_s25 = scalar_select %p115_p7, %s5430_s14, %s117_s21  }
   0xd   : > { %p174_p10 = pnand %p4640_p6, %p173_p9 }
   0xf   : > { %177 = sbr.rel (%p174_p10) target bundleno = 2219 (0x8ab), region = 32 }
  0x14   : > { %v222_v0 = vld [vmem:[%s7295_s1 + $0x4] sm:$0x1]  ;;  %v223_v1 = vld [vmem:[%s7295_s1 + $0x5] sm:$0x1]  ;;  %v7298_v2 = vmov 0   ;;  %v5445_v3 = vmov 1   ;;  %v258_v47 = vlaneseq }
  0x15   : > { %4735 = vset.pattern.permute.xlu1 %v7298_v2  ;;  %4756 = vset.pattern.permute.xlu0 %v5445_v3  ;;  %v238_v4 = vunpack.c.l.bf16 %v222_v0  ;;  %v239_v5 = vunpack.c.l.bf16 %v223_v1  ;;  %v218_v6 = vld [vmem:[%s7295_s1] sm:$0x1]  ;;  %v219_v7 = vld [vmem:[%s7295_s1 + $0x1] sm:$0x1]  ;;  %v224_v8 = vld [vmem:[%s7295_s1 + $0x6] sm:$0x1] }
  0x16   : > { %v234_v9 = vunpack.c.l.bf16 %v218_v6  ;;  %v235_v10 = vunpack.c.l.bf16 %v219_v7  ;;  %v225_v11 = vld [vmem:[%s7295_s1 + $0x7] sm:$0x1]  ;;  %v240_v12 = vunpack.c.l.bf16 %v224_v8  ;;  %v228_v13 = vld [vmem:[%s7295_s1 + $0xa] sm:$0x1]  ;;  %v229_v14 = vld [vmem:[%s7295_s1 + $0xb] sm:$0x1] }
  0x17   : > { %v5577_v15 = vpack.i.bf16 %v239_v5, %v238_v4  ;;  %v241_v16 = vunpack.c.l.bf16 %v225_v11  ;;  %v244_v19 = vunpack.c.l.bf16 %v228_v13  ;;  %v245_v20 = vunpack.c.l.bf16 %v229_v14  ;;  %v232_v21 = vld [vmem:[%s7295_s1 + $0xe] sm:$0x1]  ;;  %v233_v22 = vld [vmem:[%s7295_s1 + $0xf] sm:$0x1]  ;;  %v220_v26 = vld [vmem:[%s7295_s1 + $0x2] sm:$0x1] }
  0x18   : > { %v5579_v17 = vpack.i.bf16 %v235_v10, %v234_v9  ;;  %v248_v24 = vunpack.c.l.bf16 %v232_v21  ;;  %v249_v25 = vunpack.c.l.bf16 %v233_v22  ;;  %v221_v27 = vld [vmem:[%s7295_s1 + $0x3] sm:$0x1]  ;;  %v236_v29 = vunpack.c.l.bf16 %v220_v26  ;;  %v226_v32 = vld [vmem:[%s7295_s1 + $0x8] sm:$0x1]  ;;  %v227_v33 = vld [vmem:[%s7295_s1 + $0x9] sm:$0x1] }
  0x19   : > { %4737 = vperm.xlu1 %4735, %v5577_v15   ;;  %v5582_v18 = vpack.i.bf16 %v241_v16, %v240_v12  ;;  %v5592_v23 = vpack.i.bf16 %v245_v20, %v244_v19  ;;  %v237_v30 = vunpack.c.l.bf16 %v221_v27  ;;  %v242_v34 = vunpack.c.l.bf16 %v226_v32  ;;  %v230_v36 = vld [vmem:[%s7295_s1 + $0xc] sm:$0x1]  ;;  %v231_v37 = vld [vmem:[%s7295_s1 + $0xd] sm:$0x1]  ;;  %p204_p11 = scmp.lt.s32.totalorder %s5434_s15, 1  ;;  %s5450_s28 = smov 127  }
  0x1a   : > { %4758 = vperm.xlu0 %4756, %v5579_v17   ;;  %v5602_v28 = vpack.i.bf16 %v249_v25, %v248_v24  ;;  %v243_v35 = vunpack.c.l.bf16 %v227_v33  ;;  %v5446_v38 = vmov 2   ;;  %v246_v40 = vunpack.c.l.bf16 %v230_v36  ;;  %s5451_s29 = smov 126   ;;  %s5452_s30 = smov 125  }
  0x1b   : > { %v5607_v31 = vpack.i.bf16 %v237_v30, %v236_v29  ;;  %v247_v41 = vunpack.c.l.bf16 %v231_v37  ;;  %v5447_v43 = vmov 3   ;;  %v5448_v44 = vmov 4   ;;  %s205_s21 = scalar_select %p204_p11, %s5434_s15, 1 }
  0x1c   : > { %v5623_v39 = vpack.i.bf16 %v243_v35, %v242_v34  ;;  %v5449_v45 = vmov 269488144   ;;  %v5647_v49 = vshrl.u32 %v258_v47, 7  ;;  %s5454_s4 = smov 124   ;;  %s5456_s5 = smov 123   ;;  %vm4506_vm0 = vcmask 516096  }
  0x1d   : > { %4742 = vperm.xlu1 %4735, %v5582_v18   ;;  %v5627_v42 = vpack.i.bf16 %v247_v41, %v246_v40  ;;  %v256_v46 = vunpack.c.l.s4 %v5449_v45  ;;  %s209_s27 = scalar_lea.vmem %s7294_s0, %s205_s21  ;;  %s5458_s6 = smov 122  }
  0x1e   : > { %4774 = vperm.xlu0 %4756, %v5582_v18   ;;  %7305 = vst [vmem:[#allocation5_spill] sm:$0xff] %v5647_v49  ;;  %v216_v52 = vld [vmem:[%s209_s27] sm:$0x1]  ;;  %s5460_s7 = smov 121   ;;  %s5462_s8 = smov 120  }
  0x1f   : > { %v257_v48 = vunpack.c.0.s8 %v256_v46  ;;  %v5661_v59 = vunpack.c.l.bf16 %v216_v52  ;;  %s5464_s9 = smov 119   ;;  %s5466_s10 = smov 118  }
  0x20   : > { %s5468_s11 = smov 117   ;;  %s5470_s18 = smov 116  }
  0x21   : > { %4747 = vperm.xlu1 %4735, %v5592_v23   ;;  %v5655_v53 = vsub.s32 %v257_v48, %v5647_v49  ;;  %s5472_s19 = smov 115   ;;  %s5473_s21 = smov 114  }
  0x22   : > { %4784 = vperm.xlu0 %4756, %v5592_v23   ;;  %s4647_s27 = sshll.u32 %s5434_s15, 8 }
  0x25   : > { %4752 = vperm.xlu1 %4735, %v5602_v28  }
  0x26   : > { %4794 = vperm.xlu0 %4756, %v5602_v28  }
  0x29   : > { %4762 = vset.pattern.permute.xlu1 %v5445_v3 }
  0x2a   : > { %4764 = vperm.xlu1 %4762, %v5607_v31   ;;  %4804 = vset.pattern.permute.xlu0 %v5446_v38 }
  0x2b   : > { %4806 = vperm.xlu0 %4804, %v5607_v31  }
  0x2e   : > { %4769 = vperm.xlu1 %4762, %v5577_v15  }
  0x2f   : > { %4821 = vperm.xlu0 %4804, %v5623_v39  }
  0x32   : > { %4779 = vperm.xlu1 %4762, %v5623_v39  }
  0x33   : > { %4831 = vperm.xlu0 %4804, %v5627_v42  }
  0x36   : > { %4789 = vperm.xlu1 %4762, %v5627_v42  }
  0x37   : > { %4840 = vset.pattern.permute.xlu0 %v5447_v43 }
  0x38   : > { %4842 = vperm.xlu0 %4840, %v5579_v17  }
  0x3a   : > { %4798 = vset.pattern.permute.xlu1 %v5446_v38 }
  0x3b   : > { %4800 = vperm.xlu1 %4798, %v5579_v17  }
  0x3c   : > { %4858 = vperm.xlu0 %4840, %v5582_v18  }
  0x3f   : > { %4811 = vperm.xlu1 %4798, %v5577_v15  }
  0x40   : > { %4868 = vperm.xlu0 %4840, %v5592_v23  }
  0x43   : > { %4816 = vperm.xlu1 %4798, %v5582_v18  }
  0x44   : > { %4878 = vperm.xlu0 %4840, %v5602_v28  }
  0x47   : > { %4826 = vperm.xlu1 %4798, %v5592_v23  }
  0x48   : > { %4888 = vset.pattern.permute.xlu0 %v5448_v44 }
  0x4b   : > { %4836 = vperm.xlu1 %4798, %v5602_v28  }
  0x4f   : > { %4846 = vset.pattern.permute.xlu1 %v5447_v43 }
  0x50   : > { %4848 = vperm.xlu1 %4846, %v5607_v31  }
  0x54   : > { %4853 = vperm.xlu1 %4846, %v5577_v15  }
  0x58   : > { %4863 = vperm.xlu1 %4846, %v5623_v39  }
  0x5c   : > { %4873 = vperm.xlu1 %4846, %v5627_v42  }
  0x60   : > { %4882 = vset.pattern.permute.xlu1 %v5448_v44 }
  0x94   : > { %v5652_v50 = vpop.permute.xlu1 %4737 }
  0x95   : > { %7306 = vst [vmem:[#allocation6_spill] sm:$0xff] %v5652_v50  ;;  %v4759_v51 = vpop.permute.xlu0 %4758 }
  0x96   : > { %v4761_v54 = vunpack.i.h.bf16 %v4759_v51  ;;  %v4760_v55 = vunpack.i.l.bf16 %v4759_v51 }
  0x98   : > { %v495_v56 = vrot.slane %v4761_v54, %v5655_v53  ;;  %v484_v57 = vrot.slane %v4760_v55, %v5655_v53  ;;  %v5659_v58 = vpop.permute.xlu1 %4742 }
  0x99   : > { %7307 = vst [vmem:[#allocation7_spill] sm:$0xff] %v5659_v58  ;;  %v4775_v4 = vpop.permute.xlu0 %4774 }
  0x9a   : > { %v651_v60 = vmul.f32 %v495_v56, %v5661_v59  ;;  %v650_v61 = vmul.f32 %v484_v57, %v5661_v59  ;;  %v4777_v7 = vunpack.i.h.bf16 %v4775_v4  ;;  %v4776_v8 = vunpack.i.l.bf16 %v4775_v4 }
  0x9c   : > { %v5665_v62 = vpop.permute.xlu1 %4747  ;;  %684 = vrot.lane.b32.xlu0 %v651_v60, %s5450_s28  ;;  %682 = vrot.lane.b32.xlu1 %v650_v61, %s5450_s28  ;;  %v561_v19 = vrot.slane %v4777_v7, %v5655_v53  ;;  %v550_v20 = vrot.slane %v4776_v8, %v5655_v53 }
  0x9d   : > { %v4785_v27 = vpop.permute.xlu0 %4784 }
  0x9e   : > { %v4787_v29 = vunpack.i.h.bf16 %v4785_v27  ;;  %v4786_v30 = vunpack.i.l.bf16 %v4785_v27  ;;  %v657_v34 = vmul.f32 %v561_v19, %v5661_v59  ;;  %v656_v35 = vmul.f32 %v550_v20, %v5661_v59 }
  0xa0   : > { %v5669_v63 = vpop.permute.xlu1 %4752  ;;  %v605_v37 = vrot.slane %v4787_v29, %v5655_v53  ;;  %v594_v38 = vrot.slane %v4786_v30, %v5655_v53 }
  0xa1   : > { %v4795_v40 = vpop.permute.xlu0 %4794 }
  0xa2   : > { %v4797_v46 = vunpack.i.h.bf16 %v4795_v40  ;;  %v4796_v47 = vunpack.i.l.bf16 %v4795_v40  ;;  %v661_v52 = vmul.f32 %v605_v37, %v5661_v59  ;;  %v660_v54 = vmul.f32 %v594_v38, %v5661_v59 }
  0xa4   : > { %v649_v60 = vrot.slane %v4797_v46, %v5655_v53  ;;  %v638_v61 = vrot.slane %v4796_v47, %v5655_v53 }
  0xa5   : > { %v4765_v0 = vpop.permute.xlu1 %4764 }
  0xa6   : > { %v4767_v1 = vunpack.i.h.bf16 %v4765_v0  ;;  %v4766_v3 = vunpack.i.l.bf16 %v4765_v0  ;;  %v4807_v0 = vpop.permute.xlu0 %4806  ;;  %v665_v8 = vmul.f32 %v649_v60, %v5661_v59 }
  0xa7   : > { %v4809_v4 = vunpack.i.h.bf16 %v4807_v0  ;;  %v4808_v7 = vunpack.i.l.bf16 %v4807_v0 }
  0xa8   : > { %v517_v5 = vrot.slane %v4767_v1, %v5655_v53  ;;  %v506_v6 = vrot.slane %v4766_v3, %v5655_v53 }
  0xa9   : > { %v4770_v9 = vpop.permute.xlu1 %4769 }
  0xaa   : > { %v4772_v10 = vunpack.i.h.bf16 %v4770_v9  ;;  %v4771_v11 = vunpack.i.l.bf16 %v4770_v9  ;;  %v653_v12 = vmul.f32 %v517_v5, %v5661_v59  ;;  %v652_v13 = vmul.f32 %v506_v6, %v5661_v59  ;;  %v4822_v29 = vpop.permute.xlu0 %4821 }
  0xab   : > { %v664_v9 = vmul.f32 %v638_v61, %v5661_v59  ;;  %v4824_v30 = vunpack.i.h.bf16 %v4822_v29 }
  0xac   : > { %v539_v14 = vrot.slane %v4772_v10, %v5655_v53  ;;  %v528_v16 = vrot.slane %v4771_v11, %v5655_v53  ;;  %688 = vrot.lane.b32.xlu0 %v653_v12, %s5450_s28  ;;  %686 = vrot.lane.b32.xlu1 %v652_v13, %s5450_s28  ;;  %v789_v11 = vrot.slane %v4809_v4, %v5655_v53 }
  0xad   : > { %v4780_v21 = vpop.permute.xlu1 %4779  ;;  %v778_v12 = vrot.slane %v4808_v7, %v5655_v53  ;;  %v855_v38 = vrot.slane %v4824_v30, %v5655_v53 }
  0xae   : > { %v4782_v22 = vunpack.i.h.bf16 %v4780_v21  ;;  %v4781_v24 = vunpack.i.l.bf16 %v4780_v21  ;;  %v655_v25 = vmul.f32 %v539_v14, %v5661_v59  ;;  %v654_v26 = vmul.f32 %v528_v16, %v5661_v59 }
  0xaf   : > { %v924_v20 = vmul.f32 %v778_v12, %v5661_v59  ;;  %v925_v21 = vmul.f32 %v789_v11, %v5661_v59 }
  0xb0   : > { %692 = vrot.lane.b32.xlu0 %v655_v25, %s5450_s28  ;;  %690 = vrot.lane.b32.xlu1 %v654_v26, %s5450_s28  ;;  %v583_v32 = vrot.slane %v4782_v22, %v5655_v53  ;;  %v572_v33 = vrot.slane %v4781_v24, %v5655_v53 }
  0xb1   : > { %v4790_v36 = vpop.permute.xlu1 %4789 }
  0xb2   : > { %v4792_v41 = vunpack.i.h.bf16 %v4790_v36  ;;  %v4791_v43 = vunpack.i.l.bf16 %v4790_v36  ;;  %v659_v44 = vmul.f32 %v583_v32, %v5661_v59  ;;  %v658_v45 = vmul.f32 %v572_v33, %v5661_v59 }
  0xb3   : > { %v4823_v32 = vunpack.i.l.bf16 %v4822_v29 }
  0xb4   : > { %696 = vrot.lane.b32.xlu0 %v657_v34, %s5450_s28  ;;  %694 = vrot.lane.b32.xlu1 %v656_v35, %s5450_s28  ;;  %v627_v48 = vrot.slane %v4792_v41, %v5655_v53  ;;  %v616_v51 = vrot.slane %v4791_v43, %v5655_v53 }
  0xb5   : > { %v844_v40 = vrot.slane %v4823_v32, %v5655_v53 }
  0xb6   : > { %v4801_v55 = vpop.permute.xlu1 %4800  ;;  %v663_v1 = vmul.f32 %v627_v48, %v5661_v59  ;;  %v662_v3 = vmul.f32 %v616_v51, %v5661_v59 }
  0xb7   : > { %v4803_v56 = vunpack.i.h.bf16 %v4801_v55  ;;  %v4802_v57 = vunpack.i.l.bf16 %v4801_v55  ;;  %v931_v55 = vmul.f32 %v855_v38, %v5661_v59 }
  0xb8   : > { %700 = vrot.lane.b32.xlu0 %v659_v44, %s5450_s28  ;;  %698 = vrot.lane.b32.xlu1 %v658_v45, %s5450_s28  ;;  %v4832_v44 = vpop.permute.xlu0 %4831 }
  0xb9   : > { %v767_v5 = vrot.slane %v4803_v56, %v5655_v53  ;;  %v756_v6 = vrot.slane %v4802_v57, %v5655_v53  ;;  %v4834_v47 = vunpack.i.h.bf16 %v4832_v44  ;;  %v4833_v48 = vunpack.i.l.bf16 %v4832_v44 }
  0xba   : > { %v4812_v10 = vpop.permute.xlu1 %4811 }
  0xbb   : > { %v922_v13 = vmul.f32 %v756_v6, %v5661_v59  ;;  %v923_v14 = vmul.f32 %v767_v5, %v5661_v59  ;;  %v4814_v16 = vunpack.i.h.bf16 %v4812_v10  ;;  %v4813_v19 = vunpack.i.l.bf16 %v4812_v10 }
  0xbc   : > { %704 = vrot.lane.b32.xlu0 %v661_v52, %s5450_s28  ;;  %702 = vrot.lane.b32.xlu1 %v660_v54, %s5450_s28  ;;  %v930_v54 = vmul.f32 %v844_v40, %v5661_v59  ;;  %v899_v57 = vrot.slane %v4834_v47, %v5655_v53  ;;  %v888_v60 = vrot.slane %v4833_v48, %v5655_v53 }
  0xbd   : > { %v811_v24 = vrot.slane %v4814_v16, %v5655_v53  ;;  %v800_v25 = vrot.slane %v4813_v19, %v5655_v53 }
  0xbe   : > { %v4817_v22 = vpop.permute.xlu1 %4816  ;;  %v935_v10 = vmul.f32 %v899_v57, %v5661_v59 }
  0xbf   : > { %v4819_v26 = vunpack.i.h.bf16 %v4817_v22  ;;  %v4818_v27 = vunpack.i.l.bf16 %v4817_v22  ;;  %v926_v35 = vmul.f32 %v800_v25, %v5661_v59  ;;  %v927_v36 = vmul.f32 %v811_v24, %v5661_v59 }
  0xc0   : > { %708 = vrot.lane.b32.xlu0 %v663_v1, %s5450_s28  ;;  %706 = vrot.lane.b32.xlu1 %v662_v3, %s5450_s28  ;;  %v4843_v1 = vpop.permute.xlu0 %4842 }
  0xc1   : > { %v833_v33 = vrot.slane %v4819_v26, %v5655_v53  ;;  %v822_v34 = vrot.slane %v4818_v27, %v5655_v53  ;;  %v4845_v5 = vunpack.i.h.bf16 %v4843_v1  ;;  %v4844_v6 = vunpack.i.l.bf16 %v4843_v1 }
  0xc2   : > { %v4827_v37 = vpop.permute.xlu1 %4826 }
  0xc3   : > { %v4829_v41 = vunpack.i.h.bf16 %v4827_v37  ;;  %v4828_v43 = vunpack.i.l.bf16 %v4827_v37  ;;  %v928_v45 = vmul.f32 %v822_v34, %v5661_v59  ;;  %v929_v46 = vmul.f32 %v833_v33, %v5661_v59 }
  0xc4   : > { %712 = vrot.lane.b32.xlu0 %v665_v8, %s5450_s28  ;;  %710 = vrot.lane.b32.xlu1 %v664_v9, %s5450_s28  ;;  %v934_v9 = vmul.f32 %v888_v60, %v5661_v59  ;;  %v1039_v11 = vrot.slane %v4845_v5, %v5655_v53  ;;  %v4859_v30 = vpop.permute.xlu0 %4858 }
  0xc5   : > { %v877_v51 = vrot.slane %v4829_v41, %v5655_v53  ;;  %v866_v52 = vrot.slane %v4828_v43, %v5655_v53  ;;  %v4861_v34 = vunpack.i.h.bf16 %v4859_v30 }
  0xc6   : > { %v4837_v56 = vpop.permute.xlu1 %4836 }
  0xc7   : > { %v4839_v61 = vunpack.i.h.bf16 %v4837_v56  ;;  %v4838_v0 = vunpack.i.l.bf16 %v4837_v56  ;;  %v932_v3 = vmul.f32 %v866_v52, %v5661_v59  ;;  %v933_v4 = vmul.f32 %v877_v51, %v5661_v59 }
  0xc8   : > { %954 = vrot.lane.b32.xlu0 %v922_v13, %s5451_s29  ;;  %956 = vrot.lane.b32.xlu1 %v923_v14, %s5451_s29  ;;  %v1028_v13 = vrot.slane %v4844_v6, %v5655_v53  ;;  %v1105_v38 = vrot.slane %v4861_v34, %v5655_v53  ;;  %v4869_v47 = vpop.permute.xlu0 %4868 }
  0xc9   : > { %v921_v7 = vrot.slane %v4839_v61, %v5655_v53  ;;  %v910_v8 = vrot.slane %v4838_v0, %v5655_v53  ;;  %v4871_v48 = vunpack.i.h.bf16 %v4869_v47  ;;  %v4870_v51 = vunpack.i.l.bf16 %v4869_v47 }
  0xca   : > { %v1194_v25 = vmul.f32 %v1028_v13, %v5661_v59 }
  0xcb   : > { %v4849_v12 = vpop.permute.xlu1 %4848  ;;  %v936_v19 = vmul.f32 %v910_v8, %v5661_v59  ;;  %v1149_v60 = vrot.slane %v4871_v48, %v5655_v53  ;;  %v1138_v61 = vrot.slane %v4870_v51, %v5655_v53 }
  0xcc   : > { %958 = vrot.lane.b32.xlu0 %v924_v20, %s5451_s29  ;;  %960 = vrot.lane.b32.xlu1 %v925_v21, %s5451_s29  ;;  %v4851_v14 = vunpack.i.h.bf16 %v4849_v12  ;;  %v4850_v16 = vunpack.i.l.bf16 %v4849_v12  ;;  %v937_v20 = vmul.f32 %v921_v7, %v5661_v59  ;;  %v1195_v21 = vmul.f32 %v1039_v11, %v5661_v59  ;;  %v4879_v0 = vpop.permute.xlu0 %4878 }
  0xcd   : > { %v4881_v6 = vunpack.i.h.bf16 %v4879_v0  ;;  %v4880_v7 = vunpack.i.l.bf16 %v4879_v0  ;;  %v1204_v11 = vmul.f32 %v1138_v61, %v5661_v59 }
  0xce   : > { %v1061_v22 = vrot.slane %v4851_v14, %v5655_v53  ;;  %v1050_v24 = vrot.slane %v4850_v16, %v5655_v53 }
  0xcf   : > { %v4854_v26 = vpop.permute.xlu1 %4853  ;;  %v1193_v12 = vrot.slane %v4881_v6, %v5655_v53  ;;  %v1182_v13 = vrot.slane %v4880_v7, %v5655_v53 }
  0xd0   : > { %962 = vrot.lane.b32.xlu0 %v926_v35, %s5451_s29  ;;  %964 = vrot.lane.b32.xlu1 %v927_v36, %s5451_s29  ;;  %v4856_v27 = vunpack.i.h.bf16 %v4854_v26  ;;  %v4855_v29 = vunpack.i.l.bf16 %v4854_v26  ;;  %v1197_v32 = vmul.f32 %v1061_v22, %v5661_v59  ;;  %v1196_v33 = vmul.f32 %v1050_v24, %v5661_v59 }
  0xd1   : > { %v4860_v35 = vunpack.i.l.bf16 %v4859_v30 }
  0xd2   : > { %v1083_v36 = vrot.slane %v4856_v27, %v5655_v53  ;;  %v1072_v37 = vrot.slane %v4855_v29, %v5655_v53 }
  0xd3   : > { %v1094_v40 = vrot.slane %v4860_v35, %v5655_v53  ;;  %v4864_v41 = vpop.permute.xlu1 %4863 }
  0xd4   : > { %966 = vrot.lane.b32.xlu0 %v928_v45, %s5451_s29  ;;  %968 = vrot.lane.b32.xlu1 %v929_v46, %s5451_s29  ;;  %v4866_v43 = vunpack.i.h.bf16 %v4864_v41  ;;  %v4865_v44 = vunpack.i.l.bf16 %v4864_v41  ;;  %v1199_v45 = vmul.f32 %v1083_v36, %v5661_v59  ;;  %v1198_v46 = vmul.f32 %v1072_v37, %v5661_v59 }
  0xd5   : > { %v1200_v56 = vmul.f32 %v1094_v40, %v5661_v59 }
  0xd6   : > { %v1127_v52 = vrot.slane %v4866_v43, %v5655_v53 }
  0xd7   : > { %v4874_v57 = vpop.permute.xlu1 %4873 }
  0xd8   : > { %970 = vrot.lane.b32.xlu0 %v930_v54, %s5451_s29  ;;  %972 = vrot.lane.b32.xlu1 %v931_v55, %s5451_s29  ;;  %v1116_v54 = vrot.slane %v4865_v44, %v5655_v53  ;;  %v1201_v55 = vmul.f32 %v1105_v38, %v5661_v59  ;;  %v4876_v1 = vunpack.i.h.bf16 %v4874_v57 }
  0xda   : > { %v1202_v5 = vmul.f32 %v1116_v54, %v5661_v59  ;;  %v1171_v8 = vrot.slane %v4876_v1, %v5655_v53 }
  0xdc   : > { %974 = vrot.lane.b32.xlu0 %v932_v3, %s5451_s29  ;;  %976 = vrot.lane.b32.xlu1 %v933_v4, %s5451_s29  ;;  %v4875_v3 = vunpack.i.l.bf16 %v4874_v57  ;;  %v1203_v4 = vmul.f32 %v1127_v52, %v5661_v59  ;;  %v1207_v14 = vmul.f32 %v1171_v8, %v5661_v59 }
  0xe0   : > { %978 = vrot.lane.b32.xlu0 %v934_v9, %s5451_s29  ;;  %980 = vrot.lane.b32.xlu1 %v935_v10, %s5451_s29  ;;  %v1160_v9 = vrot.slane %v4875_v3, %v5655_v53  ;;  %v1205_v10 = vmul.f32 %v1149_v60, %v5661_v59 }
  0xe2   : > { %v1206_v16 = vmul.f32 %v1160_v9, %v5661_v59 }
  0xe4   : > { %982 = vrot.lane.b32.xlu0 %v936_v19, %s5451_s29  ;;  %984 = vrot.lane.b32.xlu1 %v937_v20, %s5451_s29  ;;  %v1209_v19 = vmul.f32 %v1193_v12, %v5661_v59  ;;  %v1208_v20 = vmul.f32 %v1182_v13, %v5661_v59 }
  0xe8   : > { %1228 = vrot.lane.b32.xlu0 %v1195_v21, %s5452_s30  ;;  %1226 = vrot.lane.b32.xlu1 %v1194_v25, %s5452_s30 }
  0xec   : > { %1232 = vrot.lane.b32.xlu0 %v1197_v32, %s5452_s30  ;;  %1230 = vrot.lane.b32.xlu1 %v1196_v33, %s5452_s30  ;;  %v5453_v32 = vmov 5  }
  0xf0   : > { %1236 = vrot.lane.b32.xlu0 %v1199_v45, %s5452_s30  ;;  %1234 = vrot.lane.b32.xlu1 %v1198_v46, %s5452_s30 }
  0xf4   : > { %1240 = vrot.lane.b32.xlu0 %v1201_v55, %s5452_s30  ;;  %1238 = vrot.lane.b32.xlu1 %v1200_v56, %s5452_s30 }
  0xf8   : > { %1244 = vrot.lane.b32.xlu0 %v1203_v4, %s5452_s30  ;;  %1242 = vrot.lane.b32.xlu1 %v1202_v5, %s5452_s30 }
  0xfc   : > { %1248 = vrot.lane.b32.xlu0 %v1205_v10, %s5452_s30  ;;  %1246 = vrot.lane.b32.xlu1 %v1204_v11, %s5452_s30 }
 0x100   : > { %1252 = vrot.lane.b32.xlu0 %v1207_v14, %s5452_s30  ;;  %1250 = vrot.lane.b32.xlu1 %v1206_v16, %s5452_s30 }
 0x104   : > { %1256 = vrot.lane.b32.xlu0 %v1209_v19, %s5452_s30  ;;  %1254 = vrot.lane.b32.xlu1 %v1208_v20, %s5452_s30 }
 0x108   : > { %4890 = vperm.xlu0 %4888, %v5607_v31   ;;  %4884 = vperm.xlu1 %4882, %v5579_v17  }
 0x10c   : > { %4905 = vperm.xlu0 %4888, %v5623_v39   ;;  %4895 = vperm.xlu1 %4882, %v5577_v15  }
 0x10e   : > { %v5817_v21 = vpop.permute.xlu0 %684  ;;  %v5819_v22 = vpop.permute.xlu1 %682 }
 0x10f   : > { %7308 = vst [vmem:[#allocation8_spill] sm:$0xff] %v5817_v21  ;;  %7309 = vst [vmem:[#allocation9_spill] sm:$0xff] %v5819_v22 }
 0x110   : > { %4915 = vperm.xlu0 %4888, %v5627_v42   ;;  %4900 = vperm.xlu1 %4882, %v5582_v18  }
 0x114   : > { %4910 = vperm.xlu1 %4882, %v5592_v23   ;;  %4924 = vset.pattern.permute.xlu0 %v5453_v32 }
 0x118   : > { %4920 = vperm.xlu1 %4882, %v5602_v28  }
 0x11c   : > { %4930 = vset.pattern.permute.xlu1 %v5453_v32 }
 0x11e   : > { %v5821_v24 = vpop.permute.xlu0 %688  ;;  %v5823_v25 = vpop.permute.xlu1 %686 }
 0x11f   : > { %7310 = vst [vmem:[#allocation10_spill] sm:$0xff] %v5821_v24  ;;  %7311 = vst [vmem:[#allocation11_spill] sm:$0xff] %v5823_v25 }
 0x122   : > { %v5825_v26 = vpop.permute.xlu0 %692  ;;  %v5827_v27 = vpop.permute.xlu1 %690 }
 0x123   : > { %7312 = vst [vmem:[#allocation12_spill] sm:$0xff] %v5825_v26  ;;  %7313 = vst [vmem:[#allocation13_spill] sm:$0xff] %v5827_v27 }
 0x126   : > { %v5829_v29 = vpop.permute.xlu0 %696  ;;  %v5831_v30 = vpop.permute.xlu1 %694 }
 0x127   : > { %7314 = vst [vmem:[#allocation14_spill] sm:$0xff] %v5829_v29  ;;  %7315 = vst [vmem:[#allocation15_spill] sm:$0xff] %v5831_v30 }
 0x12a   : > { %v5833_v33 = vpop.permute.xlu0 %700  ;;  %v5835_v34 = vpop.permute.xlu1 %698 }
 0x12b   : > { %7316 = vst [vmem:[#allocation16_spill] sm:$0xff] %v5833_v33  ;;  %7317 = vst [vmem:[#allocation17_spill] sm:$0xff] %v5835_v34 }
 0x12e   : > { %v5837_v35 = vpop.permute.xlu0 %704  ;;  %v5839_v36 = vpop.permute.xlu1 %702 }
 0x132   : > { %v5841_v37 = vpop.permute.xlu0 %708  ;;  %v5843_v38 = vpop.permute.xlu1 %706 }
 0x133   : > { %7318 = vst [vmem:[#allocation18_spill] sm:$0xff] %v5841_v37  ;;  %7319 = vst [vmem:[#allocation19_spill] sm:$0xff] %v5843_v38 }
 0x136   : > { %v5845_v40 = vpop.permute.xlu0 %712  ;;  %v5847_v41 = vpop.permute.xlu1 %710 }
 0x13a   : > { %v5849_v43 = vpop.permute.xlu0 %954  ;;  %v5851_v44 = vpop.permute.xlu1 %956 }
 0x13b   : > { %7320 = vst [vmem:[#allocation20_spill] sm:$0xff] %v5849_v43  ;;  %7321 = vst [vmem:[#allocation21_spill] sm:$0xff] %v5851_v44 }
 0x13e   : > { %v5853_v45 = vpop.permute.xlu0 %958  ;;  %v5855_v46 = vpop.permute.xlu1 %960 }
 0x13f   : > { %7322 = vst [vmem:[#allocation22_spill] sm:$0xff] %v5853_v45  ;;  %7323 = vst [vmem:[#allocation23_spill] sm:$0xff] %v5855_v46 }
 0x142   : > { %v5857_v47 = vpop.permute.xlu0 %962  ;;  %v5859_v48 = vpop.permute.xlu1 %964 }
 0x143   : > { %7324 = vst [vmem:[#allocation24_spill] sm:$0xff] %v5857_v47  ;;  %7325 = vst [vmem:[#allocation25_spill] sm:$0xff] %v5859_v48 }
 0x146   : > { %v5861_v51 = vpop.permute.xlu0 %966  ;;  %v5863_v52 = vpop.permute.xlu1 %968 }
 0x147   : > { %7326 = vst [vmem:[#allocation26_spill] sm:$0xff] %v5861_v51  ;;  %7327 = vst [vmem:[#allocation27_spill] sm:$0xff] %v5863_v52 }
 0x14a   : > { %v5865_v54 = vpop.permute.xlu0 %970  ;;  %v5867_v55 = vpop.permute.xlu1 %972 }
 0x14b   : > { %7328 = vst [vmem:[#allocation28_spill] sm:$0xff] %v5865_v54  ;;  %7329 = vst [vmem:[#allocation29_spill] sm:$0xff] %v5867_v55 }
 0x14e   : > { %v5869_v56 = vpop.permute.xlu0 %974  ;;  %v5871_v57 = vpop.permute.xlu1 %976 }
 0x152   : > { %v5873_v60 = vpop.permute.xlu0 %978  ;;  %v5875_v61 = vpop.permute.xlu1 %980 }
 0x153   : > { %7330 = vst [vmem:[#allocation30_spill] sm:$0xff] %v5873_v60  ;;  %7331 = vst [vmem:[#allocation31_spill] sm:$0xff] %v5875_v61 }
 0x156   : > { %v5877_v0 = vpop.permute.xlu0 %982  ;;  %v5879_v1 = vpop.permute.xlu1 %984 }
 0x15a   : > { %v5881_v3 = vpop.permute.xlu0 %1228  ;;  %v5883_v4 = vpop.permute.xlu1 %1226 }
 0x15b   : > { %7332 = vst [vmem:[#allocation32_spill] sm:$0xff] %v5881_v3  ;;  %7333 = vst [vmem:[#allocation33_spill] sm:$0xff] %v5883_v4 }
 0x15e   : > { %v5885_v5 = vpop.permute.xlu0 %1232  ;;  %v5887_v6 = vpop.permute.xlu1 %1230 }
 0x15f   : > { %7334 = vst [vmem:[#allocation34_spill] sm:$0xff] %v5885_v5  ;;  %7335 = vst [vmem:[#allocation35_spill] sm:$0xff] %v5887_v6 }
 0x162   : > { %v5889_v7 = vpop.permute.xlu0 %1236  ;;  %v5891_v8 = vpop.permute.xlu1 %1234 }
 0x163   : > { %7336 = vst [vmem:[#allocation36_spill] sm:$0xff] %v5889_v7  ;;  %7337 = vst [vmem:[#allocation37_spill] sm:$0xff] %v5891_v8 }
 0x166   : > { %v5893_v9 = vpop.permute.xlu0 %1240  ;;  %v5895_v10 = vpop.permute.xlu1 %1238 }
 0x167   : > { %7338 = vst [vmem:[#allocation38_spill] sm:$0xff] %v5893_v9  ;;  %7339 = vst [vmem:[#allocation39_spill] sm:$0xff] %v5895_v10 }
 0x16a   : > { %v5897_v11 = vpop.permute.xlu0 %1244  ;;  %v5899_v12 = vpop.permute.xlu1 %1242 }
 0x16b   : > { %7340 = vst [vmem:[#allocation40_spill] sm:$0xff] %v5897_v11  ;;  %7341 = vst [vmem:[#allocation41_spill] sm:$0xff] %v5899_v12 }
 0x16e   : > { %v5901_v13 = vpop.permute.xlu0 %1248  ;;  %v5903_v14 = vpop.permute.xlu1 %1246 }
 0x172   : > { %v5905_v16 = vpop.permute.xlu0 %1252  ;;  %v5907_v19 = vpop.permute.xlu1 %1250 }
 0x173   : > { %7342 = vst [vmem:[#allocation42_spill] sm:$0xff] %v5905_v16  ;;  %7343 = vst [vmem:[#allocation43_spill] sm:$0xff] %v5907_v19 }
 0x176   : > { %v5909_v20 = vpop.permute.xlu0 %1256  ;;  %v5911_v32 = vpop.permute.xlu1 %1254 }
 0x183   : > { %v4891_v2 = vpop.permute.xlu0 %4890  ;;  %v4885_v49 = vpop.permute.xlu1 %4884 }
 0x184   : > { %v4893_v61 = vunpack.i.h.bf16 %v4891_v2  ;;  %v4892_v37 = vunpack.i.l.bf16 %v4891_v2  ;;  %v4887_v60 = vunpack.i.h.bf16 %v4885_v49  ;;  %v4886_v11 = vunpack.i.l.bf16 %v4885_v49 }
 0x186   : > { %v1311_v38 = vrot.slane %v4887_v60, %v5655_v53  ;;  %v1300_v12 = vrot.slane %v4886_v11, %v5655_v53  ;;  %v1333_v55 = vrot.slane %v4893_v61, %v5655_v53  ;;  %v1322_v16 = vrot.slane %v4892_v37, %v5655_v53 }
 0x187   : > { %v4896_v54 = vpop.permute.xlu1 %4895  ;;  %v4906_v61 = vpop.permute.xlu0 %4905 }
 0x188   : > { %v4898_v19 = vunpack.i.h.bf16 %v4896_v54  ;;  %v4897_v33 = vunpack.i.l.bf16 %v4896_v54  ;;  %v1467_v34 = vmul.f32 %v1311_v38, %v5661_v59  ;;  %v1466_v5 = vmul.f32 %v1300_v12, %v5661_v59 }
 0x189   : > { %v1469_v49 = vmul.f32 %v1333_v55, %v5661_v59  ;;  %v1468_v60 = vmul.f32 %v1322_v16, %v5661_v59  ;;  %v4908_v38 = vunpack.i.h.bf16 %v4906_v61 }
 0x18a   : > { %1500 = vrot.lane.b32.xlu1 %v1467_v34, %s5454_s4  ;;  %1498 = vrot.lane.b32.xlu0 %v1466_v5, %s5454_s4  ;;  %v1355_v37 = vrot.slane %v4898_v19, %v5655_v53  ;;  %v1344_v11 = vrot.slane %v4897_v33, %v5655_v53  ;;  %v4907_v34 = vunpack.i.l.bf16 %v4906_v61 }
 0x18b   : > { %v4901_v2 = vpop.permute.xlu1 %4900  ;;  %v1399_v33 = vrot.slane %v4908_v38, %v5655_v53 }
 0x18c   : > { %v4903_v54 = vunpack.i.h.bf16 %v4901_v2  ;;  %v4902_v3 = vunpack.i.l.bf16 %v4901_v2  ;;  %v1471_v55 = vmul.f32 %v1355_v37, %v5661_v59  ;;  %v1470_v16 = vmul.f32 %v1344_v11, %v5661_v59  ;;  %v4916_v2 = vpop.permute.xlu0 %4915 }
 0x18d   : > { %v1388_v19 = vrot.slane %v4907_v34, %v5655_v53  ;;  %v4918_v37 = vunpack.i.h.bf16 %v4916_v2  ;;  %v4917_v11 = vunpack.i.l.bf16 %v4916_v2  ;;  %v1475_v38 = vmul.f32 %v1399_v33, %v5661_v59 }
 0x18e   : > { %1504 = vrot.lane.b32.xlu1 %v1469_v49, %s5454_s4  ;;  %1502 = vrot.lane.b32.xlu0 %v1468_v60, %s5454_s4  ;;  %v1377_v5 = vrot.slane %v4903_v54, %v5655_v53  ;;  %v1366_v12 = vrot.slane %v4902_v3, %v5655_v53 }
 0x18f   : > { %v4911_v6 = vpop.permute.xlu1 %4910  ;;  %v1474_v34 = vmul.f32 %v1388_v19, %v5661_v59 }
 0x190   : > { %v4913_v49 = vunpack.i.h.bf16 %v4911_v6  ;;  %v4912_v60 = vunpack.i.l.bf16 %v4911_v6  ;;  %v1473_v61 = vmul.f32 %v1377_v5, %v5661_v59  ;;  %v1472_v3 = vmul.f32 %v1366_v12, %v5661_v59 }
 0x191   : > { %v1443_v6 = vrot.slane %v4918_v37, %v5655_v53  ;;  %v1432_v5 = vrot.slane %v4917_v11, %v5655_v53 }
 0x192   : > { %1508 = vrot.lane.b32.xlu1 %v1471_v55, %s5454_s4  ;;  %1506 = vrot.lane.b32.xlu0 %v1470_v16, %s5454_s4  ;;  %v1421_v54 = vrot.slane %v4913_v49, %v5655_v53  ;;  %v1410_v55 = vrot.slane %v4912_v60, %v5655_v53 }
 0x193   : > { %v4921_v16 = vpop.permute.xlu1 %4920  ;;  %v1479_v60 = vmul.f32 %v1443_v6, %v5661_v59 }
 0x194   : > { %v4923_v12 = vunpack.i.h.bf16 %v4921_v16  ;;  %v1477_v2 = vmul.f32 %v1421_v54, %v5661_v59  ;;  %v1476_v49 = vmul.f32 %v1410_v55, %v5661_v59  ;;  %v5455_v54 = vmov 6  }
 0x196   : > { %1512 = vrot.lane.b32.xlu1 %v1473_v61, %s5454_s4  ;;  %1510 = vrot.lane.b32.xlu0 %v1472_v3, %s5454_s4  ;;  %v4922_v61 = vunpack.i.l.bf16 %v4921_v16  ;;  %v1465_v33 = vrot.slane %v4923_v12, %v5655_v53  ;;  %v1478_v3 = vmul.f32 %v1432_v5, %v5661_v59 }
 0x198   : > { %v1454_v19 = vrot.slane %v4922_v61, %v5655_v53  ;;  %v1481_v37 = vmul.f32 %v1465_v33, %v5661_v59 }
 0x19a   : > { %1516 = vrot.lane.b32.xlu1 %v1475_v38, %s5454_s4  ;;  %1514 = vrot.lane.b32.xlu0 %v1474_v34, %s5454_s4  ;;  %v1480_v11 = vmul.f32 %v1454_v19, %v5661_v59 }
 0x19e   : > { %1520 = vrot.lane.b32.xlu1 %v1477_v2, %s5454_s4  ;;  %1518 = vrot.lane.b32.xlu0 %v1476_v49, %s5454_s4 }
 0x1a2   : > { %1524 = vrot.lane.b32.xlu1 %v1479_v60, %s5454_s4  ;;  %1522 = vrot.lane.b32.xlu0 %v1478_v3, %s5454_s4 }
 0x1a6   : > { %1528 = vrot.lane.b32.xlu1 %v1481_v37, %s5454_s4  ;;  %1526 = vrot.lane.b32.xlu0 %v1480_v11, %s5454_s4  ;;  %s7239_s4 = scalar_lea.hbm %s7297_s3, %s4647_s27 }
 0x1aa   : > { %4932 = vperm.xlu1 %4930, %v5607_v31   ;;  %4926 = vperm.xlu0 %4924, %v5579_v17  }
 0x1ae   : > { %4937 = vperm.xlu1 %4930, %v5577_v15   ;;  %4942 = vperm.xlu0 %4924, %v5582_v18  }
 0x1b2   : > { %4947 = vperm.xlu1 %4930, %v5623_v39   ;;  %4952 = vperm.xlu0 %4924, %v5592_v23  }
 0x1b6   : > { %4957 = vperm.xlu1 %4930, %v5627_v42   ;;  %4962 = vperm.xlu0 %4924, %v5602_v28  }
 0x1ba   : > { %4966 = vset.pattern.permute.xlu1 %v5455_v54  ;;  %4972 = vset.pattern.permute.xlu0 %v5455_v54 }
 0x1fc   : > { %v5969_v55 = vpop.permute.xlu1 %1500  ;;  %v5971_v38 = vpop.permute.xlu0 %1498 }
 0x1fd   : > { %7344 = vst [vmem:[#allocation44_spill] sm:$0xff] %v5969_v55  ;;  %7345 = vst [vmem:[#allocation45_spill] sm:$0xff] %v5971_v38 }
 0x200   : > { %v5973_v34 = vpop.permute.xlu1 %1504  ;;  %v5975_v16 = vpop.permute.xlu0 %1502 }
 0x201   : > { %7346 = vst [vmem:[#allocation46_spill] sm:$0xff] %v5973_v34  ;;  %7347 = vst [vmem:[#allocation47_spill] sm:$0xff] %v5975_v16 }
 0x204   : > { %v5977_v6 = vpop.permute.xlu1 %1508  ;;  %v5979_v5 = vpop.permute.xlu0 %1506 }
 0x205   : > { %7348 = vst [vmem:[#allocation48_spill] sm:$0xff] %v5977_v6  ;;  %7349 = vst [vmem:[#allocation49_spill] sm:$0xff] %v5979_v5 }
 0x208   : > { %v5981_v12 = vpop.permute.xlu1 %1512  ;;  %v5983_v61 = vpop.permute.xlu0 %1510 }
 0x209   : > { %7350 = vst [vmem:[#allocation50_spill] sm:$0xff] %v5981_v12  ;;  %7351 = vst [vmem:[#allocation51_spill] sm:$0xff] %v5983_v61 }
 0x20c   : > { %v5985_v2 = vpop.permute.xlu1 %1516  ;;  %v5987_v49 = vpop.permute.xlu0 %1514 }
 0x20d   : > { %7352 = vst [vmem:[#allocation52_spill] sm:$0xff] %v5985_v2  ;;  %7353 = vst [vmem:[#allocation53_spill] sm:$0xff] %v5987_v49 }
 0x210   : > { %v5989_v33 = vpop.permute.xlu1 %1520  ;;  %v5991_v19 = vpop.permute.xlu0 %1518 }
 0x214   : > { %v5993_v60 = vpop.permute.xlu1 %1524  ;;  %v5995_v3 = vpop.permute.xlu0 %1522 }
 0x215   : > { %7354 = vst [vmem:[#allocation54_spill] sm:$0xff] %v5993_v60  ;;  %7355 = vst [vmem:[#allocation55_spill] sm:$0xff] %v5995_v3 }
 0x218   : > { %v5997_v37 = vpop.permute.xlu1 %1528  ;;  %v5999_v11 = vpop.permute.xlu0 %1526 }
 0x225   : > { %v4933_v54 = vpop.permute.xlu1 %4932  ;;  %v4927_v34 = vpop.permute.xlu0 %4926 }
 0x226   : > { %v4935_v55 = vunpack.i.h.bf16 %v4933_v54  ;;  %v4934_v16 = vunpack.i.l.bf16 %v4933_v54  ;;  %v4929_v46 = vunpack.i.h.bf16 %v4927_v34  ;;  %v4928_v2 = vunpack.i.l.bf16 %v4927_v34 }
 0x228   : > { %v1583_v49 = vrot.slane %v4929_v46, %v5655_v53  ;;  %v1572_v38 = vrot.slane %v4928_v2, %v5655_v53  ;;  %v1605_v44 = vrot.slane %v4935_v55, %v5655_v53  ;;  %v1594_v60 = vrot.slane %v4934_v16, %v5655_v53 }
 0x229   : > { %v4938_v45 = vpop.permute.xlu1 %4937  ;;  %v4943_v4 = vpop.permute.xlu0 %4942 }
 0x22a   : > { %v4940_v3 = vunpack.i.h.bf16 %v4938_v45  ;;  %v4939_v24 = vunpack.i.l.bf16 %v4938_v45  ;;  %v1739_v21 = vmul.f32 %v1583_v49, %v5661_v59  ;;  %v1738_v25 = vmul.f32 %v1572_v38, %v5661_v59 }
 0x22b   : > { %v1741_v46 = vmul.f32 %v1605_v44, %v5661_v59  ;;  %v1740_v34 = vmul.f32 %v1594_v60, %v5661_v59  ;;  %v4945_v55 = vunpack.i.h.bf16 %v4943_v4  ;;  %v4944_v2 = vunpack.i.l.bf16 %v4943_v4 }
 0x22c   : > { %1772 = vrot.lane.b32.xlu0 %v1739_v21, %s5456_s5  ;;  %1770 = vrot.lane.b32.xlu1 %v1738_v25, %s5456_s5  ;;  %v1627_v16 = vrot.slane %v4940_v3, %v5655_v53  ;;  %v1616_v45 = vrot.slane %v4939_v24, %v5655_v53 }
 0x22d   : > { %v4948_v54 = vpop.permute.xlu1 %4947  ;;  %v1649_v38 = vrot.slane %v4945_v55, %v5655_v53  ;;  %v1638_v21 = vrot.slane %v4944_v2, %v5655_v53  ;;  %v4953_v44 = vpop.permute.xlu0 %4952 }
 0x22e   : > { %v4950_v25 = vunpack.i.h.bf16 %v4948_v54  ;;  %v4949_v49 = vunpack.i.l.bf16 %v4948_v54  ;;  %v1743_v60 = vmul.f32 %v1627_v16, %v5661_v59  ;;  %v1742_v4 = vmul.f32 %v1616_v45, %v5661_v59 }
 0x22f   : > { %v4955_v24 = vunpack.i.h.bf16 %v4953_v44  ;;  %v4954_v3 = vunpack.i.l.bf16 %v4953_v44  ;;  %v1745_v55 = vmul.f32 %v1649_v38, %v5661_v59  ;;  %v1744_v2 = vmul.f32 %v1638_v21, %v5661_v59 }
 0x230   : > { %1776 = vrot.lane.b32.xlu0 %v1741_v46, %s5456_s5  ;;  %1774 = vrot.lane.b32.xlu1 %v1740_v34, %s5456_s5  ;;  %v1671_v46 = vrot.slane %v4950_v25, %v5655_v53  ;;  %v1660_v34 = vrot.slane %v4949_v49, %v5655_v53 }
 0x231   : > { %v4958_v54 = vpop.permute.xlu1 %4957  ;;  %v1693_v16 = vrot.slane %v4955_v24, %v5655_v53  ;;  %v1682_v45 = vrot.slane %v4954_v3, %v5655_v53  ;;  %v4963_v44 = vpop.permute.xlu0 %4962 }
 0x232   : > { %v1747_v25 = vmul.f32 %v1671_v46, %v5661_v59  ;;  %v1746_v49 = vmul.f32 %v1660_v34, %v5661_v59  ;;  %v4965_v38 = vunpack.i.h.bf16 %v4963_v44  ;;  %v4964_v21 = vunpack.i.l.bf16 %v4963_v44 }
 0x233   : > { %v1749_v24 = vmul.f32 %v1693_v16, %v5661_v59  ;;  %v1748_v3 = vmul.f32 %v1682_v45, %v5661_v59 }
 0x234   : > { %1780 = vrot.lane.b32.xlu0 %v1743_v60, %s5456_s5  ;;  %1778 = vrot.lane.b32.xlu1 %v1742_v4, %s5456_s5  ;;  %v4960_v60 = vunpack.i.h.bf16 %v4958_v54  ;;  %v4959_v4 = vunpack.i.l.bf16 %v4958_v54  ;;  %v1737_v46 = vrot.slane %v4965_v38, %v5655_v53  ;;  %v1726_v34 = vrot.slane %v4964_v21, %v5655_v53 }
 0x236   : > { %v1753_v16 = vmul.f32 %v1737_v46, %v5661_v59  ;;  %v1752_v45 = vmul.f32 %v1726_v34, %v5661_v59 }
 0x238   : > { %1784 = vrot.lane.b32.xlu0 %v1745_v55, %s5456_s5  ;;  %1782 = vrot.lane.b32.xlu1 %v1744_v2, %s5456_s5  ;;  %v1715_v55 = vrot.slane %v4960_v60, %v5655_v53  ;;  %v1704_v2 = vrot.slane %v4959_v4, %v5655_v53  ;;  %v5457_v60 = vmov 7  }
 0x23a   : > { %v1751_v54 = vmul.f32 %v1715_v55, %v5661_v59  ;;  %v1750_v44 = vmul.f32 %v1704_v2, %v5661_v59 }
 0x23c   : > { %1788 = vrot.lane.b32.xlu0 %v1747_v25, %s5456_s5  ;;  %1786 = vrot.lane.b32.xlu1 %v1746_v49, %s5456_s5 }
 0x240   : > { %1792 = vrot.lane.b32.xlu0 %v1749_v24, %s5456_s5  ;;  %1790 = vrot.lane.b32.xlu1 %v1748_v3, %s5456_s5 }
 0x244   : > { %1796 = vrot.lane.b32.xlu0 %v1751_v54, %s5456_s5  ;;  %1794 = vrot.lane.b32.xlu1 %v1750_v44, %s5456_s5 }
 0x248   : > { %1800 = vrot.lane.b32.xlu0 %v1753_v16, %s5456_s5  ;;  %1798 = vrot.lane.b32.xlu1 %v1752_v45, %s5456_s5 }
 0x24c   : > { %4974 = vperm.xlu0 %4972, %v5607_v31   ;;  %4968 = vperm.xlu1 %4966, %v5579_v17  }
 0x250   : > { %4989 = vperm.xlu0 %4972, %v5623_v39   ;;  %4979 = vperm.xlu1 %4966, %v5577_v15  }
 0x254   : > { %4999 = vperm.xlu0 %4972, %v5627_v42   ;;  %4984 = vperm.xlu1 %4966, %v5582_v18  }
 0x258   : > { %4994 = vperm.xlu1 %4966, %v5592_v23   ;;  %5008 = vset.pattern.permute.xlu0 %v5457_v60 }
 0x25c   : > { %5004 = vperm.xlu1 %4966, %v5602_v28  }
 0x260   : > { %5014 = vset.pattern.permute.xlu1 %v5457_v60 }
 0x29e   : > { %v6057_v4 = vpop.permute.xlu0 %1772  ;;  %v6059_v25 = vpop.permute.xlu1 %1770 }
 0x29f   : > { %7356 = vst [vmem:[#allocation56_spill] sm:$0xff] %v6057_v4  ;;  %7357 = vst [vmem:[#allocation57_spill] sm:$0xff] %v6059_v25 }
 0x2a2   : > { %v6061_v49 = vpop.permute.xlu0 %1776  ;;  %v6063_v38 = vpop.permute.xlu1 %1774 }
 0x2a3   : > { %7358 = vst [vmem:[#allocation58_spill] sm:$0xff] %v6061_v49  ;;  %7359 = vst [vmem:[#allocation59_spill] sm:$0xff] %v6063_v38 }
 0x2a6   : > { %v6065_v21 = vpop.permute.xlu0 %1780  ;;  %v6067_v55 = vpop.permute.xlu1 %1778 }
 0x2a7   : > { %7360 = vst [vmem:[#allocation60_spill] sm:$0xff] %v6065_v21  ;;  %7361 = vst [vmem:[#allocation61_spill] sm:$0xff] %v6067_v55 }
 0x2aa   : > { %v6069_v2 = vpop.permute.xlu0 %1784  ;;  %v6071_v24 = vpop.permute.xlu1 %1782 }
 0x2ab   : > { %7362 = vst [vmem:[#allocation62_spill] sm:$0xff] %v6069_v2  ;;  %7363 = vst [vmem:[#allocation63_spill] sm:$0xff] %v6071_v24 }
 0x2ae   : > { %v6073_v3 = vpop.permute.xlu0 %1788  ;;  %v6075_v46 = vpop.permute.xlu1 %1786 }
 0x2af   : > { %7364 = vst [vmem:[#allocation64_spill] sm:$0xff] %v6073_v3  ;;  %7365 = vst [vmem:[#allocation65_spill] sm:$0xff] %v6075_v46 }
 0x2b2   : > { %v6077_v34 = vpop.permute.xlu0 %1792  ;;  %v6079_v54 = vpop.permute.xlu1 %1790 }
 0x2b6   : > { %v6081_v44 = vpop.permute.xlu0 %1796  ;;  %v6083_v16 = vpop.permute.xlu1 %1794 }
 0x2b7   : > { %7366 = vst [vmem:[#allocation66_spill] sm:$0xff] %v6081_v44  ;;  %7367 = vst [vmem:[#allocation67_spill] sm:$0xff] %v6083_v16 }
 0x2ba   : > { %v6085_v45 = vpop.permute.xlu0 %1800  ;;  %v6087_v60 = vpop.permute.xlu1 %1798 }
 0x2c7   : > { %v4975_v49 = vpop.permute.xlu0 %4974  ;;  %v4969_v4 = vpop.permute.xlu1 %4968 }
 0x2c8   : > { %v4977_v38 = vunpack.i.h.bf16 %v4975_v49  ;;  %v4976_v25 = vunpack.i.l.bf16 %v4975_v49  ;;  %v4971_v43 = vunpack.i.h.bf16 %v4969_v4  ;;  %v4970_v3 = vunpack.i.l.bf16 %v4969_v4 }
 0x2ca   : > { %v1855_v46 = vrot.slane %v4971_v43, %v5655_v53  ;;  %v1844_v22 = vrot.slane %v4970_v3, %v5655_v53  ;;  %v1877_v24 = vrot.slane %v4977_v38, %v5655_v53  ;;  %v1866_v44 = vrot.slane %v4976_v25, %v5655_v53 }
 0x2cb   : > { %v4980_v2 = vpop.permute.xlu1 %4979  ;;  %v4990_v38 = vpop.permute.xlu0 %4989 }
 0x2cc   : > { %v4982_v16 = vunpack.i.h.bf16 %v4980_v2  ;;  %v4981_v61 = vunpack.i.l.bf16 %v4980_v2  ;;  %v2011_v12 = vmul.f32 %v1855_v46, %v5661_v59  ;;  %v2010_v55 = vmul.f32 %v1844_v22, %v5661_v59 }
 0x2cd   : > { %v2013_v43 = vmul.f32 %v1877_v24, %v5661_v59  ;;  %v2012_v49 = vmul.f32 %v1866_v44, %v5661_v59  ;;  %v4992_v22 = vunpack.i.h.bf16 %v4990_v38 }
 0x2ce   : > { %2044 = vrot.lane.b32.xlu1 %v2011_v12, %s5458_s6  ;;  %2042 = vrot.lane.b32.xlu0 %v2010_v55, %s5458_s6  ;;  %v1899_v25 = vrot.slane %v4982_v16, %v5655_v53  ;;  %v1888_v3 = vrot.slane %v4981_v61, %v5655_v53  ;;  %v4991_v12 = vunpack.i.l.bf16 %v4990_v38 }
 0x2cf   : > { %v4985_v4 = vpop.permute.xlu1 %4984  ;;  %v1943_v61 = vrot.slane %v4992_v22, %v5655_v53 }
 0x2d0   : > { %v4987_v2 = vunpack.i.h.bf16 %v4985_v4  ;;  %v4986_v21 = vunpack.i.l.bf16 %v4985_v4  ;;  %v2015_v24 = vmul.f32 %v1899_v25, %v5661_v59  ;;  %v2014_v44 = vmul.f32 %v1888_v3, %v5661_v59  ;;  %v5000_v4 = vpop.permute.xlu0 %4999 }
 0x2d1   : > { %v1932_v16 = vrot.slane %v4991_v12, %v5655_v53  ;;  %v5002_v25 = vunpack.i.h.bf16 %v5000_v4  ;;  %v5001_v3 = vunpack.i.l.bf16 %v5000_v4  ;;  %v2019_v22 = vmul.f32 %v1943_v61, %v5661_v59 }
 0x2d2   : > { %2048 = vrot.lane.b32.xlu1 %v2013_v43, %s5458_s6  ;;  %2046 = vrot.lane.b32.xlu0 %v2012_v49, %s5458_s6  ;;  %v1921_v55 = vrot.slane %v4987_v2, %v5655_v53  ;;  %v1910_v46 = vrot.slane %v4986_v21, %v5655_v53 }
 0x2d3   : > { %v4995_v10 = vpop.permute.xlu1 %4994  ;;  %v2018_v12 = vmul.f32 %v1932_v16, %v5661_v59 }
 0x2d4   : > { %v4997_v43 = vunpack.i.h.bf16 %v4995_v10  ;;  %v4996_v49 = vunpack.i.l.bf16 %v4995_v10  ;;  %v2017_v38 = vmul.f32 %v1921_v55, %v5661_v59  ;;  %v2016_v21 = vmul.f32 %v1910_v46, %v5661_v59 }
 0x2d5   : > { %v1987_v10 = vrot.slane %v5002_v25, %v5655_v53  ;;  %v1976_v55 = vrot.slane %v5001_v3, %v5655_v53 }
 0x2d6   : > { %2052 = vrot.lane.b32.xlu1 %v2015_v24, %s5458_s6  ;;  %2050 = vrot.lane.b32.xlu0 %v2014_v44, %s5458_s6  ;;  %v1965_v2 = vrot.slane %v4997_v43, %v5655_v53  ;;  %v1954_v24 = vrot.slane %v4996_v49, %v5655_v53 }
 0x2d7   : > { %v5005_v44 = vpop.permute.xlu1 %5004  ;;  %v2023_v49 = vmul.f32 %v1987_v10, %v5661_v59 }
 0x2d8   : > { %v5007_v46 = vunpack.i.h.bf16 %v5005_v44  ;;  %v2021_v4 = vmul.f32 %v1965_v2, %v5661_v59  ;;  %v2020_v43 = vmul.f32 %v1954_v24, %v5661_v59  ;;  %v5459_v2 = vmov 8  }
 0x2da   : > { %2056 = vrot.lane.b32.xlu1 %v2017_v38, %s5458_s6  ;;  %2054 = vrot.lane.b32.xlu0 %v2016_v21, %s5458_s6  ;;  %v5006_v38 = vunpack.i.l.bf16 %v5005_v44  ;;  %v2009_v61 = vrot.slane %v5007_v46, %v5655_v53  ;;  %v2022_v21 = vmul.f32 %v1976_v55, %v5661_v59 }
 0x2dc   : > { %v1998_v16 = vrot.slane %v5006_v38, %v5655_v53  ;;  %v2025_v25 = vmul.f32 %v2009_v61, %v5661_v59 }
 0x2de   : > { %2060 = vrot.lane.b32.xlu1 %v2019_v22, %s5458_s6  ;;  %2058 = vrot.lane.b32.xlu0 %v2018_v12, %s5458_s6  ;;  %v2024_v3 = vmul.f32 %v1998_v16, %v5661_v59 }
 0x2e2   : > { %2064 = vrot.lane.b32.xlu1 %v2021_v4, %s5458_s6  ;;  %2062 = vrot.lane.b32.xlu0 %v2020_v43, %s5458_s6 }
 0x2e6   : > { %2068 = vrot.lane.b32.xlu1 %v2023_v49, %s5458_s6  ;;  %2066 = vrot.lane.b32.xlu0 %v2022_v21, %s5458_s6 }
 0x2ea   : > { %2072 = vrot.lane.b32.xlu1 %v2025_v25, %s5458_s6  ;;  %2070 = vrot.lane.b32.xlu0 %v2024_v3, %s5458_s6  ;;  %s5474_s6 = smov [#allocation2]  }
 0x2ee   : > { %5016 = vperm.xlu1 %5014, %v5607_v31   ;;  %5010 = vperm.xlu0 %5008, %v5579_v17  }
 0x2f2   : > { %5021 = vperm.xlu1 %5014, %v5577_v15   ;;  %5026 = vperm.xlu0 %5008, %v5582_v18  }
 0x2f6   : > { %5031 = vperm.xlu1 %5014, %v5623_v39   ;;  %5036 = vperm.xlu0 %5008, %v5592_v23  }
 0x2fa   : > { %5041 = vperm.xlu1 %5014, %v5627_v42   ;;  %5046 = vperm.xlu0 %5008, %v5602_v28  }
 0x2fe   : > { %5050 = vset.pattern.permute.xlu1 %v5459_v2  ;;  %5056 = vset.pattern.permute.xlu0 %v5459_v2 }
 0x340   : > { %v6145_v24 = vpop.permute.xlu1 %2044  ;;  %v6147_v22 = vpop.permute.xlu0 %2042 }
 0x341   : > { %7368 = vst [vmem:[#allocation68_spill] sm:$0xff] %v6145_v24  ;;  %7369 = vst [vmem:[#allocation69_spill] sm:$0xff] %v6147_v22 }
 0x344   : > { %v6149_v12 = vpop.permute.xlu1 %2048  ;;  %v6151_v44 = vpop.permute.xlu0 %2046 }
 0x345   : > { %7370 = vst [vmem:[#allocation70_spill] sm:$0xff] %v6149_v12  ;;  %7371 = vst [vmem:[#allocation71_spill] sm:$0xff] %v6151_v44 }
 0x348   : > { %v6153_v10 = vpop.permute.xlu1 %2052  ;;  %v6155_v55 = vpop.permute.xlu0 %2050 }
 0x349   : > { %7372 = vst [vmem:[#allocation72_spill] sm:$0xff] %v6153_v10  ;;  %7373 = vst [vmem:[#allocation73_spill] sm:$0xff] %v6155_v55 }
 0x34c   : > { %v6157_v46 = vpop.permute.xlu1 %2056  ;;  %v6159_v38 = vpop.permute.xlu0 %2054 }
 0x34d   : > { %7374 = vst [vmem:[#allocation74_spill] sm:$0xff] %v6157_v46  ;;  %7375 = vst [vmem:[#allocation75_spill] sm:$0xff] %v6159_v38 }
 0x350   : > { %v6161_v4 = vpop.permute.xlu1 %2060  ;;  %v6163_v43 = vpop.permute.xlu0 %2058 }
 0x351   : > { %7376 = vst [vmem:[#allocation76_spill] sm:$0xff] %v6161_v4  ;;  %7377 = vst [vmem:[#allocation77_spill] sm:$0xff] %v6163_v43 }
 0x354   : > { %v6165_v61 = vpop.permute.xlu1 %2064  ;;  %v6167_v16 = vpop.permute.xlu0 %2062 }
 0x358   : > { %v6169_v49 = vpop.permute.xlu1 %2068  ;;  %v6171_v21 = vpop.permute.xlu0 %2066 }
 0x359   : > { %7378 = vst [vmem:[#allocation78_spill] sm:$0xff] %v6169_v49  ;;  %7379 = vst [vmem:[#allocation79_spill] sm:$0xff] %v6171_v21 }
 0x35c   : > { %v6173_v25 = vpop.permute.xlu1 %2072  ;;  %v6175_v3 = vpop.permute.xlu0 %2070 }
 0x369   : > { %v5017_v2 = vpop.permute.xlu1 %5016  ;;  %v5011_v12 = vpop.permute.xlu0 %5010 }
 0x36a   : > { %v5019_v24 = vunpack.i.h.bf16 %v5017_v2  ;;  %v5018_v44 = vunpack.i.l.bf16 %v5017_v2  ;;  %v5013_v22 = vunpack.i.h.bf16 %v5011_v12  ;;  %v5012_v4 = vunpack.i.l.bf16 %v5011_v12 }
 0x36c   : > { %v2127_v43 = vrot.slane %v5013_v22, %v5655_v53  ;;  %v2116_v38 = vrot.slane %v5012_v4, %v5655_v53  ;;  %v2149_v46 = vrot.slane %v5019_v24, %v5655_v53  ;;  %v2138_v49 = vrot.slane %v5018_v44, %v5655_v53 }
 0x36d   : > { %v5022_v55 = vpop.permute.xlu1 %5021  ;;  %v5027_v9 = vpop.permute.xlu0 %5026 }
 0x36e   : > { %v5024_v21 = vunpack.i.h.bf16 %v5022_v55  ;;  %v5023_v10 = vunpack.i.l.bf16 %v5022_v55  ;;  %v2283_v5 = vmul.f32 %v2127_v43, %v5661_v59  ;;  %v2282_v6 = vmul.f32 %v2116_v38, %v5661_v59 }
 0x36f   : > { %v2285_v22 = vmul.f32 %v2149_v46, %v5661_v59  ;;  %v2284_v12 = vmul.f32 %v2138_v49, %v5661_v59  ;;  %v5029_v24 = vunpack.i.h.bf16 %v5027_v9  ;;  %v5028_v4 = vunpack.i.l.bf16 %v5027_v9 }
 0x370   : > { %2316 = vrot.lane.b32.xlu0 %v2283_v5, %s5460_s7  ;;  %2314 = vrot.lane.b32.xlu1 %v2282_v6, %s5460_s7  ;;  %v2171_v44 = vrot.slane %v5024_v21, %v5655_v53  ;;  %v2160_v55 = vrot.slane %v5023_v10, %v5655_v53 }
 0x371   : > { %v5032_v2 = vpop.permute.xlu1 %5031  ;;  %v2193_v38 = vrot.slane %v5029_v24, %v5655_v53  ;;  %v2182_v5 = vrot.slane %v5028_v4, %v5655_v53  ;;  %v5037_v46 = vpop.permute.xlu0 %5036 }
 0x372   : > { %v5034_v6 = vunpack.i.h.bf16 %v5032_v2  ;;  %v5033_v43 = vunpack.i.l.bf16 %v5032_v2  ;;  %v2287_v49 = vmul.f32 %v2171_v44, %v5661_v59  ;;  %v2286_v9 = vmul.f32 %v2160_v55, %v5661_v59 }
 0x373   : > { %v5039_v10 = vunpack.i.h.bf16 %v5037_v46  ;;  %v5038_v21 = vunpack.i.l.bf16 %v5037_v46  ;;  %v2289_v24 = vmul.f32 %v2193_v38, %v5661_v59  ;;  %v2288_v4 = vmul.f32 %v2182_v5, %v5661_v59 }
 0x374   : > { %2320 = vrot.lane.b32.xlu0 %v2285_v22, %s5460_s7  ;;  %2318 = vrot.lane.b32.xlu1 %v2284_v12, %s5460_s7  ;;  %v2215_v22 = vrot.slane %v5034_v6, %v5655_v53  ;;  %v2204_v12 = vrot.slane %v5033_v43, %v5655_v53 }
 0x375   : > { %v5042_v2 = vpop.permute.xlu1 %5041  ;;  %v2237_v44 = vrot.slane %v5039_v10, %v5655_v53  ;;  %v2226_v55 = vrot.slane %v5038_v21, %v5655_v53  ;;  %v5047_v46 = vpop.permute.xlu0 %5046 }
 0x376   : > { %v2291_v6 = vmul.f32 %v2215_v22, %v5661_v59  ;;  %v2290_v43 = vmul.f32 %v2204_v12, %v5661_v59  ;;  %v5049_v38 = vunpack.i.h.bf16 %v5047_v46  ;;  %v5048_v5 = vunpack.i.l.bf16 %v5047_v46 }
 0x377   : > { %v2293_v10 = vmul.f32 %v2237_v44, %v5661_v59  ;;  %v2292_v21 = vmul.f32 %v2226_v55, %v5661_v59 }
 0x378   : > { %2324 = vrot.lane.b32.xlu0 %v2287_v49, %s5460_s7  ;;  %2322 = vrot.lane.b32.xlu1 %v2286_v9, %s5460_s7  ;;  %v5044_v49 = vunpack.i.h.bf16 %v5042_v2  ;;  %v5043_v9 = vunpack.i.l.bf16 %v5042_v2  ;;  %v2281_v22 = vrot.slane %v5049_v38, %v5655_v53  ;;  %v2270_v12 = vrot.slane %v5048_v5, %v5655_v53 }
 0x37a   : > { %v2297_v44 = vmul.f32 %v2281_v22, %v5661_v59  ;;  %v2296_v55 = vmul.f32 %v2270_v12, %v5661_v59 }
 0x37c   : > { %2328 = vrot.lane.b32.xlu0 %v2289_v24, %s5460_s7  ;;  %2326 = vrot.lane.b32.xlu1 %v2288_v4, %s5460_s7  ;;  %v2259_v24 = vrot.slane %v5044_v49, %v5655_v53  ;;  %v2248_v4 = vrot.slane %v5043_v9, %v5655_v53  ;;  %v5461_v49 = vmov 9  }
 0x37e   : > { %v2295_v2 = vmul.f32 %v2259_v24, %v5661_v59  ;;  %v2294_v46 = vmul.f32 %v2248_v4, %v5661_v59 }
 0x380   : > { %2332 = vrot.lane.b32.xlu0 %v2291_v6, %s5460_s7  ;;  %2330 = vrot.lane.b32.xlu1 %v2290_v43, %s5460_s7 }
 0x384   : > { %2336 = vrot.lane.b32.xlu0 %v2293_v10, %s5460_s7  ;;  %2334 = vrot.lane.b32.xlu1 %v2292_v21, %s5460_s7 }
 0x388   : > { %2340 = vrot.lane.b32.xlu0 %v2295_v2, %s5460_s7  ;;  %2338 = vrot.lane.b32.xlu1 %v2294_v46, %s5460_s7 }
 0x38c   : > { %2344 = vrot.lane.b32.xlu0 %v2297_v44, %s5460_s7  ;;  %2342 = vrot.lane.b32.xlu1 %v2296_v55, %s5460_s7  ;;  %s5370_s7 = sshll.u32 %s5474_s6, 4  ;;  %s5371_s7 = int_to_ptr.vmem [resolvable:$false] %s5370_s7 }
 0x390   : > { %5058 = vperm.xlu0 %5056, %v5607_v31   ;;  %5052 = vperm.xlu1 %5050, %v5579_v17  }
 0x394   : > { %5073 = vperm.xlu0 %5056, %v5623_v39   ;;  %5063 = vperm.xlu1 %5050, %v5577_v15  }
 0x398   : > { %5083 = vperm.xlu0 %5056, %v5627_v42   ;;  %5068 = vperm.xlu1 %5050, %v5582_v18  }
 0x39c   : > { %5078 = vperm.xlu1 %5050, %v5592_v23   ;;  %5092 = vset.pattern.permute.xlu0 %v5461_v49 }
 0x3a0   : > { %5088 = vperm.xlu1 %5050, %v5602_v28  }
 0x3a4   : > { %5098 = vset.pattern.permute.xlu1 %v5461_v49 }
 0x3e2   : > { %v6233_v9 = vpop.permute.xlu0 %2316  ;;  %v6235_v6 = vpop.permute.xlu1 %2314 }
 0x3e3   : > { %7380 = vst [vmem:[#allocation80_spill] sm:$0xff] %v6233_v9  ;;  %7381 = vst [vmem:[#allocation81_spill] sm:$0xff] %v6235_v6 }
 0x3e6   : > { %v6237_v43 = vpop.permute.xlu0 %2320  ;;  %v6239_v38 = vpop.permute.xlu1 %2318 }
 0x3e7   : > { %7382 = vst [vmem:[#allocation82_spill] sm:$0xff] %v6237_v43  ;;  %7383 = vst [vmem:[#allocation83_spill] sm:$0xff] %v6239_v38 }
 0x3ea   : > { %v6241_v5 = vpop.permute.xlu0 %2324  ;;  %v6243_v24 = vpop.permute.xlu1 %2322 }
 0x3eb   : > { %7384 = vst [vmem:[#allocation84_spill] sm:$0xff] %v6241_v5  ;;  %7385 = vst [vmem:[#allocation85_spill] sm:$0xff] %v6243_v24 }
 0x3ee   : > { %v6245_v4 = vpop.permute.xlu0 %2328  ;;  %v6247_v10 = vpop.permute.xlu1 %2326 }
 0x3ef   : > { %7386 = vst [vmem:[#allocation86_spill] sm:$0xff] %v6245_v4  ;;  %7387 = vst [vmem:[#allocation87_spill] sm:$0xff] %v6247_v10 }
 0x3f2   : > { %v6249_v21 = vpop.permute.xlu0 %2332  ;;  %v6251_v22 = vpop.permute.xlu1 %2330 }
 0x3f3   : > { %7388 = vst [vmem:[#allocation88_spill] sm:$0xff] %v6249_v21  ;;  %7389 = vst [vmem:[#allocation89_spill] sm:$0xff] %v6251_v22 }
 0x3f6   : > { %v6253_v12 = vpop.permute.xlu0 %2336  ;;  %v6255_v2 = vpop.permute.xlu1 %2334 }
 0x3fa   : > { %v6257_v46 = vpop.permute.xlu0 %2340  ;;  %v6259_v44 = vpop.permute.xlu1 %2338 }
 0x3fb   : > { %7390 = vst [vmem:[#allocation90_spill] sm:$0xff] %v6257_v46  ;;  %7391 = vst [vmem:[#allocation91_spill] sm:$0xff] %v6259_v44 }
 0x3fe   : > { %v6261_v55 = vpop.permute.xlu0 %2344  ;;  %v6263_v49 = vpop.permute.xlu1 %2342 }
 0x40b   : > { %v5059_v43 = vpop.permute.xlu0 %5058  ;;  %v5053_v9 = vpop.permute.xlu1 %5052 }
 0x40c   : > { %v5061_v38 = vunpack.i.h.bf16 %v5059_v43  ;;  %v5060_v6 = vunpack.i.l.bf16 %v5059_v43  ;;  %v5055_v10 = vunpack.i.h.bf16 %v5053_v9  ;;  %v5054_v21 = vunpack.i.l.bf16 %v5053_v9 }
 0x40e   : > { %v2399_v22 = vrot.slane %v5055_v10, %v5655_v53  ;;  %v2388_v4 = vrot.slane %v5054_v21, %v5655_v53  ;;  %v2421_v24 = vrot.slane %v5061_v38, %v5655_v53  ;;  %v2410_v46 = vrot.slane %v5060_v6, %v5655_v53 }
 0x40f   : > { %v5064_v5 = vpop.permute.xlu1 %5063  ;;  %v5074_v38 = vpop.permute.xlu0 %5073 }
 0x410   : > { %v5066_v44 = vunpack.i.h.bf16 %v5064_v5  ;;  %v5065_v52 = vunpack.i.l.bf16 %v5064_v5  ;;  %v2555_v51 = vmul.f32 %v2399_v22, %v5661_v59  ;;  %v2554_v8 = vmul.f32 %v2388_v4, %v5661_v59 }
 0x411   : > { %v2557_v43 = vmul.f32 %v2421_v24, %v5661_v59  ;;  %v2556_v10 = vmul.f32 %v2410_v46, %v5661_v59  ;;  %v5076_v4 = vunpack.i.h.bf16 %v5074_v38 }
 0x412   : > { %2588 = vrot.lane.b32.xlu1 %v2555_v51, %s5462_s8  ;;  %2586 = vrot.lane.b32.xlu0 %v2554_v8, %s5462_s8  ;;  %v2443_v6 = vrot.slane %v5066_v44, %v5655_v53  ;;  %v2432_v21 = vrot.slane %v5065_v52, %v5655_v53  ;;  %v5075_v51 = vunpack.i.l.bf16 %v5074_v38 }
 0x413   : > { %v5069_v9 = vpop.permute.xlu1 %5068  ;;  %v2487_v52 = vrot.slane %v5076_v4, %v5655_v53 }
 0x414   : > { %v5071_v5 = vunpack.i.h.bf16 %v5069_v9  ;;  %v5070_v7 = vunpack.i.l.bf16 %v5069_v9  ;;  %v2559_v24 = vmul.f32 %v2443_v6, %v5661_v59  ;;  %v2558_v46 = vmul.f32 %v2432_v21, %v5661_v59  ;;  %v5084_v9 = vpop.permute.xlu0 %5083 }
 0x415   : > { %v2476_v44 = vrot.slane %v5075_v51, %v5655_v53  ;;  %v5086_v6 = vunpack.i.h.bf16 %v5084_v9  ;;  %v5085_v21 = vunpack.i.l.bf16 %v5084_v9  ;;  %v2563_v4 = vmul.f32 %v2487_v52, %v5661_v59 }
 0x416   : > { %2592 = vrot.lane.b32.xlu1 %v2557_v43, %s5462_s8  ;;  %2590 = vrot.lane.b32.xlu0 %v2556_v10, %s5462_s8  ;;  %v2465_v8 = vrot.slane %v5071_v5, %v5655_v53  ;;  %v2454_v22 = vrot.slane %v5070_v7, %v5655_v53 }
 0x417   : > { %v5079_v30 = vpop.permute.xlu1 %5078  ;;  %v2562_v51 = vmul.f32 %v2476_v44, %v5661_v59 }
 0x418   : > { %v5081_v43 = vunpack.i.h.bf16 %v5079_v30  ;;  %v5080_v10 = vunpack.i.l.bf16 %v5079_v30  ;;  %v2561_v38 = vmul.f32 %v2465_v8, %v5661_v59  ;;  %v2560_v7 = vmul.f32 %v2454_v22, %v5661_v59 }
 0x419   : > { %v2531_v30 = vrot.slane %v5086_v6, %v5655_v53  ;;  %v2520_v8 = vrot.slane %v5085_v21, %v5655_v53 }
 0x41a   : > { %2596 = vrot.lane.b32.xlu1 %v2559_v24, %s5462_s8  ;;  %2594 = vrot.lane.b32.xlu0 %v2558_v46, %s5462_s8  ;;  %v2509_v5 = vrot.slane %v5081_v43, %v5655_v53  ;;  %v2498_v24 = vrot.slane %v5080_v10, %v5655_v53 }
 0x41b   : > { %v5089_v46 = vpop.permute.xlu1 %5088  ;;  %v2567_v10 = vmul.f32 %v2531_v30, %v5661_v59 }
 0x41c   : > { %v5091_v22 = vunpack.i.h.bf16 %v5089_v46  ;;  %v2565_v9 = vmul.f32 %v2509_v5, %v5661_v59  ;;  %v2564_v43 = vmul.f32 %v2498_v24, %v5661_v59  ;;  %v5463_v5 = vmov 10  }
 0x41e   : > { %2600 = vrot.lane.b32.xlu1 %v2561_v38, %s5462_s8  ;;  %2598 = vrot.lane.b32.xlu0 %v2560_v7, %s5462_s8  ;;  %v5090_v38 = vunpack.i.l.bf16 %v5089_v46  ;;  %v2553_v52 = vrot.slane %v5091_v22, %v5655_v53  ;;  %v2566_v7 = vmul.f32 %v2520_v8, %v5661_v59 }
 0x420   : > { %v2542_v44 = vrot.slane %v5090_v38, %v5655_v53  ;;  %v2569_v6 = vmul.f32 %v2553_v52, %v5661_v59 }
 0x422   : > { %2604 = vrot.lane.b32.xlu1 %v2563_v4, %s5462_s8  ;;  %2602 = vrot.lane.b32.xlu0 %v2562_v51, %s5462_s8  ;;  %v2568_v21 = vmul.f32 %v2542_v44, %v5661_v59 }
 0x426   : > { %2608 = vrot.lane.b32.xlu1 %v2565_v9, %s5462_s8  ;;  %2606 = vrot.lane.b32.xlu0 %v2564_v43, %s5462_s8 }
 0x42a   : > { %2612 = vrot.lane.b32.xlu1 %v2567_v10, %s5462_s8  ;;  %2610 = vrot.lane.b32.xlu0 %v2566_v7, %s5462_s8 }
 0x42e   : > { %2616 = vrot.lane.b32.xlu1 %v2569_v6, %s5462_s8  ;;  %2614 = vrot.lane.b32.xlu0 %v2568_v21, %s5462_s8  ;;  %s5372_s8 = scalar_lea.vmem %s5371_s7, 512 }
 0x432   : > { %5100 = vperm.xlu1 %5098, %v5607_v31   ;;  %5094 = vperm.xlu0 %5092, %v5579_v17  }
 0x436   : > { %5105 = vperm.xlu1 %5098, %v5577_v15   ;;  %5110 = vperm.xlu0 %5092, %v5582_v18  }
 0x43a   : > { %5115 = vperm.xlu1 %5098, %v5623_v39   ;;  %5120 = vperm.xlu0 %5092, %v5592_v23  }
 0x43e   : > { %5125 = vperm.xlu1 %5098, %v5627_v42   ;;  %5130 = vperm.xlu0 %5092, %v5602_v28  }
 0x442   : > { %5134 = vset.pattern.permute.xlu1 %v5463_v5  ;;  %5140 = vset.pattern.permute.xlu0 %v5463_v5 }
 0x484   : > { %v6321_v24 = vpop.permute.xlu1 %2588  ;;  %v6323_v4 = vpop.permute.xlu0 %2586 }
 0x485   : > { %7392 = vst [vmem:[#allocation92_spill] sm:$0xff] %v6321_v24  ;;  %7393 = vst [vmem:[#allocation93_spill] sm:$0xff] %v6323_v4 }
 0x488   : > { %v6325_v51 = vpop.permute.xlu1 %2592  ;;  %v6327_v46 = vpop.permute.xlu0 %2590 }
 0x489   : > { %7394 = vst [vmem:[#allocation94_spill] sm:$0xff] %v6325_v51  ;;  %7395 = vst [vmem:[#allocation95_spill] sm:$0xff] %v6327_v46 }
 0x48c   : > { %v6329_v30 = vpop.permute.xlu1 %2596  ;;  %v6331_v8 = vpop.permute.xlu0 %2594 }
 0x48d   : > { %7396 = vst [vmem:[#allocation96_spill] sm:$0xff] %v6329_v30  ;;  %7397 = vst [vmem:[#allocation97_spill] sm:$0xff] %v6331_v8 }
 0x490   : > { %v6333_v22 = vpop.permute.xlu1 %2600  ;;  %v6335_v38 = vpop.permute.xlu0 %2598 }
 0x491   : > { %7398 = vst [vmem:[#allocation98_spill] sm:$0xff] %v6333_v22  ;;  %7399 = vst [vmem:[#allocation99_spill] sm:$0xff] %v6335_v38 }
 0x494   : > { %v6337_v9 = vpop.permute.xlu1 %2604  ;;  %v6339_v43 = vpop.permute.xlu0 %2602 }
 0x495   : > { %7400 = vst [vmem:[#allocation100_spill] sm:$0xff] %v6337_v9  ;;  %7401 = vst [vmem:[#allocation101_spill] sm:$0xff] %v6339_v43 }
 0x498   : > { %v6341_v52 = vpop.permute.xlu1 %2608  ;;  %v6343_v44 = vpop.permute.xlu0 %2606 }
 0x49c   : > { %v6345_v10 = vpop.permute.xlu1 %2612  ;;  %v6347_v7 = vpop.permute.xlu0 %2610 }
 0x49d   : > { %7402 = vst [vmem:[#allocation102_spill] sm:$0xff] %v6345_v10  ;;  %7403 = vst [vmem:[#allocation103_spill] sm:$0xff] %v6347_v7 }
 0x4a0   : > { %v6349_v6 = vpop.permute.xlu1 %2616  ;;  %v6351_v21 = vpop.permute.xlu0 %2614 }
 0x4a1   : > { %7404 = vst [vmem:[#allocation104_spill] sm:$0xff] %v6349_v6  ;;  %7405 = vst [vmem:[#allocation105_spill] sm:$0xff] %v6351_v21 }
 0x4ad   : > { %v5101_v5 = vpop.permute.xlu1 %5100  ;;  %v5095_v51 = vpop.permute.xlu0 %5094 }
 0x4ae   : > { %v5103_v24 = vunpack.i.h.bf16 %v5101_v5  ;;  %v5102_v46 = vunpack.i.l.bf16 %v5101_v5  ;;  %v5097_v4 = vunpack.i.h.bf16 %v5095_v51  ;;  %v5096_v9 = vunpack.i.l.bf16 %v5095_v51 }
 0x4b0   : > { %v2671_v43 = vrot.slane %v5097_v4, %v5655_v53  ;;  %v2660_v38 = vrot.slane %v5096_v9, %v5655_v53  ;;  %v2693_v22 = vrot.slane %v5103_v24, %v5655_v53  ;;  %v2682_v10 = vrot.slane %v5102_v46, %v5655_v53 }
 0x4b1   : > { %v5106_v8 = vpop.permute.xlu1 %5105  ;;  %v5111_v29 = vpop.permute.xlu0 %5110 }
 0x4b2   : > { %v5108_v7 = vunpack.i.h.bf16 %v5106_v8  ;;  %v5107_v30 = vunpack.i.l.bf16 %v5106_v8  ;;  %v2827_v48 = vmul.f32 %v2671_v43, %v5661_v59  ;;  %v2826_v47 = vmul.f32 %v2660_v38, %v5661_v59 }
 0x4b3   : > { %v2829_v4 = vmul.f32 %v2693_v22, %v5661_v59  ;;  %v2828_v51 = vmul.f32 %v2682_v10, %v5661_v59  ;;  %v5113_v24 = vunpack.i.h.bf16 %v5111_v29  ;;  %v5112_v9 = vunpack.i.l.bf16 %v5111_v29 }
 0x4b4   : > { %2860 = vrot.lane.b32.xlu0 %v2827_v48, %s5464_s9  ;;  %2858 = vrot.lane.b32.xlu1 %v2826_v47, %s5464_s9  ;;  %v2715_v46 = vrot.slane %v5108_v7, %v5655_v53  ;;  %v2704_v8 = vrot.slane %v5107_v30, %v5655_v53 }
 0x4b5   : > { %v5116_v5 = vpop.permute.xlu1 %5115  ;;  %v2737_v38 = vrot.slane %v5113_v24, %v5655_v53  ;;  %v2726_v48 = vrot.slane %v5112_v9, %v5655_v53  ;;  %v5121_v22 = vpop.permute.xlu0 %5120 }
 0x4b6   : > { %v5118_v47 = vunpack.i.h.bf16 %v5116_v5  ;;  %v5117_v43 = vunpack.i.l.bf16 %v5116_v5  ;;  %v2831_v10 = vmul.f32 %v2715_v46, %v5661_v59  ;;  %v2830_v29 = vmul.f32 %v2704_v8, %v5661_v59 }
 0x4b7   : > { %v5123_v30 = vunpack.i.h.bf16 %v5121_v22  ;;  %v5122_v7 = vunpack.i.l.bf16 %v5121_v22  ;;  %v2833_v24 = vmul.f32 %v2737_v38, %v5661_v59  ;;  %v2832_v9 = vmul.f32 %v2726_v48, %v5661_v59 }
 0x4b8   : > { %2864 = vrot.lane.b32.xlu0 %v2829_v4, %s5464_s9  ;;  %2862 = vrot.lane.b32.xlu1 %v2828_v51, %s5464_s9  ;;  %v2759_v4 = vrot.slane %v5118_v47, %v5655_v53  ;;  %v2748_v51 = vrot.slane %v5117_v43, %v5655_v53 }
 0x4b9   : > { %v5126_v5 = vpop.permute.xlu1 %5125  ;;  %v2781_v46 = vrot.slane %v5123_v30, %v5655_v53  ;;  %v2770_v8 = vrot.slane %v5122_v7, %v5655_v53  ;;  %v5131_v22 = vpop.permute.xlu0 %5130 }
 0x4ba   : > { %v2835_v47 = vmul.f32 %v2759_v4, %v5661_v59  ;;  %v2834_v43 = vmul.f32 %v2748_v51, %v5661_v59  ;;  %v5133_v38 = vunpack.i.h.bf16 %v5131_v22  ;;  %v5132_v48 = vunpack.i.l.bf16 %v5131_v22 }
 0x4bb   : > { %v2837_v30 = vmul.f32 %v2781_v46, %v5661_v59  ;;  %v2836_v7 = vmul.f32 %v2770_v8, %v5661_v59 }
 0x4bc   : > { %2868 = vrot.lane.b32.xlu0 %v2831_v10, %s5464_s9  ;;  %2866 = vrot.lane.b32.xlu1 %v2830_v29, %s5464_s9  ;;  %v5128_v10 = vunpack.i.h.bf16 %v5126_v5  ;;  %v5127_v29 = vunpack.i.l.bf16 %v5126_v5  ;;  %v2825_v4 = vrot.slane %v5133_v38, %v5655_v53  ;;  %v2814_v51 = vrot.slane %v5132_v48, %v5655_v53 }
 0x4be   : > { %v2841_v46 = vmul.f32 %v2825_v4, %v5661_v59  ;;  %v2840_v8 = vmul.f32 %v2814_v51, %v5661_v59 }
 0x4c0   : > { %2872 = vrot.lane.b32.xlu0 %v2833_v24, %s5464_s9  ;;  %2870 = vrot.lane.b32.xlu1 %v2832_v9, %s5464_s9  ;;  %v2803_v24 = vrot.slane %v5128_v10, %v5655_v53  ;;  %v2792_v9 = vrot.slane %v5127_v29, %v5655_v53  ;;  %v5465_v10 = vmov 11  }
 0x4c2   : > { %v2839_v5 = vmul.f32 %v2803_v24, %v5661_v59  ;;  %v2838_v22 = vmul.f32 %v2792_v9, %v5661_v59 }
 0x4c4   : > { %2876 = vrot.lane.b32.xlu0 %v2835_v47, %s5464_s9  ;;  %2874 = vrot.lane.b32.xlu1 %v2834_v43, %s5464_s9 }
 0x4c8   : > { %2880 = vrot.lane.b32.xlu0 %v2837_v30, %s5464_s9  ;;  %2878 = vrot.lane.b32.xlu1 %v2836_v7, %s5464_s9 }
 0x4cc   : > { %2884 = vrot.lane.b32.xlu0 %v2839_v5, %s5464_s9  ;;  %2882 = vrot.lane.b32.xlu1 %v2838_v22, %s5464_s9 }
 0x4d0   : > { %2888 = vrot.lane.b32.xlu0 %v2841_v46, %s5464_s9  ;;  %2886 = vrot.lane.b32.xlu1 %v2840_v8, %s5464_s9 }
 0x4d4   : > { %5142 = vperm.xlu0 %5140, %v5607_v31   ;;  %5136 = vperm.xlu1 %5134, %v5579_v17  }
 0x4d8   : > { %5157 = vperm.xlu0 %5140, %v5623_v39   ;;  %5147 = vperm.xlu1 %5134, %v5577_v15  }
 0x4dc   : > { %5167 = vperm.xlu0 %5140, %v5627_v42   ;;  %5152 = vperm.xlu1 %5134, %v5582_v18  }
 0x4e0   : > { %5162 = vperm.xlu1 %5134, %v5592_v23   ;;  %5176 = vset.pattern.permute.xlu0 %v5465_v10 }
 0x4e4   : > { %5172 = vperm.xlu1 %5134, %v5602_v28  }
 0x4e8   : > { %5182 = vset.pattern.permute.xlu1 %v5465_v10 }
 0x526   : > { %v6409_v29 = vpop.permute.xlu0 %2860  ;;  %v6411_v47 = vpop.permute.xlu1 %2858 }
 0x527   : > { %7406 = vst [vmem:[#allocation106_spill] sm:$0xff] %v6409_v29  ;;  %7407 = vst [vmem:[#allocation107_spill] sm:$0xff] %v6411_v47 }
 0x52a   : > { %v6413_v43 = vpop.permute.xlu0 %2864  ;;  %v6415_v38 = vpop.permute.xlu1 %2862 }
 0x52b   : > { %7408 = vst [vmem:[#allocation108_spill] sm:$0xff] %v6413_v43  ;;  %7409 = vst [vmem:[#allocation109_spill] sm:$0xff] %v6415_v38 }
 0x52e   : > { %v6417_v48 = vpop.permute.xlu0 %2868  ;;  %v6419_v24 = vpop.permute.xlu1 %2866 }
 0x52f   : > { %7410 = vst [vmem:[#allocation110_spill] sm:$0xff] %v6417_v48  ;;  %7411 = vst [vmem:[#allocation111_spill] sm:$0xff] %v6419_v24 }
 0x532   : > { %v6421_v9 = vpop.permute.xlu0 %2872  ;;  %v6423_v30 = vpop.permute.xlu1 %2870 }
 0x533   : > { %7412 = vst [vmem:[#allocation112_spill] sm:$0xff] %v6421_v9  ;;  %7413 = vst [vmem:[#allocation113_spill] sm:$0xff] %v6423_v30 }
 0x536   : > { %v6425_v7 = vpop.permute.xlu0 %2876  ;;  %v6427_v4 = vpop.permute.xlu1 %2874 }
 0x537   : > { %7414 = vst [vmem:[#allocation114_spill] sm:$0xff] %v6425_v7  ;;  %7415 = vst [vmem:[#allocation115_spill] sm:$0xff] %v6427_v4 }
 0x53a   : > { %v6429_v51 = vpop.permute.xlu0 %2880  ;;  %v6431_v5 = vpop.permute.xlu1 %2878 }
 0x53e   : > { %v6433_v22 = vpop.permute.xlu0 %2884  ;;  %v6435_v46 = vpop.permute.xlu1 %2882 }
 0x53f   : > { %7416 = vst [vmem:[#allocation116_spill] sm:$0xff] %v6433_v22  ;;  %7417 = vst [vmem:[#allocation117_spill] sm:$0xff] %v6435_v46 }
 0x542   : > { %v6437_v8 = vpop.permute.xlu0 %2888  ;;  %v6439_v10 = vpop.permute.xlu1 %2886 }
 0x543   : > { %7418 = vst [vmem:[#allocation118_spill] sm:$0xff] %v6437_v8  ;;  %7419 = vst [vmem:[#allocation119_spill] sm:$0xff] %v6439_v10 }
 0x54f   : > { %v5143_v43 = vpop.permute.xlu0 %5142  ;;  %v5137_v29 = vpop.permute.xlu1 %5136 }
 0x550   : > { %v5145_v38 = vunpack.i.h.bf16 %v5143_v43  ;;  %v5144_v47 = vunpack.i.l.bf16 %v5143_v43  ;;  %v5139_v30 = vunpack.i.h.bf16 %v5137_v29  ;;  %v5138_v7 = vunpack.i.l.bf16 %v5137_v29 }
 0x552   : > { %v2943_v4 = vrot.slane %v5139_v30, %v5655_v53  ;;  %v2932_v9 = vrot.slane %v5138_v7, %v5655_v53  ;;  %v2965_v24 = vrot.slane %v5145_v38, %v5655_v53  ;;  %v2954_v22 = vrot.slane %v5144_v47, %v5655_v53 }
 0x553   : > { %v5148_v48 = vpop.permute.xlu1 %5147  ;;  %v5158_v38 = vpop.permute.xlu0 %5157 }
 0x554   : > { %v5150_v46 = vunpack.i.h.bf16 %v5148_v48  ;;  %v5149_v27 = vunpack.i.l.bf16 %v5148_v48  ;;  %v3099_v26 = vmul.f32 %v2943_v4, %v5661_v59  ;;  %v3098_v58 = vmul.f32 %v2932_v9, %v5661_v59 }
 0x555   : > { %v3101_v43 = vmul.f32 %v2965_v24, %v5661_v59  ;;  %v3100_v30 = vmul.f32 %v2954_v22, %v5661_v59  ;;  %v5160_v9 = vunpack.i.h.bf16 %v5158_v38 }
 0x556   : > { %3132 = vrot.lane.b32.xlu1 %v3099_v26, %s5466_s10  ;;  %3130 = vrot.lane.b32.xlu0 %v3098_v58, %s5466_s10  ;;  %v2987_v47 = vrot.slane %v5150_v46, %v5655_v53  ;;  %v2976_v7 = vrot.slane %v5149_v27, %v5655_v53  ;;  %v5159_v26 = vunpack.i.l.bf16 %v5158_v38 }
 0x557   : > { %v5153_v29 = vpop.permute.xlu1 %5152  ;;  %v3031_v27 = vrot.slane %v5160_v9, %v5655_v53 }
 0x558   : > { %v5155_v48 = vunpack.i.h.bf16 %v5153_v29  ;;  %v5154_v50 = vunpack.i.l.bf16 %v5153_v29  ;;  %v3103_v24 = vmul.f32 %v2987_v47, %v5661_v59  ;;  %v3102_v22 = vmul.f32 %v2976_v7, %v5661_v59  ;;  %v5168_v29 = vpop.permute.xlu0 %5167 }
 0x559   : > { %v3020_v46 = vrot.slane %v5159_v26, %v5655_v53  ;;  %v5170_v47 = vunpack.i.h.bf16 %v5168_v29  ;;  %v5169_v7 = vunpack.i.l.bf16 %v5168_v29  ;;  %v3107_v9 = vmul.f32 %v3031_v27, %v5661_v59 }
 0x55a   : > { %3136 = vrot.lane.b32.xlu1 %v3101_v43, %s5466_s10  ;;  %3134 = vrot.lane.b32.xlu0 %v3100_v30, %s5466_s10  ;;  %v3009_v58 = vrot.slane %v5155_v48, %v5655_v53  ;;  %v2998_v4 = vrot.slane %v5154_v50, %v5655_v53 }
 0x55b   : > { %v5163_v10 = vpop.permute.xlu1 %5162  ;;  %v3106_v26 = vmul.f32 %v3020_v46, %v5661_v59 }
 0x55c   : > { %v5165_v43 = vunpack.i.h.bf16 %v5163_v10  ;;  %v5164_v30 = vunpack.i.l.bf16 %v5163_v10  ;;  %v3105_v38 = vmul.f32 %v3009_v58, %v5661_v59  ;;  %v3104_v50 = vmul.f32 %v2998_v4, %v5661_v59 }
 0x55d   : > { %v3075_v10 = vrot.slane %v5170_v47, %v5655_v53  ;;  %v3064_v58 = vrot.slane %v5169_v7, %v5655_v53 }
 0x55e   : > { %3140 = vrot.lane.b32.xlu1 %v3103_v24, %s5466_s10  ;;  %3138 = vrot.lane.b32.xlu0 %v3102_v22, %s5466_s10  ;;  %v3053_v48 = vrot.slane %v5165_v43, %v5655_v53  ;;  %v3042_v24 = vrot.slane %v5164_v30, %v5655_v53 }
 0x55f   : > { %v5173_v22 = vpop.permute.xlu1 %5172  ;;  %v3111_v30 = vmul.f32 %v3075_v10, %v5661_v59 }
 0x560   : > { %v5175_v4 = vunpack.i.h.bf16 %v5173_v22  ;;  %v3109_v29 = vmul.f32 %v3053_v48, %v5661_v59  ;;  %v3108_v43 = vmul.f32 %v3042_v24, %v5661_v59  ;;  %v5467_v48 = vmov 12  }
 0x562   : > { %3144 = vrot.lane.b32.xlu1 %v3105_v38, %s5466_s10  ;;  %3142 = vrot.lane.b32.xlu0 %v3104_v50, %s5466_s10  ;;  %v5174_v38 = vunpack.i.l.bf16 %v5173_v22  ;;  %v3097_v27 = vrot.slane %v5175_v4, %v5655_v53  ;;  %v3110_v50 = vmul.f32 %v3064_v58, %v5661_v59 }
 0x564   : > { %v3086_v46 = vrot.slane %v5174_v38, %v5655_v53  ;;  %v3113_v47 = vmul.f32 %v3097_v27, %v5661_v59 }
 0x566   : > { %3148 = vrot.lane.b32.xlu1 %v3107_v9, %s5466_s10  ;;  %3146 = vrot.lane.b32.xlu0 %v3106_v26, %s5466_s10  ;;  %v3112_v7 = vmul.f32 %v3086_v46, %v5661_v59 }
 0x56a   : > { %3152 = vrot.lane.b32.xlu1 %v3109_v29, %s5466_s10  ;;  %3150 = vrot.lane.b32.xlu0 %v3108_v43, %s5466_s10 }
 0x56e   : > { %3156 = vrot.lane.b32.xlu1 %v3111_v30, %s5466_s10  ;;  %3154 = vrot.lane.b32.xlu0 %v3110_v50, %s5466_s10 }
 0x572   : > { %3160 = vrot.lane.b32.xlu1 %v3113_v47, %s5466_s10  ;;  %3158 = vrot.lane.b32.xlu0 %v3112_v7, %s5466_s10 }
 0x576   : > { %5184 = vperm.xlu1 %5182, %v5607_v31   ;;  %5178 = vperm.xlu0 %5176, %v5579_v17  }
 0x57a   : > { %5189 = vperm.xlu1 %5182, %v5577_v15   ;;  %5194 = vperm.xlu0 %5176, %v5582_v18  }
 0x57e   : > { %5199 = vperm.xlu1 %5182, %v5623_v39   ;;  %5204 = vperm.xlu0 %5176, %v5592_v23  }
 0x582   : > { %5209 = vperm.xlu1 %5182, %v5627_v42   ;;  %5214 = vperm.xlu0 %5176, %v5602_v28  }
 0x586   : > { %5218 = vset.pattern.permute.xlu1 %v5467_v48  ;;  %5224 = vset.pattern.permute.xlu0 %v5467_v48 }
 0x5c8   : > { %v6497_v24 = vpop.permute.xlu1 %3132  ;;  %v6499_v9 = vpop.permute.xlu0 %3130 }
 0x5c9   : > { %7420 = vst [vmem:[#allocation120_spill] sm:$0xff] %v6497_v24  ;;  %7421 = vst [vmem:[#allocation121_spill] sm:$0xff] %v6499_v9 }
 0x5cc   : > { %v6501_v26 = vpop.permute.xlu1 %3136  ;;  %v6503_v22 = vpop.permute.xlu0 %3134 }
 0x5cd   : > { %7422 = vst [vmem:[#allocation122_spill] sm:$0xff] %v6501_v26  ;;  %7423 = vst [vmem:[#allocation123_spill] sm:$0xff] %v6503_v22 }
 0x5d0   : > { %v6505_v10 = vpop.permute.xlu1 %3140  ;;  %v6507_v58 = vpop.permute.xlu0 %3138 }
 0x5d1   : > { %7424 = vst [vmem:[#allocation124_spill] sm:$0xff] %v6505_v10  ;;  %7425 = vst [vmem:[#allocation125_spill] sm:$0xff] %v6507_v58 }
 0x5d4   : > { %v6509_v4 = vpop.permute.xlu1 %3144  ;;  %v6511_v38 = vpop.permute.xlu0 %3142 }
 0x5d5   : > { %7426 = vst [vmem:[#allocation126_spill] sm:$0xff] %v6509_v4  ;;  %7427 = vst [vmem:[#allocation127_spill] sm:$0xff] %v6511_v38 }
 0x5d8   : > { %v6513_v29 = vpop.permute.xlu1 %3148  ;;  %v6515_v43 = vpop.permute.xlu0 %3146 }
 0x5d9   : > { %7428 = vst [vmem:[#allocation128_spill] sm:$0xff] %v6513_v29  ;;  %7429 = vst [vmem:[#allocation129_spill] sm:$0xff] %v6515_v43 }
 0x5dc   : > { %v6517_v27 = vpop.permute.xlu1 %3152  ;;  %v6519_v46 = vpop.permute.xlu0 %3150 }
 0x5e0   : > { %v6521_v30 = vpop.permute.xlu1 %3156  ;;  %v6523_v50 = vpop.permute.xlu0 %3154 }
 0x5e1   : > { %7430 = vst [vmem:[#allocation130_spill] sm:$0xff] %v6521_v30  ;;  %7431 = vst [vmem:[#allocation131_spill] sm:$0xff] %v6523_v50 }
 0x5e4   : > { %v6525_v47 = vpop.permute.xlu1 %3160  ;;  %v6527_v7 = vpop.permute.xlu0 %3158 }
 0x5e5   : > { %7432 = vst [vmem:[#allocation132_spill] sm:$0xff] %v6525_v47  ;;  %7433 = vst [vmem:[#allocation133_spill] sm:$0xff] %v6527_v7 }
 0x5f1   : > { %v5185_v48 = vpop.permute.xlu1 %5184  ;;  %v5179_v26 = vpop.permute.xlu0 %5178 }
 0x5f2   : > { %v5187_v24 = vunpack.i.h.bf16 %v5185_v48  ;;  %v5186_v22 = vunpack.i.l.bf16 %v5185_v48  ;;  %v5181_v9 = vunpack.i.h.bf16 %v5179_v26  ;;  %v5180_v29 = vunpack.i.l.bf16 %v5179_v26 }
 0x5f4   : > { %v3215_v43 = vrot.slane %v5181_v9, %v5655_v53  ;;  %v3204_v38 = vrot.slane %v5180_v29, %v5655_v53  ;;  %v3237_v4 = vrot.slane %v5187_v24, %v5655_v53  ;;  %v3226_v30 = vrot.slane %v5186_v22, %v5655_v53 }
 0x5f5   : > { %v5190_v58 = vpop.permute.xlu1 %5189  ;;  %v5195_v47 = vpop.permute.xlu0 %5194 }
 0x5f6   : > { %v5192_v50 = vunpack.i.h.bf16 %v5190_v58  ;;  %v5191_v10 = vunpack.i.l.bf16 %v5190_v58  ;;  %v3371_v7 = vmul.f32 %v3215_v43, %v5661_v59  ;;  %v3370_v8 = vmul.f32 %v3204_v38, %v5661_v59 }
 0x5f7   : > { %v3373_v9 = vmul.f32 %v3237_v4, %v5661_v59  ;;  %v3372_v26 = vmul.f32 %v3226_v30, %v5661_v59  ;;  %v5197_v24 = vunpack.i.h.bf16 %v5195_v47  ;;  %v5196_v29 = vunpack.i.l.bf16 %v5195_v47 }
 0x5f8   : > { %3404 = vrot.lane.b32.xlu0 %v3371_v7, %s5468_s11  ;;  %3402 = vrot.lane.b32.xlu1 %v3370_v8, %s5468_s11  ;;  %v3259_v22 = vrot.slane %v5192_v50, %v5655_v53  ;;  %v3248_v58 = vrot.slane %v5191_v10, %v5655_v53 }
 0x5f9   : > { %v5200_v48 = vpop.permute.xlu1 %5199  ;;  %v3281_v38 = vrot.slane %v5197_v24, %v5655_v53  ;;  %v3270_v43 = vrot.slane %v5196_v29, %v5655_v53  ;;  %v5205_v4 = vpop.permute.xlu0 %5204 }
 0x5fa   : > { %v5202_v8 = vunpack.i.h.bf16 %v5200_v48  ;;  %v5201_v7 = vunpack.i.l.bf16 %v5200_v48  ;;  %v3375_v30 = vmul.f32 %v3259_v22, %v5661_v59  ;;  %v3374_v47 = vmul.f32 %v3248_v58, %v5661_v59 }
 0x5fb   : > { %v5207_v10 = vunpack.i.h.bf16 %v5205_v4  ;;  %v5206_v50 = vunpack.i.l.bf16 %v5205_v4  ;;  %v3377_v24 = vmul.f32 %v3281_v38, %v5661_v59  ;;  %v3376_v29 = vmul.f32 %v3270_v43, %v5661_v59 }
 0x5fc   : > { %3408 = vrot.lane.b32.xlu0 %v3373_v9, %s5468_s11  ;;  %3406 = vrot.lane.b32.xlu1 %v3372_v26, %s5468_s11  ;;  %v3303_v9 = vrot.slane %v5202_v8, %v5655_v53  ;;  %v3292_v26 = vrot.slane %v5201_v7, %v5655_v53 }
 0x5fd   : > { %v5210_v48 = vpop.permute.xlu1 %5209  ;;  %v3325_v22 = vrot.slane %v5207_v10, %v5655_v53  ;;  %v3314_v58 = vrot.slane %v5206_v50, %v5655_v53  ;;  %v5215_v4 = vpop.permute.xlu0 %5214 }
 0x5fe   : > { %v3379_v8 = vmul.f32 %v3303_v9, %v5661_v59  ;;  %v3378_v7 = vmul.f32 %v3292_v26, %v5661_v59  ;;  %v5217_v38 = vunpack.i.h.bf16 %v5215_v4  ;;  %v5216_v43 = vunpack.i.l.bf16 %v5215_v4 }
 0x5ff   : > { %v3381_v10 = vmul.f32 %v3325_v22, %v5661_v59  ;;  %v3380_v50 = vmul.f32 %v3314_v58, %v5661_v59 }
 0x600   : > { %3412 = vrot.lane.b32.xlu0 %v3375_v30, %s5468_s11  ;;  %3410 = vrot.lane.b32.xlu1 %v3374_v47, %s5468_s11  ;;  %v5212_v30 = vunpack.i.h.bf16 %v5210_v48  ;;  %v5211_v47 = vunpack.i.l.bf16 %v5210_v48  ;;  %v3369_v9 = vrot.slane %v5217_v38, %v5655_v53  ;;  %v3358_v26 = vrot.slane %v5216_v43, %v5655_v53 }
 0x602   : > { %v3385_v22 = vmul.f32 %v3369_v9, %v5661_v59  ;;  %v3384_v58 = vmul.f32 %v3358_v26, %v5661_v59 }
 0x604   : > { %3416 = vrot.lane.b32.xlu0 %v3377_v24, %s5468_s11  ;;  %3414 = vrot.lane.b32.xlu1 %v3376_v29, %s5468_s11  ;;  %v3347_v24 = vrot.slane %v5212_v30, %v5655_v53  ;;  %v3336_v29 = vrot.slane %v5211_v47, %v5655_v53  ;;  %v5469_v30 = vmov 13  }
 0x606   : > { %v3383_v48 = vmul.f32 %v3347_v24, %v5661_v59  ;;  %v3382_v4 = vmul.f32 %v3336_v29, %v5661_v59 }
 0x608   : > { %3420 = vrot.lane.b32.xlu0 %v3379_v8, %s5468_s11  ;;  %3418 = vrot.lane.b32.xlu1 %v3378_v7, %s5468_s11 }
 0x60c   : > { %3424 = vrot.lane.b32.xlu0 %v3381_v10, %s5468_s11  ;;  %3422 = vrot.lane.b32.xlu1 %v3380_v50, %s5468_s11 }
 0x610   : > { %3428 = vrot.lane.b32.xlu0 %v3383_v48, %s5468_s11  ;;  %3426 = vrot.lane.b32.xlu1 %v3382_v4, %s5468_s11 }
 0x614   : > { %3432 = vrot.lane.b32.xlu0 %v3385_v22, %s5468_s11  ;;  %3430 = vrot.lane.b32.xlu1 %v3384_v58, %s5468_s11 }
 0x618   : > { %5226 = vperm.xlu0 %5224, %v5607_v31   ;;  %5220 = vperm.xlu1 %5218, %v5579_v17  }
 0x61c   : > { %5241 = vperm.xlu0 %5224, %v5623_v39   ;;  %5231 = vperm.xlu1 %5218, %v5577_v15  }
 0x620   : > { %5251 = vperm.xlu0 %5224, %v5627_v42   ;;  %5236 = vperm.xlu1 %5218, %v5582_v18  }
 0x624   : > { %5246 = vperm.xlu1 %5218, %v5592_v23   ;;  %5260 = vset.pattern.permute.xlu0 %v5469_v30 }
 0x628   : > { %5256 = vperm.xlu1 %5218, %v5602_v28  }
 0x62c   : > { %5266 = vset.pattern.permute.xlu1 %v5469_v30 }
 0x66a   : > { %v6585_v47 = vpop.permute.xlu0 %3404  ;;  %v6587_v8 = vpop.permute.xlu1 %3402 }
 0x66b   : > { %7434 = vst [vmem:[#allocation134_spill] sm:$0xff] %v6585_v47  ;;  %7435 = vst [vmem:[#allocation135_spill] sm:$0xff] %v6587_v8 }
 0x66e   : > { %v6589_v7 = vpop.permute.xlu0 %3408  ;;  %v6591_v38 = vpop.permute.xlu1 %3406 }
 0x66f   : > { %7436 = vst [vmem:[#allocation136_spill] sm:$0xff] %v6589_v7  ;;  %7437 = vst [vmem:[#allocation137_spill] sm:$0xff] %v6591_v38 }
 0x672   : > { %v6593_v43 = vpop.permute.xlu0 %3412  ;;  %v6595_v24 = vpop.permute.xlu1 %3410 }
 0x673   : > { %7438 = vst [vmem:[#allocation138_spill] sm:$0xff] %v6593_v43  ;;  %7439 = vst [vmem:[#allocation139_spill] sm:$0xff] %v6595_v24 }
 0x676   : > { %v6597_v29 = vpop.permute.xlu0 %3416  ;;  %v6599_v10 = vpop.permute.xlu1 %3414 }
 0x677   : > { %7440 = vst [vmem:[#allocation140_spill] sm:$0xff] %v6597_v29  ;;  %7441 = vst [vmem:[#allocation141_spill] sm:$0xff] %v6599_v10 }
 0x67a   : > { %v6601_v50 = vpop.permute.xlu0 %3420  ;;  %v6603_v9 = vpop.permute.xlu1 %3418 }
 0x67b   : > { %7442 = vst [vmem:[#allocation142_spill] sm:$0xff] %v6601_v50  ;;  %7443 = vst [vmem:[#allocation143_spill] sm:$0xff] %v6603_v9 }
 0x67e   : > { %v6605_v26 = vpop.permute.xlu0 %3424  ;;  %v6607_v48 = vpop.permute.xlu1 %3422 }
 0x67f   : > { %7444 = vst [vmem:[#allocation144_spill] sm:$0xff] %v6607_v48 }
 0x682   : > { %v6609_v4 = vpop.permute.xlu0 %3428  ;;  %v6611_v22 = vpop.permute.xlu1 %3426 }
 0x683   : > { %7445 = vst [vmem:[#allocation145_spill] sm:$0xff] %v6609_v4  ;;  %7446 = vst [vmem:[#allocation146_spill] sm:$0xff] %v6611_v22 }
 0x686   : > { %v6613_v58 = vpop.permute.xlu0 %3432  ;;  %v6615_v30 = vpop.permute.xlu1 %3430 }
 0x687   : > { %7447 = vst [vmem:[#allocation147_spill] sm:$0xff] %v6613_v58  ;;  %7448 = vst [vmem:[#allocation148_spill] sm:$0xff] %v6615_v30 }
 0x693   : > { %v5227_v7 = vpop.permute.xlu0 %5226  ;;  %v5221_v47 = vpop.permute.xlu1 %5220 }
 0x694   : > { %v5229_v38 = vunpack.i.h.bf16 %v5227_v7  ;;  %v5228_v8 = vunpack.i.l.bf16 %v5227_v7  ;;  %v5223_v10 = vunpack.i.h.bf16 %v5221_v47  ;;  %v5222_v50 = vunpack.i.l.bf16 %v5221_v47 }
 0x696   : > { %v3509_v9 = vrot.slane %v5229_v38, %v5655_v53  ;;  %v3487_v29 = vrot.slane %v5223_v10, %v5655_v53  ;;  %v3476_v24 = vrot.slane %v5222_v50, %v5655_v53  ;;  %v3498_v4 = vrot.slane %v5228_v8, %v5655_v53 }
 0x697   : > { %v5232_v43 = vpop.permute.xlu1 %5231  ;;  %v5242_v10 = vpop.permute.xlu0 %5241 }
 0x698   : > { %v3643_v22 = vmul.f32 %v3487_v29, %v5661_v59  ;;  %v3642_v58 = vmul.f32 %v3476_v24, %v5661_v59  ;;  %v5234_v30 = vunpack.i.h.bf16 %v5232_v43  ;;  %v5233_v21 = vunpack.i.l.bf16 %v5232_v43 }
 0x699   : > { %v3645_v6 = vmul.f32 %v3509_v9, %v5661_v59  ;;  %v3644_v47 = vmul.f32 %v3498_v4, %v5661_v59  ;;  %v5244_v43 = vunpack.i.h.bf16 %v5242_v10 }
 0x69a   : > { %3676 = vrot.lane.b32.xlu1 %v3643_v22, %s5470_s18  ;;  %3674 = vrot.lane.b32.xlu0 %v3642_v58, %s5470_s18  ;;  %v3531_v38 = vrot.slane %v5234_v30, %v5655_v53  ;;  %v3520_v29 = vrot.slane %v5233_v21, %v5655_v53  ;;  %v5243_v22 = vunpack.i.l.bf16 %v5242_v10 }
 0x69b   : > { %v5237_v7 = vpop.permute.xlu1 %5236  ;;  %v3575_v21 = vrot.slane %v5244_v43, %v5655_v53 }
 0x69c   : > { %v5239_v8 = vunpack.i.h.bf16 %v5237_v7  ;;  %v5238_v50 = vunpack.i.l.bf16 %v5237_v7  ;;  %v3647_v24 = vmul.f32 %v3531_v38, %v5661_v59  ;;  %v3646_v4 = vmul.f32 %v3520_v29, %v5661_v59  ;;  %v5252_v38 = vpop.permute.xlu0 %5251 }
 0x69d   : > { %v3564_v7 = vrot.slane %v5243_v22, %v5655_v53  ;;  %v3651_v29 = vmul.f32 %v3575_v21, %v5661_v59 }
 0x69e   : > { %3680 = vrot.lane.b32.xlu1 %v3645_v6, %s5470_s18  ;;  %3678 = vrot.lane.b32.xlu0 %v3644_v47, %s5470_s18  ;;  %v3553_v9 = vrot.slane %v5239_v8, %v5655_v53  ;;  %v3542_v58 = vrot.slane %v5238_v50, %v5655_v53  ;;  %v5254_v50 = vunpack.i.h.bf16 %v5252_v38 }
 0x69f   : > { %v5247_v30 = vpop.permute.xlu1 %5246  ;;  %v3650_v43 = vmul.f32 %v3564_v7, %v5661_v59 }
 0x6a0   : > { %v3649_v6 = vmul.f32 %v3553_v9, %v5661_v59  ;;  %v5249_v47 = vunpack.i.h.bf16 %v5247_v30  ;;  %v3648_v8 = vmul.f32 %v3542_v58, %v5661_v59  ;;  %v5248_v10 = vunpack.i.l.bf16 %v5247_v30 }
 0x6a1   : > { %v3619_v22 = vrot.slane %v5254_v50, %v5655_v53  ;;  %v5471_v50 = vmov 14  }
 0x6a2   : > { %3684 = vrot.lane.b32.xlu1 %v3647_v24, %s5470_s18  ;;  %3682 = vrot.lane.b32.xlu0 %v3646_v4, %s5470_s18  ;;  %v3597_v24 = vrot.slane %v5249_v47, %v5655_v53  ;;  %v5253_v4 = vunpack.i.l.bf16 %v5252_v38  ;;  %v3586_v9 = vrot.slane %v5248_v10, %v5655_v53 }
 0x6a3   : > { %v5257_v48 = vpop.permute.xlu1 %5256  ;;  %v3655_v7 = vmul.f32 %v3619_v22, %v5661_v59  ;;  %v4755_v22 = vunpack.i.h.bf16 %v5669_v63 }
 0x6a4   : > { %v3653_v58 = vmul.f32 %v3597_v24, %v5661_v59  ;;  %v5259_v30 = vunpack.i.h.bf16 %v5257_v48  ;;  %v3608_v21 = vrot.slane %v5253_v4, %v5655_v53  ;;  %v5258_v47 = vunpack.i.l.bf16 %v5257_v48 }
 0x6a5   : > { %v4750_v24 = vunpack.i.h.bf16 %v5665_v62 }
 0x6a6   : > { %3688 = vrot.lane.b32.xlu1 %v3649_v6, %s5470_s18  ;;  %3686 = vrot.lane.b32.xlu0 %v3648_v8, %s5470_s18  ;;  %v3652_v6 = vmul.f32 %v3586_v9, %v5661_v59  ;;  %v3641_v38 = vrot.slane %v5259_v30, %v5655_v53  ;;  %v3654_v8 = vmul.f32 %v3608_v21, %v5661_v59  ;;  %v4754_v30 = vunpack.i.l.bf16 %v5669_v63 }
 0x6a7   : > { %v3630_v10 = vrot.slane %v5258_v47, %v5655_v53  ;;  %v393_v4 = vrot.slane %v4750_v24, %v5655_v53 }
 0x6a9   : > { %v3656_v48 = vmul.f32 %v3630_v10, %v5661_v59  ;;  %v429_v10 = vrot.slane %v4754_v30, %v5655_v53 }
 0x6aa   : > { %3692 = vrot.lane.b32.xlu1 %v3651_v29, %s5470_s18  ;;  %3690 = vrot.lane.b32.xlu0 %v3650_v43, %s5470_s18  ;;  %v3657_v29 = vmul.f32 %v3641_v38, %v5661_v59  ;;  %v4749_v43 = vunpack.i.l.bf16 %v5665_v62  ;;  %v441_v62 = vrot.slane %v4755_v22, %v5655_v53 }
 0x6ac   : > { %v381_v9 = vrot.slane %v4749_v43, %v5655_v53  ;;  %v456_v43 = vmul.f32 %v429_v10, %v5661_v59 }
 0x6ae   : > { %3696 = vrot.lane.b32.xlu1 %v3653_v58, %s5470_s18  ;;  %3694 = vrot.lane.b32.xlu0 %v3652_v6, %s5470_s18  ;;  %v453_v58 = vmul.f32 %v393_v4, %v5661_v59  ;;  %v452_v21 = vmul.f32 %v381_v9, %v5661_v59 }
 0x6b0   : > { %v741_v6 = vadd.f32 %v5837_v35, %v453_v58  ;;  %v740_v47 = vadd.f32 %v5839_v36, %v452_v21  ;;  %v457_v35 = vmul.f32 %v441_v62, %v5661_v59 }
 0x6b2   : > { %3700 = vrot.lane.b32.xlu1 %v3655_v7, %s5470_s18  ;;  %3698 = vrot.lane.b32.xlu0 %v3654_v8, %s5470_s18  ;;  %v1013_v8 = vadd.f32 %v5871_v57, %v741_v6  ;;  %v745_v4 = vadd.f32 %v5845_v40, %v457_v35 }
 0x6b4   : > { %v1285_v63 = vadd.f32 %v5901_v13, %v1013_v8  ;;  %v744_v13 = vadd.f32 %v5847_v41, %v456_v43  ;;  %v1017_v22 = vadd.f32 %v5879_v1, %v745_v4  ;;  %v7449_v8 = vld [vmem:[#allocation144_spill] sm:$0xff]  ;;  %v7453_v43 = vld [vmem:[#allocation119_spill] sm:$0xff] }
 0x6b6   : > { %3704 = vrot.lane.b32.xlu1 %v3657_v29, %s5470_s18  ;;  %3702 = vrot.lane.b32.xlu0 %v3656_v48, %s5470_s18  ;;  %v1012_v29 = vadd.f32 %v5869_v56, %v740_v47  ;;  %v1557_v36 = vadd.f32 %v5989_v33, %v1285_v63  ;;  %v1016_v30 = vadd.f32 %v5877_v0, %v744_v13 }
 0x6b7   : > { %v1289_v40 = vadd.f32 %v5909_v20, %v1017_v22 }
 0x6b8   : > { %v1284_v48 = vadd.f32 %v5903_v14, %v1012_v29  ;;  %v1829_v56 = vadd.f32 %v6077_v34, %v1557_v36  ;;  %v1288_v41 = vadd.f32 %v5911_v32, %v1016_v30  ;;  %v7450_v29 = vld [vmem:[#allocation104_spill] sm:$0xff] }
 0x6b9   : > { %v1561_v1 = vadd.f32 %v5997_v37, %v1289_v40 }
 0x6ba   : > { %5268 = vperm.xlu1 %5266, %v5607_v31   ;;  %5262 = vperm.xlu0 %5260, %v5579_v17   ;;  %v1556_v57 = vadd.f32 %v5991_v19, %v1284_v48  ;;  %v2101_v33 = vadd.f32 %v6165_v61, %v1829_v56  ;;  %v1560_v0 = vadd.f32 %v5999_v11, %v1288_v41  ;;  %v7451_v48 = vld [vmem:[#allocation105_spill] sm:$0xff] }
 0x6bb   : > { %v1833_v20 = vadd.f32 %v6085_v45, %v1561_v1  ;;  %v7455_v56 = vld [vmem:[#allocation133_spill] sm:$0xff] }
 0x6bc   : > { %v1828_v14 = vadd.f32 %v6079_v54, %v1556_v57  ;;  %v2373_v34 = vadd.f32 %v6253_v12, %v2101_v33  ;;  %v1832_v32 = vadd.f32 %v6087_v60, %v1560_v0  ;;  %v7457_v33 = vld [vmem:[#allocation148_spill] sm:$0xff] }
 0x6bd   : > { %v2105_v37 = vadd.f32 %v6173_v25, %v1833_v20 }
 0x6be   : > { %5273 = vperm.xlu1 %5266, %v5577_v15   ;;  %5278 = vperm.xlu0 %5260, %v5582_v18   ;;  %v2100_v19 = vadd.f32 %v6167_v16, %v1828_v14  ;;  %v2645_v61 = vadd.f32 %v6341_v52, %v2373_v34  ;;  %v2104_v11 = vadd.f32 %v6175_v3, %v1832_v32  ;;  %v7452_v3 = vld [vmem:[#allocation118_spill] sm:$0xff]  ;;  %v7456_v14 = vld [vmem:[#allocation147_spill] sm:$0xff] }
 0x6bf   : > { %v2377_v45 = vadd.f32 %v6261_v55, %v2105_v37 }
 0x6c0   : > { %v2372_v54 = vadd.f32 %v6255_v2, %v2100_v19  ;;  %v2917_v12 = vadd.f32 %v6429_v51, %v2645_v61  ;;  %v2376_v60 = vadd.f32 %v6263_v49, %v2104_v11 }
 0x6c1   : > { %v2649_v63 = vadd.f32 %v7450_v29, %v2377_v45 }
 0x6c2   : > { %5283 = vperm.xlu1 %5266, %v5623_v39   ;;  %5288 = vperm.xlu0 %5260, %v5592_v23   ;;  %v2644_v16 = vadd.f32 %v6343_v44, %v2372_v54  ;;  %v3189_v52 = vadd.f32 %v6517_v27, %v2917_v12  ;;  %v2648_v35 = vadd.f32 %v7451_v48, %v2376_v60 }
 0x6c4   : > { %v2916_v2 = vadd.f32 %v6431_v5, %v2644_v16  ;;  %v3461_v51 = vadd.f32 %v6605_v26, %v3189_v52  ;;  %v2920_v55 = vadd.f32 %v7453_v43, %v2648_v35  ;;  %v7454_v26 = vld [vmem:[#allocation132_spill] sm:$0xff] }
 0x6c6   : > { %5293 = vperm.xlu1 %5266, %v5627_v42   ;;  %5298 = vperm.xlu0 %5260, %v5602_v28   ;;  %v3188_v44 = vadd.f32 %v6519_v46, %v2916_v2  ;;  %v2921_v46 = vadd.f32 %v7452_v3, %v2649_v63  ;;  %v3192_v13 = vadd.f32 %v7455_v56, %v2920_v55 }
 0x6c8   : > { %v3460_v5 = vadd.f32 %v7449_v8, %v3188_v44  ;;  %v3193_v49 = vadd.f32 %v7454_v26, %v2921_v46  ;;  %v3464_v30 = vadd.f32 %v7457_v33, %v3192_v13 }
 0x6ca   : > { %5302 = vset.pattern.permute.xlu1 %v5471_v50  ;;  %5308 = vset.pattern.permute.xlu0 %v5471_v50  ;;  %v3465_v22 = vadd.f32 %v7456_v14, %v3193_v49 }
 0x70c   : > { %v6683_v7 = vpop.permute.xlu1 %3676  ;;  %v6685_v38 = vpop.permute.xlu0 %3674 }
 0x710   : > { %v6693_v50 = vpop.permute.xlu1 %3680  ;;  %v6697_v24 = vpop.permute.xlu0 %3678 }
 0x714   : > { %v6705_v9 = vpop.permute.xlu1 %3684  ;;  %v6709_v58 = vpop.permute.xlu0 %3682 }
 0x718   : > { %v6717_v21 = vpop.permute.xlu1 %3688  ;;  %v6721_v6 = vpop.permute.xlu0 %3686 }
 0x71c   : > { %v6729_v47 = vpop.permute.xlu1 %3692  ;;  %v6733_v62 = vpop.permute.xlu0 %3690 }
 0x720   : > { %v3697_v10 = vpop.permute.xlu1 %3696  ;;  %v3695_v27 = vpop.permute.xlu0 %3694 }
 0x721   : > { %v6742_v25 = vadd.f32 %v3697_v10, %v3461_v51  ;;  %v6745_v36 = vadd.f32 %v3695_v27, %v3460_v5 }
 0x724   : > { %v6749_v57 = vpop.permute.xlu1 %3700  ;;  %v6752_v4 = vpop.permute.xlu0 %3698 }
 0x728   : > { %v3705_v19 = vpop.permute.xlu1 %3704  ;;  %v3703_v34 = vpop.permute.xlu0 %3702 }
 0x729   : > { %v6757_v40 = vadd.f32 %v3705_v19, %v3465_v22  ;;  %v6759_v41 = vadd.f32 %v3703_v34, %v3464_v30 }
 0x735   : > { %v5269_v54 = vpop.permute.xlu1 %5268  ;;  %v5263_v0 = vpop.permute.xlu0 %5262 }
 0x736   : > { %v5271_v1 = vunpack.i.h.bf16 %v5269_v54  ;;  %v5270_v61 = vunpack.i.l.bf16 %v5269_v54  ;;  %v5265_v16 = vunpack.i.h.bf16 %v5263_v0  ;;  %v5264_v20 = vunpack.i.l.bf16 %v5263_v0 }
 0x738   : > { %v3781_v12 = vrot.slane %v5271_v1, %v5655_v53  ;;  %v3770_v32 = vrot.slane %v5270_v61, %v5655_v53  ;;  %v3759_v2 = vrot.slane %v5265_v16, %v5655_v53  ;;  %v3748_v37 = vrot.slane %v5264_v20, %v5655_v53 }
 0x739   : > { %v5274_v52 = vpop.permute.xlu1 %5273  ;;  %v5279_v60 = vpop.permute.xlu0 %5278 }
 0x73a   : > { %v3915_v11 = vmul.f32 %v3759_v2, %v5661_v59  ;;  %v3914_v44 = vmul.f32 %v3748_v37, %v5661_v59  ;;  %v5276_v45 = vunpack.i.h.bf16 %v5274_v52  ;;  %v5275_v51 = vunpack.i.l.bf16 %v5274_v52 }
 0x73b   : > { %v3917_v8 = vmul.f32 %v3781_v12, %v5661_v59  ;;  %v3916_v5 = vmul.f32 %v3770_v32, %v5661_v59  ;;  %v5281_v10 = vunpack.i.h.bf16 %v5279_v60  ;;  %v5280_v29 = vunpack.i.l.bf16 %v5279_v60 }
 0x73c   : > { %3948 = vrot.lane.b32.xlu0 %v3915_v11, %s5472_s19  ;;  %3946 = vrot.lane.b32.xlu1 %v3914_v44, %s5472_s19  ;;  %v3803_v63 = vrot.slane %v5276_v45, %v5655_v53  ;;  %v3792_v27 = vrot.slane %v5275_v51, %v5655_v53 }
 0x73d   : > { %v5284_v48 = vpop.permute.xlu1 %5283  ;;  %v3825_v35 = vrot.slane %v5281_v10, %v5655_v53  ;;  %v3814_v3 = vrot.slane %v5280_v29, %v5655_v53  ;;  %v5289_v49 = vpop.permute.xlu0 %5288  ;;  %v7458_v10 = vmov 0  }
 0x73e   : > { %v3919_v46 = vmul.f32 %v3803_v63, %v5661_v59  ;;  %v3918_v43 = vmul.f32 %v3792_v27, %v5661_v59  ;;  %v5286_v55 = vunpack.i.h.bf16 %v5284_v48  ;;  %v5285_v26 = vunpack.i.l.bf16 %v5284_v48  ;;  %v7460_v27 = vld [vmem:[#allocation7_spill] sm:$0xff] }
 0x73f   : > { %v5291_v56 = vunpack.i.h.bf16 %v5289_v49  ;;  %v5290_v13 = vunpack.i.l.bf16 %v5289_v49  ;;  %v3921_v14 = vmul.f32 %v3825_v35, %v5661_v59  ;;  %v3920_v22 = vmul.f32 %v3814_v3, %v5661_v59  ;;  %v7461_v35 = vld [vmem:[#allocation12_spill] sm:$0xff] }
 0x740   : > { %3952 = vrot.lane.b32.xlu0 %v3917_v8, %s5472_s19  ;;  %3950 = vrot.lane.b32.xlu1 %v3916_v5, %s5472_s19  ;;  %v3847_v33 = vrot.slane %v5286_v55, %v5655_v53  ;;  %v3836_v30 = vrot.slane %v5285_v26, %v5655_v53  ;;  %v7463_v49 = vld [vmem:[#allocation24_spill] sm:$0xff] }
 0x741   : > { %v5294_v19 = vpop.permute.xlu1 %5293  ;;  %v3869_v34 = vrot.slane %v5291_v56, %v5655_v53  ;;  %v3858_v54 = vrot.slane %v5290_v13, %v5655_v53  ;;  %v5299_v20 = vpop.permute.xlu0 %5298  ;;  %v7464_v13 = vld [vmem:[#allocation25_spill] sm:$0xff] }
 0x742   : > { %v3923_v1 = vmul.f32 %v3847_v33, %v5661_v59  ;;  %v3922_v61 = vmul.f32 %v3836_v30, %v5661_v59  ;;  %v5296_v0 = vunpack.i.h.bf16 %v5294_v19  ;;  %v5295_v16 = vunpack.i.l.bf16 %v5294_v19  ;;  %v7466_v30 = vld [vmem:[#allocation15_spill] sm:$0xff] }
 0x743   : > { %v3925_v12 = vmul.f32 %v3869_v34, %v5661_v59  ;;  %v3924_v32 = vmul.f32 %v3858_v54, %v5661_v59  ;;  %v5301_v52 = vunpack.i.h.bf16 %v5299_v20  ;;  %v5300_v11 = vunpack.i.l.bf16 %v5299_v20  ;;  %v7467_v34 = vld [vmem:[#allocation36_spill] sm:$0xff]  ;;  %v7470_v20 = vld [vmem:[#allocation27_spill] sm:$0xff] }
 0x744   : > { %3956 = vrot.lane.b32.xlu0 %v3919_v46, %s5472_s19  ;;  %3954 = vrot.lane.b32.xlu1 %v3918_v43, %s5472_s19  ;;  %v3891_v2 = vrot.slane %v5296_v0, %v5655_v53  ;;  %v3880_v37 = vrot.slane %v5295_v16, %v5655_v53  ;;  %v7462_v46 = vld [vmem:[#allocation13_spill] sm:$0xff]  ;;  %v7469_v0 = vld [vmem:[#allocation26_spill] sm:$0xff] }
 0x745   : > { %v3913_v51 = vrot.slane %v5301_v52, %v5655_v53  ;;  %v3902_v60 = vrot.slane %v5300_v11, %v5655_v53  ;;  %v7473_v11 = vld [vmem:[#allocation38_spill] sm:$0xff] }
 0x746   : > { %v3927_v44 = vmul.f32 %v3891_v2, %v5661_v59  ;;  %v3926_v45 = vmul.f32 %v3880_v37, %v5661_v59  ;;  %v7472_v37 = vld [vmem:[#allocation49_spill] sm:$0xff] }
 0x747   : > { %v3929_v8 = vmul.f32 %v3913_v51, %v5661_v59  ;;  %v3928_v5 = vmul.f32 %v3902_v60, %v5661_v59  ;;  %v7475_v60 = vld [vmem:[#allocation60_spill] sm:$0xff] }
 0x748   : > { %3960 = vrot.lane.b32.xlu0 %v3921_v14, %s5472_s19  ;;  %3958 = vrot.lane.b32.xlu1 %v3920_v22, %s5472_s19  ;;  %v7465_v22 = vld [vmem:[#allocation14_spill] sm:$0xff] }
 0x74c   : > { %3964 = vrot.lane.b32.xlu0 %v3923_v1, %s5472_s19  ;;  %3962 = vrot.lane.b32.xlu1 %v3922_v61, %s5472_s19  ;;  %v7468_v1 = vld [vmem:[#allocation37_spill] sm:$0xff] }
 0x750   : > { %3968 = vrot.lane.b32.xlu0 %v3925_v12, %s5472_s19  ;;  %3966 = vrot.lane.b32.xlu1 %v3924_v32, %s5472_s19  ;;  %v7471_v32 = vld [vmem:[#allocation48_spill] sm:$0xff] }
 0x754   : > { %3972 = vrot.lane.b32.xlu0 %v3927_v44, %s5472_s19  ;;  %3970 = vrot.lane.b32.xlu1 %v3926_v45, %s5472_s19  ;;  %v7474_v45 = vld [vmem:[#allocation39_spill] sm:$0xff] }
 0x758   : > { %3976 = vrot.lane.b32.xlu0 %v3929_v8, %s5472_s19  ;;  %3974 = vrot.lane.b32.xlu1 %v3928_v5, %s5472_s19  ;;  %v7476_v5 = vld [vmem:[#allocation61_spill] sm:$0xff] }
 0x75c   : > { %5310 = vperm.xlu0 %5308, %v5607_v31   ;;  %5304 = vperm.xlu1 %5302, %v5579_v17  }
 0x760   : > { %5325 = vperm.xlu0 %5308, %v5623_v39   ;;  %5315 = vperm.xlu1 %5302, %v5577_v15   ;;  %v7459_v15 = vld [vmem:[#allocation6_spill] sm:$0xff] }
 0x761   : > { %v4740_v29 = vunpack.i.h.bf16 %v7459_v15 }
 0x763   : > { %v321_v63 = vrot.slane %v4740_v29, %v5655_v53 }
 0x764   : > { %5335 = vperm.xlu0 %5308, %v5627_v42   ;;  %5320 = vperm.xlu1 %5302, %v5582_v18   ;;  %v4739_v18 = vunpack.i.l.bf16 %v7459_v15  ;;  %v7477_v15 = vld [vmem:[#allocation50_spill] sm:$0xff] }
 0x768   : > { %5339 = vset.pattern.permute.xlu0 %v7458_v10  ;;  %5330 = vperm.xlu1 %5302, %v5592_v23   ;;  %v309_v23 = vrot.slane %v4739_v18, %v5655_v53  ;;  %v7478_v18 = vld [vmem:[#allocation51_spill] sm:$0xff] }
 0x769   : > { %5341 = vperm.xlu0 %5339, %v5579_v17   ;;  %v4745_v17 = vunpack.i.h.bf16 %v7460_v27 }
 0x76c   : > { %5361 = vperm.xlu1 %5302, %v5602_v28   ;;  %v4744_v28 = vunpack.i.l.bf16 %v7460_v27 }
 0x76d   : > { %5346 = vperm.xlu0 %5339, %v5607_v31   ;;  %v345_v31 = vrot.slane %v4745_v17, %v5655_v53  ;;  %v7480_v17 = vld [vmem:[#allocation73_spill] sm:$0xff] }
 0x76e   : > { %v333_v48 = vrot.slane %v4744_v28, %v5655_v53 }
 0x76f   : > { %v449_v55 = vmul.f32 %v345_v31, %v5661_v59  ;;  %v7481_v31 = vld [vmem:[#allocation62_spill] sm:$0xff] }
 0x770   : > { %5365 = vset.pattern.permute.xlu1 %v7458_v10  ;;  %v448_v26 = vmul.f32 %v333_v48, %v5661_v59 }
 0x771   : > { %5351 = vperm.xlu0 %5339, %v5623_v39   ;;  %v447_v39 = vmul.f32 %v321_v63, %v5661_v59  ;;  %v737_v33 = vadd.f32 %v7465_v22, %v449_v55  ;;  %v7485_v55 = vld [vmem:[#allocation74_spill] sm:$0xff]  ;;  %v7488_v22 = vld [vmem:[#allocation97_spill] sm:$0xff] }
 0x772   : > { %v736_v19 = vadd.f32 %v7466_v30, %v448_v26 }
 0x773   : > { %v735_v3 = vadd.f32 %v7461_v35, %v447_v39  ;;  %v1009_v12 = vadd.f32 %v7470_v20, %v737_v33  ;;  %v7482_v39 = vld [vmem:[#allocation63_spill] sm:$0xff]  ;;  %v7483_v35 = vld [vmem:[#allocation84_spill] sm:$0xff] }
 0x774   : > { %v1008_v16 = vadd.f32 %v7469_v0, %v736_v19  ;;  %v7491_v0 = vld [vmem:[#allocation110_spill] sm:$0xff]  ;;  %v7492_v20 = vld [vmem:[#allocation111_spill] sm:$0xff] }
 0x775   : > { %5356 = vperm.xlu0 %5339, %v5627_v42   ;;  %v446_v42 = vmul.f32 %v309_v23, %v5661_v59  ;;  %v1007_v14 = vadd.f32 %v7464_v13, %v735_v3  ;;  %v1281_v44 = vadd.f32 %v7473_v11, %v1009_v12  ;;  %v7479_v23 = vld [vmem:[#allocation72_spill] sm:$0xff] }
 0x776   : > { %v1280_v51 = vadd.f32 %v7474_v45, %v1008_v16  ;;  %v7487_v13 = vld [vmem:[#allocation96_spill] sm:$0xff]  ;;  %v7496_v45 = vld [vmem:[#allocation125_spill] sm:$0xff] }
 0x777   : > { %v734_v43 = vadd.f32 %v7462_v46, %v446_v42  ;;  %v1279_v54 = vadd.f32 %v7467_v34, %v1007_v14  ;;  %v1553_v29 = vadd.f32 %v7477_v15, %v1281_v44  ;;  %v7484_v46 = vld [vmem:[#allocation85_spill] sm:$0xff]  ;;  %v7489_v34 = vld [vmem:[#allocation86_spill] sm:$0xff]  ;;  %v7495_v11 = vld [vmem:[#allocation124_spill] sm:$0xff] }
 0x778   : > { %v1552_v63 = vadd.f32 %v7478_v18, %v1280_v51  ;;  %v7498_v15 = vld [vmem:[#allocation113_spill] sm:$0xff]  ;;  %v7499_v18 = vld [vmem:[#allocation138_spill] sm:$0xff] }
 0x779   : > { %v1006_v56 = vadd.f32 %v7463_v49, %v734_v43  ;;  %v1551_v2 = vadd.f32 %v7471_v32, %v1279_v54  ;;  %v1825_v48 = vadd.f32 %v7481_v31, %v1553_v29  ;;  %v7486_v49 = vld [vmem:[#allocation75_spill] sm:$0xff]  ;;  %v7493_v32 = vld [vmem:[#allocation98_spill] sm:$0xff] }
 0x77a   : > { %v1824_v42 = vadd.f32 %v7482_v39, %v1552_v63  ;;  %v7502_v31 = vld [vmem:[#allocation127_spill] sm:$0xff] }
 0x77b   : > { %v1278_v61 = vadd.f32 %v7468_v1, %v1006_v56  ;;  %v1823_v8 = vadd.f32 %v7475_v60, %v1551_v2  ;;  %v2097_v26 = vadd.f32 %v7485_v55, %v1825_v48  ;;  %v7490_v1 = vld [vmem:[#allocation87_spill] sm:$0xff]  ;;  %v7504_v55 = vld [vmem:[#allocation141_spill] sm:$0xff] }
 0x77c   : > { %v2096_v56 = vadd.f32 %v7486_v49, %v1824_v42 }
 0x77d   : > { %v1550_v52 = vadd.f32 %v7472_v37, %v1278_v61  ;;  %v2095_v27 = vadd.f32 %v7479_v23, %v1823_v8  ;;  %v2369_v54 = vadd.f32 %v7489_v34, %v2097_v26  ;;  %v7494_v37 = vld [vmem:[#allocation99_spill] sm:$0xff] }
 0x77e   : > { %v2368_v61 = vadd.f32 %v7490_v1, %v2096_v56  ;;  %v7500_v23 = vld [vmem:[#allocation139_spill] sm:$0xff] }
 0x77f   : > { %v1822_v10 = vadd.f32 %v7476_v5, %v1550_v52  ;;  %v2367_v3 = vadd.f32 %v7483_v35, %v2095_v27  ;;  %v2641_v2 = vadd.f32 %v7493_v32, %v2369_v54  ;;  %v7497_v5 = vld [vmem:[#allocation112_spill] sm:$0xff] }
 0x780   : > { %v2640_v52 = vadd.f32 %v7494_v37, %v2368_v61 }
 0x781   : > { %v2094_v28 = vadd.f32 %v7480_v17, %v1822_v10  ;;  %v2639_v14 = vadd.f32 %v7487_v13, %v2367_v3  ;;  %v2913_v10 = vadd.f32 %v7497_v5, %v2641_v2  ;;  %v7501_v17 = vld [vmem:[#allocation126_spill] sm:$0xff] }
 0x782   : > { %v2912_v29 = vadd.f32 %v7498_v15, %v2640_v52 }
 0x783   : > { %v2366_v43 = vadd.f32 %v7484_v46, %v2094_v28  ;;  %v2911_v16 = vadd.f32 %v7491_v0, %v2639_v14  ;;  %v3185_v28 = vadd.f32 %v7501_v17, %v2913_v10  ;;  %v7503_v46 = vld [vmem:[#allocation140_spill] sm:$0xff] }
 0x784   : > { %v3184_v48 = vadd.f32 %v7502_v31, %v2912_v29 }
 0x785   : > { %v2638_v33 = vadd.f32 %v7488_v22, %v2366_v43  ;;  %v3183_v44 = vadd.f32 %v7495_v11, %v2911_v16  ;;  %v3457_v43 = vadd.f32 %v7503_v46, %v3185_v28 }
 0x786   : > { %v3456_v26 = vadd.f32 %v7504_v55, %v3184_v48 }
 0x787   : > { %v2910_v12 = vadd.f32 %v7492_v20, %v2638_v33  ;;  %v3455_v63 = vadd.f32 %v7499_v18, %v3183_v44  ;;  %v3729_v13 = vadd.f32 %v6717_v21, %v3457_v43 }
 0x788   : > { %v3728_v14 = vadd.f32 %v6721_v6, %v3456_v26 }
 0x789   : > { %v3182_v51 = vadd.f32 %v7496_v45, %v2910_v12  ;;  %v3727_v39 = vadd.f32 %v6705_v9, %v3455_v63 }
 0x78b   : > { %v3454_v27 = vadd.f32 %v7500_v23, %v3182_v51 }
 0x78d   : > { %v3726_v42 = vadd.f32 %v6709_v58, %v3454_v27 }
 0x7ae   : > { %v6863_v30 = vpop.permute.xlu0 %3948  ;;  %v6865_v19 = vpop.permute.xlu1 %3946 }
 0x7b2   : > { %v6875_v60 = vpop.permute.xlu0 %3952  ;;  %v6877_v8 = vpop.permute.xlu1 %3950 }
 0x7b6   : > { %v3957_v35 = vpop.permute.xlu0 %3956  ;;  %v3955_v3 = vpop.permute.xlu1 %3954 }
 0x7b7   : > { %v6889_v49 = vadd.f32 %v3957_v35, %v3727_v39  ;;  %v6891_v56 = vadd.f32 %v3955_v3, %v3726_v42 }
 0x7ba   : > { %v3961_v22 = vpop.permute.xlu0 %3960  ;;  %v3959_v33 = vpop.permute.xlu1 %3958 }
 0x7bb   : > { %v6895_v34 = vadd.f32 %v3961_v22, %v3729_v13  ;;  %v6897_v9 = vadd.f32 %v3959_v33, %v3728_v14 }
 0x7be   : > { %v6899_v58 = vpop.permute.xlu0 %3964  ;;  %v6901_v54 = vpop.permute.xlu1 %3962 }
 0x7c2   : > { %v3969_v1 = vpop.permute.xlu0 %3968  ;;  %v3967_v61 = vpop.permute.xlu1 %3966 }
 0x7c3   : > { %v6904_v0 = vadd.f32 %v3969_v1, %v6742_v25  ;;  %v6907_v16 = vadd.f32 %v3967_v61, %v6745_v36 }
 0x7c6   : > { %v6909_v21 = vpop.permute.xlu0 %3972  ;;  %v6911_v6 = vpop.permute.xlu1 %3970 }
 0x7ca   : > { %v3977_v20 = vpop.permute.xlu0 %3976  ;;  %v3975_v12 = vpop.permute.xlu1 %3974 }
 0x7cb   : > { %v6914_v32 = vadd.f32 %v3977_v20, %v6757_v40  ;;  %v6917_v2 = vadd.f32 %v3975_v12, %v6759_v41 }
 0x7d7   : > { %v5311_v37 = vpop.permute.xlu0 %5310  ;;  %v5305_v52 = vpop.permute.xlu1 %5304 }
 0x7d8   : > { %v5313_v11 = vunpack.i.h.bf16 %v5311_v37  ;;  %v5312_v25 = vunpack.i.l.bf16 %v5311_v37  ;;  %v5307_v44 = vunpack.i.h.bf16 %v5305_v52  ;;  %v5306_v45 = vunpack.i.l.bf16 %v5305_v52 }
 0x7da   : > { %v4053_v36 = vrot.slane %v5313_v11, %v5655_v53  ;;  %v4031_v51 = vrot.slane %v5307_v44, %v5655_v53  ;;  %v4020_v5 = vrot.slane %v5306_v45, %v5655_v53  ;;  %v4042_v10 = vrot.slane %v5312_v25, %v5655_v53 }
 0x7db   : > { %v5316_v15 = vpop.permute.xlu1 %5315  ;;  %v5326_v31 = vpop.permute.xlu0 %5325 }
 0x7dc   : > { %v4187_v40 = vmul.f32 %v4031_v51, %v5661_v59  ;;  %v4186_v41 = vmul.f32 %v4020_v5, %v5661_v59  ;;  %v5318_v29 = vunpack.i.h.bf16 %v5316_v15  ;;  %v5317_v18 = vunpack.i.l.bf16 %v5316_v15  ;;  %v4282_v51 = vld [vmem:[%s7296_s2] sm:$0x1]  ;;  %v4283_v15 = vld [vmem:[%s7296_s2 + $0x1] sm:$0x1] }
 0x7dd   : > { %v4189_v63 = vmul.f32 %v4053_v36, %v5661_v59  ;;  %v4188_v23 = vmul.f32 %v4042_v10, %v5661_v59  ;;  %v5328_v42 = vunpack.i.h.bf16 %v5326_v31  ;;  %v5327_v46 = vunpack.i.l.bf16 %v5326_v31  ;;  %v4284_v10 = vld [vmem:[%s7296_s2 + $0x2] sm:$0x1]  ;;  %v4294_v31 = vld [vmem:[%s7296_s2 + $0xc] sm:$0x1] }
 0x7de   : > { %4220 = vrot.lane.b32.xlu1 %v4187_v40, %s5473_s21  ;;  %4218 = vrot.lane.b32.xlu0 %v4186_v41, %s5473_s21  ;;  %v4075_v17 = vrot.slane %v5318_v29, %v5655_v53  ;;  %v4064_v48 = vrot.slane %v5317_v18, %v5655_v53  ;;  %v4285_v40 = vld [vmem:[%s7296_s2 + $0x3] sm:$0x1]  ;;  %v4286_v41 = vld [vmem:[%s7296_s2 + $0x4] sm:$0x1] }
 0x7df   : > { %v5321_v27 = vpop.permute.xlu1 %5320  ;;  %v4119_v13 = vrot.slane %v5328_v42, %v5655_v53  ;;  %v4108_v33 = vrot.slane %v5327_v46, %v5655_v53  ;;  %v5336_v20 = vpop.permute.xlu0 %5335  ;;  %v4287_v29 = vld [vmem:[%s7296_s2 + $0x5] sm:$0x1]  ;;  %v4288_v18 = vld [vmem:[%s7296_s2 + $0x6] sm:$0x1]  ;;  %v4295_v42 = vld [vmem:[%s7296_s2 + $0xd] sm:$0x1] }
 0x7e0   : > { %v5323_v28 = vunpack.i.h.bf16 %v5321_v27  ;;  %v5322_v39 = vunpack.i.l.bf16 %v5321_v27  ;;  %v4191_v35 = vmul.f32 %v4075_v17, %v5661_v59  ;;  %v4190_v43 = vmul.f32 %v4064_v48, %v5661_v59  ;;  %v4291_v27 = vld [vmem:[%s7296_s2 + $0x9] sm:$0x1]  ;;  %v4292_v17 = vld [vmem:[%s7296_s2 + $0xa] sm:$0x1] }
 0x7e1   : > { %v4195_v12 = vmul.f32 %v4119_v13, %v5661_v59  ;;  %v4194_v52 = vmul.f32 %v4108_v33, %v5661_v59  ;;  %v5337_v11 = vunpack.i.l.bf16 %v5336_v20  ;;  %v5338_v48 = vunpack.i.h.bf16 %v5336_v20 }
 0x7e2   : > { %4224 = vrot.lane.b32.xlu1 %v4189_v63, %s5473_s21  ;;  %4222 = vrot.lane.b32.xlu0 %v4188_v23, %s5473_s21  ;;  %v4097_v3 = vrot.slane %v5323_v28, %v5655_v53  ;;  %v4086_v55 = vrot.slane %v5322_v39, %v5655_v53  ;;  %v4289_v63 = vld [vmem:[%s7296_s2 + $0x7] sm:$0x1]  ;;  %v4290_v23 = vld [vmem:[%s7296_s2 + $0x8] sm:$0x1] }
 0x7e3   : > { %v5331_v26 = vpop.permute.xlu1 %5330  ;;  %v4152_v45 = vrot.slane %v5337_v11, %v5655_v53  ;;  %v4293_v28 = vld [vmem:[%s7296_s2 + $0xb] sm:$0x1]  ;;  %v4163_v46 = vrot.slane %v5338_v48, %v5655_v53 }
 0x7e4   : > { %v4193_v14 = vmul.f32 %v4097_v3, %v5661_v59  ;;  %v5333_v22 = vunpack.i.h.bf16 %v5331_v26  ;;  %v4192_v1 = vmul.f32 %v4086_v55, %v5661_v59  ;;  %v5332_v61 = vunpack.i.l.bf16 %v5331_v26  ;;  %v4296_v3 = vld [vmem:[%s7296_s2 + $0xe] sm:$0x1]  ;;  %v4297_v55 = vld [vmem:[%s7296_s2 + $0xf] sm:$0x1] }
 0x7e5   : > { %v4198_v5 = vmul.f32 %v4152_v45, %v5661_v59  ;;  %v4199_v13 = vmul.f32 %v4163_v46, %v5661_v59 }
 0x7e6   : > { %4228 = vrot.lane.b32.xlu1 %v4191_v35, %s5473_s21  ;;  %4226 = vrot.lane.b32.xlu0 %v4190_v43, %s5473_s21  ;;  %v4141_v37 = vrot.slane %v5333_v22, %v5655_v53  ;;  %v4130_v25 = vrot.slane %v5332_v61, %v5655_v53 }
 0x7e7   : > { %v5362_v39 = vpop.permute.xlu1 %5361 }
 0x7e8   : > { %v4197_v44 = vmul.f32 %v4141_v37, %v5661_v59  ;;  %v4196_v36 = vmul.f32 %v4130_v25, %v5661_v59  ;;  %v5363_v35 = vunpack.i.l.bf16 %v5362_v39  ;;  %v5364_v43 = vunpack.i.h.bf16 %v5362_v39  ;;  %v7510_v39 = vld [vmem:[#allocation10_spill] sm:$0xff] }
 0x7ea   : > { %4232 = vrot.lane.b32.xlu1 %v4193_v14, %s5473_s21  ;;  %4230 = vrot.lane.b32.xlu0 %v4192_v1, %s5473_s21  ;;  %v4174_v26 = vrot.slane %v5363_v35, %v5655_v53  ;;  %v4185_v14 = vrot.slane %v5364_v43, %v5655_v53  ;;  %v5342_v1 = vpop.permute.xlu0 %5341  ;;  %v7511_v35 = vld [vmem:[#allocation22_spill] sm:$0xff]  ;;  %v7512_v43 = vld [vmem:[#allocation21_spill] sm:$0xff] }
 0x7eb   : > { %v5343_v61 = vunpack.i.l.bf16 %v5342_v1 }
 0x7ec   : > { %v4200_v22 = vmul.f32 %v4174_v26, %v5661_v59  ;;  %v4201_v33 = vmul.f32 %v4185_v14, %v5661_v59  ;;  %v7513_v14 = vld [vmem:[#allocation45_spill] sm:$0xff] }
 0x7ee   : > { %4236 = vrot.lane.b32.xlu1 %v4195_v12, %s5473_s21  ;;  %4234 = vrot.lane.b32.xlu0 %v4194_v52, %s5473_s21  ;;  %v5347_v20 = vpop.permute.xlu0 %5346  ;;  %v261_v12 = vrot.slane %v5343_v61, %v5655_v53  ;;  %v5344_v52 = vunpack.i.h.bf16 %v5342_v1  ;;  %v7515_v61 = vld [vmem:[#allocation35_spill] sm:$0xff] }
 0x7ef   : > { %v5348_v37 = vunpack.i.l.bf16 %v5347_v20  ;;  %v5349_v25 = vunpack.i.h.bf16 %v5347_v20 }
 0x7f0   : > { %v442_v11 = vmul.f32 %v261_v12, %v5661_v59  ;;  %v273_v45 = vrot.slane %v5344_v52, %v5655_v53 }
 0x7f2   : > { %4240 = vrot.lane.b32.xlu1 %v4197_v44, %s5473_s21  ;;  %4238 = vrot.lane.b32.xlu0 %v4196_v36, %s5473_s21  ;;  %v285_v44 = vrot.slane %v5348_v37, %v5655_v53  ;;  %v7505_v36 = vld [vmem:[#allocation9_spill] sm:$0xff]  ;;  %v7516_v37 = vld [vmem:[#allocation32_spill] sm:$0xff] }
 0x7f6   : > { %4300 = vperm.xlu1 %5365, %v4282_v51   ;;  %4242 = vrot.lane.b32.xlu0 %v4198_v5, %s5473_s21  ;;  %v730_v51 = vadd.f32 %v7505_v36, %v442_v11  ;;  %v297_v5 = vrot.slane %v5349_v25, %v5655_v53  ;;  %v7518_v36 = vld [vmem:[#allocation34_spill] sm:$0xff] }
 0x7fa   : > { %4318 = vperm.xlu1 %5365, %v4284_v10   ;;  %4309 = vperm.xlu0 %5339, %v4283_v15   ;;  %v444_v10 = vmul.f32 %v285_v44, %v5661_v59  ;;  %v443_v15 = vmul.f32 %v273_v45, %v5661_v59  ;;  %v7517_v44 = vld [vmem:[#allocation57_spill] sm:$0xff] }
 0x7fe   : > { %4327 = vperm.xlu1 %5365, %v4285_v40   ;;  %4336 = vperm.xlu0 %5339, %v4286_v41   ;;  %v5352_v40 = vpop.permute.xlu0 %5351  ;;  %v7506_v41 = vld [vmem:[#allocation20_spill] sm:$0xff] }
 0x7ff   : > { %v5354_v46 = vunpack.i.h.bf16 %v5352_v40 }
 0x801   : > { %v369_v12 = vrot.slane %v5354_v46, %v5655_v53 }
 0x802   : > { %4345 = vperm.xlu1 %5365, %v4287_v29   ;;  %4354 = vperm.xlu0 %5339, %v4288_v18   ;;  %v1002_v29 = vadd.f32 %v7506_v41, %v730_v51  ;;  %v445_v18 = vmul.f32 %v297_v5, %v5661_v59  ;;  %v7519_v5 = vld [vmem:[#allocation47_spill] sm:$0xff] }
 0x806   : > { %4363 = vperm.xlu1 %5365, %v4289_v63   ;;  %4372 = vperm.xlu0 %5339, %v4290_v23   ;;  %v7507_v63 = vld [vmem:[#allocation11_spill] sm:$0xff] }
 0x807   : > { %v732_v23 = vadd.f32 %v7507_v63, %v444_v10  ;;  %v7521_v63 = vld [vmem:[#allocation17_spill] sm:$0xff] }
 0x80a   : > { %4381 = vperm.xlu1 %5365, %v4291_v27   ;;  %4390 = vperm.xlu0 %5339, %v4292_v17   ;;  %v7508_v27 = vld [vmem:[#allocation8_spill] sm:$0xff] }
 0x80b   : > { %v731_v17 = vadd.f32 %v7508_v27, %v443_v15  ;;  %v451_v15 = vmul.f32 %v369_v12, %v5661_v59  ;;  %v7529_v12 = vld [vmem:[#allocation29_spill] sm:$0xff] }
 0x80e   : > { %4399 = vperm.xlu1 %5365, %v4293_v28   ;;  %4408 = vperm.xlu0 %5339, %v4294_v31   ;;  %v5353_v28 = vunpack.i.l.bf16 %v5352_v40  ;;  %v7509_v31 = vld [vmem:[#allocation33_spill] sm:$0xff] }
 0x80f   : > { %v1274_v48 = vadd.f32 %v7509_v31, %v1002_v29  ;;  %v7520_v29 = vld [vmem:[#allocation44_spill] sm:$0xff] }
 0x810   : > { %v357_v26 = vrot.slane %v5353_v28, %v5655_v53  ;;  %v7522_v28 = vld [vmem:[#allocation46_spill] sm:$0xff] }
 0x812   : > { %4417 = vperm.xlu1 %5365, %v4295_v42   ;;  %4426 = vperm.xlu0 %5339, %v4296_v3   ;;  %v733_v42 = vadd.f32 %v7510_v39, %v445_v18  ;;  %v1004_v3 = vadd.f32 %v7511_v35, %v732_v23  ;;  %v450_v11 = vmul.f32 %v357_v26, %v5661_v59  ;;  %v7527_v26 = vld [vmem:[#allocation28_spill] sm:$0xff] }
 0x814   : > { %v1276_v20 = vadd.f32 %v7515_v61, %v1004_v3  ;;  %v738_v23 = vadd.f32 %v7521_v63, %v450_v11  ;;  %v7525_v3 = vld [vmem:[#allocation69_spill] sm:$0xff]  ;;  %v7528_v61 = vld [vmem:[#allocation58_spill] sm:$0xff] }
 0x816   : > { %4435 = vperm.xlu1 %5365, %v4297_v55   ;;  %4244 = vrot.lane.b32.xlu0 %v4199_v13, %s5473_s21  ;;  %v1003_v55 = vadd.f32 %v7512_v43, %v731_v17  ;;  %v5357_v13 = vpop.permute.xlu0 %5356  ;;  %v1548_v10 = vadd.f32 %v7519_v5, %v1276_v20  ;;  %v7526_v43 = vld [vmem:[#allocation56_spill] sm:$0xff] }
 0x817   : > { %v5358_v25 = vunpack.i.l.bf16 %v5357_v13  ;;  %v5359_v17 = vunpack.i.h.bf16 %v5357_v13 }
 0x818   : > { %v1275_v52 = vadd.f32 %v7516_v37, %v1003_v55 }
 0x819   : > { %v405_v27 = vrot.slane %v5358_v25, %v5655_v53  ;;  %v417_v13 = vrot.slane %v5359_v17, %v5655_v53  ;;  %v7531_v25 = vld [vmem:[#allocation71_spill] sm:$0xff]  ;;  %v7535_v53 = vld [vmem:[#allocation40_spill] sm:$0xff] }
 0x81a   : > { %4246 = vrot.lane.b32.xlu1 %v4200_v22, %s5473_s21  ;;  %4248 = vrot.lane.b32.xlu0 %v4201_v33, %s5473_s21  ;;  %v1546_v22 = vadd.f32 %v7513_v14, %v1274_v48  ;;  %v7514_v33 = vld [vmem:[#allocation23_spill] sm:$0xff]  ;;  %v1547_v18 = vadd.f32 %v7520_v29, %v1275_v52  ;;  %v1010_v14 = vadd.f32 %v7527_v26, %v738_v23  ;;  %v7530_v52 = vld [vmem:[#allocation81_spill] sm:$0xff]  ;;  %v7542_v26 = vld [vmem:[#allocation18_spill] sm:$0xff]  ;;  %s201_s21 = sand.u32 1, %s5426_s13  }
 0x81b   : > { %v1005_v1 = vadd.f32 %v7514_v33, %v733_v42  ;;  %v7523_v48 = vld [vmem:[#allocation59_spill] sm:$0xff]  ;;  %v7524_v42 = vld [vmem:[#allocation16_spill] sm:$0xff]  ;;  %s4641_s23 = sshll.u32 %s201_s21, 4  ;;  %s7249_s15 = scalar_lea.sflag [#allocation3], %s201_s21 }
 0x81c   : > { %v1818_v45 = vadd.f32 %v7517_v44, %v1546_v22  ;;  %v1820_v39 = vadd.f32 %v7523_v48, %v1548_v10  ;;  %v739_v35 = vadd.f32 %v7524_v42, %v451_v15  ;;  %v1819_v55 = vadd.f32 %v7526_v43, %v1547_v18  ;;  %v7534_v10 = vld [vmem:[#allocation68_spill] sm:$0xff]  ;;  %v7538_v48 = vld [vmem:[#allocation83_spill] sm:$0xff]  ;;  %v7539_v42 = vld [vmem:[#allocation53_spill] sm:$0xff]  ;;  %s7158_s26 = scalar_lea.vmem [#allocation2], %s4641_s23 }
 0x81d   : > { %v1277_v51 = vadd.f32 %v7518_v36, %v1005_v1  ;;  %v454_v22 = vmul.f32 %v405_v27, %v5661_v59  ;;  %v455_v18 = vmul.f32 %v417_v13, %v5661_v59  ;;  %v7536_v27 = vld [vmem:[#allocation93_spill] sm:$0xff]  ;;  %v7541_v43 = vld [vmem:[#allocation80_spill] sm:$0xff]  ;;  %v7544_v13 = vld [vmem:[#allocation107_spill] sm:$0xff]  ;;  %s4538_s28 = sshll.u32 %s7158_s26, 4  ;;  %s7241_s28 = int_to_ptr.vmem [resolvable:$true] %s4538_s28 }
 0x81e   : > { %v2090_v46 = vadd.f32 %v7525_v3, %v1818_v45  ;;  %v1011_v37 = vadd.f32 %v7529_v12, %v739_v35  ;;  %v2092_v44 = vadd.f32 %v7531_v25, %v1820_v39  ;;  %v7532_v45 = vld [vmem:[#allocation41_spill] sm:$0xff]  ;;  %v2091_v15 = vadd.f32 %v7534_v10, %v1819_v55  ;;  %v7540_v3 = vld [vmem:[#allocation30_spill] sm:$0xff]  ;;  %s5366_s5 = scalar_lea.vmem %s7241_s28, 256  ;;  %p5373_p1 = scmp.lt.s32.totalorder %s7241_s28, %s5371_s7 }
 0x81f   : > { %v1549_v31 = vadd.f32 %v7522_v28, %v1277_v51  ;;  %v1282_v36 = vadd.f32 %v7532_v45, %v1010_v14  ;;  %v7533_v51 = vld [vmem:[#allocation19_spill] sm:$0xff]  ;;  %v7537_v28 = vld [vmem:[#allocation70_spill] sm:$0xff]  ;;  %v743_v14 = vadd.f32 %v7542_v26, %v455_v18  ;;  %v7557_v26 = vld [vmem:[#allocation77_spill] sm:$0xff]  ;;  %p5367_p12 = scmp.ne.s32.totalorder %s7241_s28, %s5366_s5  ;;  %p5374_p2 = scmp.lt.s32.totalorder %s5372_s8, %s5366_s5 }
 0x820   : > { %v2362_v11 = vadd.f32 %v7530_v52, %v2090_v46  ;;  %v742_v5 = vadd.f32 %v7533_v51, %v454_v22  ;;  %v1283_v23 = vadd.f32 %v7535_v53, %v1011_v37  ;;  %v2364_v39 = vadd.f32 %v7538_v48, %v2092_v44  ;;  %v7543_v22 = vld [vmem:[#allocation52_spill] sm:$0xff]  ;;  %v7545_v12 = vld [vmem:[#allocation82_spill] sm:$0xff]  ;;  %v7546_v52 = vld [vmem:[#allocation95_spill] sm:$0xff] }
 0x821   : > { %v1821_v20 = vadd.f32 %v7528_v61, %v1549_v31  ;;  %v1554_v35 = vadd.f32 %v7539_v42, %v1282_v36  ;;  %v2363_v55 = vadd.f32 %v7541_v43, %v2091_v15  ;;  %v7548_v45 = vld [vmem:[#allocation43_spill] sm:$0xff]  ;;  %v7549_v51 = vld [vmem:[#allocation92_spill] sm:$0xff]  ;;  %v7554_v48 = vld [vmem:[#allocation109_spill] sm:$0xff]  ;;  %p5368_p13 = pnand %p5367_p12, %p5537_p4  ;;  %p5375_p3 = por %p5374_p2, %p5373_p1 }
 0x822   : > { %v2634_v17 = vadd.f32 %v7536_v27, %v2362_v11  ;;  %v1014_v46 = vadd.f32 %v7540_v3, %v742_v5  ;;  %v1555_v59 = vadd.f32 %v7543_v22, %v1283_v23  ;;  %v2636_v11 = vadd.f32 %v7546_v52, %v2364_v39  ;;  %v7550_v15 = vld [vmem:[#allocation31_spill] sm:$0xff]  ;;  %v7551_v53 = vld [vmem:[#allocation64_spill] sm:$0xff]  ;;  %v7552_v27 = vld [vmem:[#allocation121_spill] sm:$0xff] }
 0x823   : > { %v2093_v31 = vadd.f32 %v7537_v28, %v1821_v20  ;;  %v7547_v20 = vld [vmem:[#allocation65_spill] sm:$0xff]  ;;  %v2635_v5 = vadd.f32 %v7549_v51, %v2363_v55  ;;  %v1015_v18 = vadd.f32 %v7550_v15, %v743_v14  ;;  %v7553_v28 = vld [vmem:[#allocation94_spill] sm:$0xff]  ;;  %v7555_v42 = vld [vmem:[#allocation55_spill] sm:$0xff]  ;;  %p5369_p0 = pneg %p5368_p13 }
 0x824   : > { %v2906_v61 = vadd.f32 %v7544_v13, %v2634_v17  ;;  %v1826_v44 = vadd.f32 %v7547_v20, %v1554_v35  ;;  %v1286_v36 = vadd.f32 %v7548_v45, %v1014_v46  ;;  %v1827_v23 = vadd.f32 %v7551_v53, %v1555_v59  ;;  %v7556_v43 = vld [vmem:[#allocation106_spill] sm:$0xff]  ;;  %v7559_v14 = vld [vmem:[#allocation135_spill] sm:$0xff]  ;;  %v7560_v52 = vld [vmem:[#allocation108_spill] sm:$0xff] }
 0x825   : > { %v2365_v37 = vadd.f32 %v7545_v12, %v2093_v31  ;;  %v2908_v39 = vadd.f32 %v7554_v48, %v2636_v11  ;;  %v2907_v35 = vadd.f32 %v7556_v43, %v2635_v5  ;;  %v7558_v55 = vld [vmem:[#allocation42_spill] sm:$0xff]  ;;  %v7561_v20 = vld [vmem:[#allocation123_spill] sm:$0xff]  ;;  %v7562_v45 = vld [vmem:[#allocation76_spill] sm:$0xff]  ;;  %p5376_p5 = pnand %p5375_p3, %p5369_p0 }
 0x826   : > { %v3178_v17 = vadd.f32 %v7552_v27, %v2906_v61  ;;  %v1558_v3 = vadd.f32 %v7555_v42, %v1286_v36  ;;  %v2098_v46 = vadd.f32 %v7557_v26, %v1826_v44  ;;  %v1287_v13 = vadd.f32 %v7558_v55, %v1015_v18  ;;  %v7563_v51 = vld [vmem:[#allocation67_spill] sm:$0xff]  ;;  %v7564_v15 = vld [vmem:[#allocation120_spill] sm:$0xff]  ;;  %v7565_v53 = vld [vmem:[#allocation89_spill] sm:$0xff] }
 0x827   : > { %v2637_v31 = vadd.f32 %v7553_v28, %v2365_v37  ;;  %v3180_v37 = vadd.f32 %v7561_v20, %v2908_v39  ;;  %v2099_v11 = vadd.f32 %v7562_v45, %v1827_v23  ;;  %v3179_v5 = vadd.f32 %v7564_v15, %v2907_v35  ;;  %v7566_v27 = vld [vmem:[#allocation54_spill] sm:$0xff] }
 0x828   : > { %v3450_v59 = vadd.f32 %v7559_v14, %v3178_v17  ;;  %v1830_v36 = vadd.f32 %v7563_v51, %v1558_v3  ;;  %v2370_v44 = vadd.f32 %v7565_v53, %v2098_v46  ;;  %v1559_v28 = vadd.f32 %v7566_v27, %v1287_v13  ;;  %v7567_v48 = vld [vmem:[#allocation122_spill] sm:$0xff]  ;;  %v7568_v17 = vld [vmem:[#allocation137_spill] sm:$0xff]  ;;  %v7572_v46 = vld [vmem:[#allocation79_spill] sm:$0xff] }
 0x829   : > { %v2909_v61 = vadd.f32 %v7560_v52, %v2637_v31  ;;  %v3452_v43 = vadd.f32 %v7568_v17, %v3180_v37  ;;  %v7569_v31 = vld [vmem:[#allocation88_spill] sm:$0xff]  ;;  %v7570_v23 = vld [vmem:[#allocation134_spill] sm:$0xff]  ;;  %v7571_v3 = vld [vmem:[#allocation101_spill] sm:$0xff] }
 0x82a   : > { %v3722_v18 = vadd.f32 %v6685_v38, %v3450_v59  ;;  %v2371_v26 = vadd.f32 %v7569_v31, %v2099_v11  ;;  %v3451_v55 = vadd.f32 %v7570_v23, %v3179_v5  ;;  %v2642_v14 = vadd.f32 %v7571_v3, %v2370_v44  ;;  %v7573_v52 = vld [vmem:[#allocation5_spill] sm:$0xff]  ;;  %v7574_v38 = vld [vmem:[#allocation66_spill] sm:$0xff]  ;;  %v7575_v37 = vld [vmem:[#allocation136_spill] sm:$0xff] }
 0x82b   : > { %v3181_v42 = vadd.f32 %v7567_v48, %v2909_v61  ;;  %v2102_v13 = vadd.f32 %v7572_v46, %v1830_v36  ;;  %v7125_v20 = vsub.s32 0, %v7573_v52  ;;  %v1831_v59 = vadd.f32 %v7574_v38, %v1559_v28  ;;  %v7576_v51 = vld [vmem:[#allocation100_spill] sm:$0xff]  ;;  %v7577_v53 = vld [vmem:[#allocation115_spill] sm:$0xff]  ;;  %v7579_v28 = vld [vmem:[#allocation78_spill] sm:$0xff] }
 0x82c   : > { %v3994_v61 = vadd.f32 %v6865_v19, %v3722_v18  ;;  %v3724_v11 = vadd.f32 %v6697_v24, %v3452_v43  ;;  %v2643_v15 = vadd.f32 %v7576_v51, %v2371_v26  ;;  %v3723_v5 = vadd.f32 %v6683_v7, %v3451_v55  ;;  %v7578_v27 = vld [vmem:[#allocation91_spill] sm:$0xff]  ;;  %v7580_v7 = vld [vmem:[#allocation114_spill] sm:$0xff]  ;;  %v7581_v55 = vld [vmem:[#allocation129_spill] sm:$0xff] }
 0x82d   : > { %v3453_v45 = vadd.f32 %v7575_v37, %v3181_v42  ;;  %v2914_v44 = vadd.f32 %v7577_v53, %v2642_v14  ;;  %v2374_v36 = vadd.f32 %v7578_v27, %v2102_v13  ;;  %v2103_v24 = vadd.f32 %v7579_v28, %v1831_v59 }
 0x82e   : > { %v3996_v42 = vadd.f32 %v6877_v8, %v3724_v11  ;;  %v2915_v43 = vadd.f32 %v7580_v7, %v2643_v15  ;;  %v3995_v23 = vadd.f32 %v6863_v30, %v3723_v5  ;;  %v7585_v5 = vld [vmem:[#allocation143_spill] sm:$0xff] }
 0x82f   : > { %v3725_v18 = vadd.f32 %v6693_v50, %v3453_v45  ;;  %v3186_v3 = vadd.f32 %v7581_v55, %v2914_v44  ;;  %v7584_v45 = vld [vmem:[#allocation128_spill] sm:$0xff]  ;;  %v7589_v55 = vld [vmem:[#allocation131_spill] sm:$0xff] }
 0x830   : > { %v3187_v11 = vadd.f32 %v7584_v45, %v2915_v43 }
 0x831   : > { %v3997_v30 = vadd.f32 %v6875_v60, %v3725_v18  ;;  %v3458_v53 = vadd.f32 %v7585_v5, %v3186_v3  ;;  %v7587_v18 = vld [vmem:[#allocation142_spill] sm:$0xff] }
 0x850   : > { %v7042_v40 = vpop.permute.xlu1 %4220  ;;  %v7044_v41 = vpop.permute.xlu0 %4218 }
 0x851   : > { %v4266_v17 = vadd.f32 %v7044_v41, %v3994_v61  ;;  %v7582_v41 = vld [vmem:[#allocation103_spill] sm:$0xff]  ;;  %v4267_v8 = vadd.f32 %v7042_v40, %v3995_v23  ;;  %v7583_v61 = vld [vmem:[#allocation90_spill] sm:$0xff] }
 0x852   : > { %v2646_v14 = vadd.f32 %v7582_v41, %v2374_v36  ;;  %v2375_v37 = vadd.f32 %v7583_v61, %v2103_v24 }
 0x854   : > { %v7056_v33 = vpop.permute.xlu1 %4224  ;;  %v7058_v1 = vpop.permute.xlu0 %4222 }
 0x855   : > { %v4268_v13 = vadd.f32 %v7058_v1, %v3996_v42  ;;  %v7586_v1 = vld [vmem:[#allocation117_spill] sm:$0xff]  ;;  %v4269_v36 = vadd.f32 %v7056_v33, %v3997_v30  ;;  %v3459_v42 = vadd.f32 %v7587_v18, %v3187_v11  ;;  %v3730_v33 = vadd.f32 %v6733_v62, %v3458_v53  ;;  %v7591_v30 = vld [vmem:[#allocation146_spill] sm:$0xff] }
 0x856   : > { %v2918_v44 = vadd.f32 %v7586_v1, %v2646_v14 }
 0x858   : > { %v7068_v29 = vpop.permute.xlu0 %4226  ;;  %v7071_v63 = vpop.permute.xlu1 %4228  ;;  %v3190_v3 = vadd.f32 %v7589_v55, %v2918_v44 }
 0x85a   : > { %v3462_v45 = vadd.f32 %v7591_v30, %v3190_v3 }
 0x85c   : > { %v7085_v25 = vpop.permute.xlu0 %4230  ;;  %v7090_v10 = vpop.permute.xlu1 %4232 }
 0x85d   : > { %v4272_v62 = vadd.f32 %v7085_v25, %v6897_v9  ;;  %v4273_v25 = vadd.f32 %v7090_v10, %v6895_v34  ;;  %v3734_v34 = vadd.f32 %v6752_v4, %v3462_v45 }
 0x860   : > { %v7100_v22 = vpop.permute.xlu0 %4234  ;;  %v7103_v12 = vpop.permute.xlu1 %4236 }
 0x864   : > { %v7117_v39 = vpop.permute.xlu0 %4238  ;;  %v7121_v35 = vpop.permute.xlu1 %4240 }
 0x865   : > { %v4276_v4 = vadd.f32 %v7117_v39, %v6907_v16  ;;  %v4277_v3 = vadd.f32 %v7121_v35, %v6904_v0 }
 0x868   : > { %v7137_v31 = vpop.permute.xlu0 %4242 }
 0x871   : > { %v4301_v48 = vpop.permute.xlu1 %4300 }
 0x872   : > { %v4306_v19 = vrot.slane %v4301_v48, %v7125_v20 }
 0x874   : > { %v4442_v26 = vadd.f32 %v4306_v19, %v4266_v17  ;;  %v4270_v19 = vadd.f32 %v7068_v29, %v6891_v56  ;;  %v4271_v56 = vadd.f32 %v7071_v63, %v6889_v49  ;;  %v7590_v63 = vld [vmem:[#allocation116_spill] sm:$0xff] }
 0x875   : > { %v4319_v46 = vpop.permute.xlu1 %4318  ;;  %v4310_v50 = vpop.permute.xlu0 %4309 }
 0x876   : > { %vm4458_vm1 = vcmp.ge.f32.partialorder %v4442_v26, 0.0  ;;  %v4474_v52 = vmul.f32 0.1, %v4442_v26  ;;  %v4324_v38 = vrot.slane %v4319_v46, %v7125_v20  ;;  %v4315_v59 = vrot.slane %v4310_v50, %v7125_v20 }
 0x878   : > { %v4490_v51 = vsel %vm4458_vm1, %v4442_v26, %v4474_v52  ;;  %v4444_v15 = vadd.f32 %v4324_v38, %v4268_v13  ;;  %v4443_v40 = vadd.f32 %v4315_v59, %v4267_v8  ;;  %v7588_v26 = vld [vmem:[#allocation102_spill] sm:$0xff]  ;;  %v3731_v8 = vadd.f32 %v6729_v47, %v3459_v42 }
 0x879   : > { %4507 = vst.msk [vmem:[%s7158_s26] sm:$0x1] %vm4506_vm0, %v4490_v51  ;;  %v4328_v27 = vpop.permute.xlu1 %4327  ;;  %v4337_v17 = vpop.permute.xlu0 %4336  ;;  %v2647_v23 = vadd.f32 %v7588_v26, %v2375_v37  ;;  %v4002_v37 = vadd.f32 %v6901_v54, %v3730_v33  ;;  %v7593_v33 = vld [vmem:[#allocation145_spill] sm:$0xff] }
 0x87a   : > { %vm4460_vm2 = vcmp.ge.f32.partialorder %v4444_v15, 0.0  ;;  %v4476_v60 = vmul.f32 0.1, %v4444_v15  ;;  %v4333_v48 = vrot.slane %v4328_v27, %v7125_v20  ;;  %vm4459_vm3 = vcmp.ge.f32.partialorder %v4443_v40, 0.0 }
 0x87b   : > { %v4475_v28 = vmul.f32 0.1, %v4443_v40  ;;  %v4342_v24 = vrot.slane %v4337_v17, %v7125_v20  ;;  %v2919_v61 = vadd.f32 %v7590_v63, %v2647_v23  ;;  %v4274_v54 = vadd.f32 %v7100_v22, %v4002_v37 }
 0x87c   : > { %v4492_v7 = vsel %vm4460_vm2, %v4444_v15, %v4476_v60  ;;  %v4445_v43 = vadd.f32 %v4333_v48, %v4269_v36  ;;  %v4003_v44 = vadd.f32 %v6899_v58, %v3731_v8  ;;  %v7592_v48 = vld [vmem:[#allocation130_spill] sm:$0xff] }
 0x87d   : > { %4509 = vst.msk [vmem:[%s7158_s26 + $0x2] sm:$0x1] %vm4506_vm0, %v4492_v7  ;;  %v4491_v41 = vsel %vm4459_vm3, %v4443_v40, %v4475_v28  ;;  %v4446_v14 = vadd.f32 %v4342_v24, %v4270_v19  ;;  %v4346_v46 = vpop.permute.xlu1 %4345  ;;  %v4355_v52 = vpop.permute.xlu0 %4354  ;;  %v3191_v17 = vadd.f32 %v7592_v48, %v2919_v61 }
 0x87e   : > { %4508 = vst.msk [vmem:[%s7158_s26 + $0x1] sm:$0x1] %vm4506_vm0, %v4491_v41  ;;  %vm4461_vm4 = vcmp.ge.f32.partialorder %v4445_v43, 0.0  ;;  %v4477_v29 = vmul.f32 0.1, %v4445_v43  ;;  %v4351_v13 = vrot.slane %v4346_v46, %v7125_v20  ;;  %v4360_v50 = vrot.slane %v4355_v52, %v7125_v20 }
 0x87f   : > { %vm4462_vm5 = vcmp.ge.f32.partialorder %v4446_v14, 0.0  ;;  %v4478_v38 = vmul.f32 0.1, %v4446_v14  ;;  %v4275_v22 = vadd.f32 %v7103_v12, %v4003_v44  ;;  %v3463_v55 = vadd.f32 %v7593_v33, %v3191_v17 }
 0x880   : > { %v4493_v59 = vsel %vm4461_vm4, %v4445_v43, %v4477_v29  ;;  %v4447_v49 = vadd.f32 %v4351_v13, %v4271_v56  ;;  %v4448_v51 = vadd.f32 %v4360_v50, %v4272_v62  ;;  %v4006_v43 = vadd.f32 %v6911_v6, %v3734_v34 }
 0x881   : > { %4510 = vst.msk [vmem:[%s7158_s26 + $0x3] sm:$0x1] %vm4506_vm0, %v4493_v59  ;;  %v4494_v11 = vsel %vm4462_vm5, %v4446_v14, %v4478_v38  ;;  %v4364_v9 = vpop.permute.xlu1 %4363  ;;  %v4373_v5 = vpop.permute.xlu0 %4372  ;;  %v3735_v52 = vadd.f32 %v6749_v57, %v3463_v55 }
 0x882   : > { %4511 = vst.msk [vmem:[%s7158_s26 + $0x4] sm:$0x1] %vm4506_vm0, %v4494_v11  ;;  %vm4463_vm6 = vcmp.ge.f32.partialorder %v4447_v49, 0.0  ;;  %v4479_v47 = vmul.f32 0.1, %v4447_v49  ;;  %v4369_v15 = vrot.slane %v4364_v9, %v7125_v20  ;;  %vm4464_vm7 = vcmp.ge.f32.partialorder %v4448_v51, 0.0 }
 0x883   : > { %v4480_v53 = vmul.f32 0.1, %v4448_v51  ;;  %v4378_v1 = vrot.slane %v4373_v5, %v7125_v20  ;;  %v4278_v6 = vadd.f32 %v7137_v31, %v4006_v43 }
 0x884   : > { %v4495_v40 = vsel %vm4463_vm6, %v4447_v49, %v4479_v47  ;;  %v4449_v27 = vadd.f32 %v4369_v15, %v4273_v25  ;;  %v4007_v49 = vadd.f32 %v6909_v21, %v3735_v52 }
 0x885   : > { %4512 = vst.msk [vmem:[%s7158_s26 + $0x5] sm:$0x1] %vm4506_vm0, %v4495_v40  ;;  %v4496_v10 = vsel %vm4464_vm7, %v4448_v51, %v4480_v53  ;;  %v4450_v36 = vadd.f32 %v4378_v1, %v4274_v54  ;;  %v4382_v60 = vpop.permute.xlu1 %4381  ;;  %v4391_v28 = vpop.permute.xlu0 %4390 }
 0x886   : > { %4513 = vst.msk [vmem:[%s7158_s26 + $0x6] sm:$0x1] %vm4506_vm0, %v4496_v10  ;;  %vm4465_vm8 = vcmp.ge.f32.partialorder %v4449_v27, 0.0  ;;  %v4481_v19 = vmul.f32 0.1, %v4449_v27  ;;  %v4387_v58 = vrot.slane %v4382_v60, %v7125_v20  ;;  %v4396_v18 = vrot.slane %v4391_v28, %v7125_v20 }
 0x887   : > { %vm4466_vm9 = vcmp.ge.f32.partialorder %v4450_v36, 0.0  ;;  %v4482_v24 = vmul.f32 0.1, %v4450_v36 }
 0x888   : > { %v4497_v42 = vsel %vm4465_vm8, %v4449_v27, %v4481_v19  ;;  %v4451_v7 = vadd.f32 %v4387_v58, %v4275_v22  ;;  %v4452_v26 = vadd.f32 %v4396_v18, %v4276_v4 }
 0x889   : > { %4514 = vst.msk [vmem:[%s7158_s26 + $0x7] sm:$0x1] %vm4506_vm0, %v4497_v42  ;;  %v4498_v12 = vsel %vm4466_vm9, %v4450_v36, %v4482_v24  ;;  %v4400_v23 = vpop.permute.xlu1 %4399  ;;  %v4409_v41 = vpop.permute.xlu0 %4408 }
 0x88a   : > { %4515 = vst.msk [vmem:[%s7158_s26 + $0x8] sm:$0x1] %vm4506_vm0, %v4498_v12  ;;  %vm4467_vm10 = vcmp.ge.f32.partialorder %v4451_v7, 0.0  ;;  %v4483_v16 = vmul.f32 0.1, %v4451_v7  ;;  %v4405_v39 = vrot.slane %v4400_v23, %v7125_v20  ;;  %vm4468_vm11 = vcmp.ge.f32.partialorder %v4452_v26, 0.0 }
 0x88b   : > { %v4484_v14 = vmul.f32 0.1, %v4452_v26  ;;  %v4414_v46 = vrot.slane %v4409_v41, %v7125_v20 }
 0x88c   : > { %v4499_v56 = vsel %vm4467_vm10, %v4451_v7, %v4483_v16  ;;  %v4453_v29 = vadd.f32 %v4405_v39, %v4277_v3 }
 0x88d   : > { %4516 = vst.msk [vmem:[%s7158_s26 + $0x9] sm:$0x1] %vm4506_vm0, %v4499_v56  ;;  %v4500_v0 = vsel %vm4468_vm11, %v4452_v26, %v4484_v14  ;;  %v4454_v35 = vadd.f32 %v4414_v46, %v4278_v6  ;;  %v4418_v13 = vpop.permute.xlu1 %4417  ;;  %v4427_v31 = vpop.permute.xlu0 %4426 }
 0x88e   : > { %4517 = vst.msk [vmem:[%s7158_s26 + $0xa] sm:$0x1] %vm4506_vm0, %v4500_v0  ;;  %vm4469_vm12 = vcmp.ge.f32.partialorder %v4453_v29, 0.0  ;;  %v4485_v62 = vmul.f32 0.1, %v4453_v29  ;;  %v4423_v57 = vrot.slane %v4418_v13, %v7125_v20  ;;  %v4432_v45 = vrot.slane %v4427_v31, %v7125_v20 }
 0x88f   : > { %vm4470_vm13 = vcmp.ge.f32.partialorder %v4454_v35, 0.0  ;;  %v4486_v38 = vmul.f32 0.1, %v4454_v35 }
 0x890   : > { %v4501_v50 = vsel %vm4469_vm12, %v4453_v29, %v4485_v62 }
 0x891   : > { %4518 = vst.msk [vmem:[%s7158_s26 + $0xb] sm:$0x1] %vm4506_vm0, %v4501_v50  ;;  %v4502_v8 = vsel %vm4470_vm13, %v4454_v35, %v4486_v38  ;;  %v4436_v59 = vpop.permute.xlu1 %4435  ;;  %v4245_v63 = vpop.permute.xlu0 %4244 }
 0x892   : > { %4519 = vst.msk [vmem:[%s7158_s26 + $0xc] sm:$0x1] %vm4506_vm0, %v4502_v8  ;;  %v4279_v61 = vadd.f32 %v4245_v63, %v4007_v49  ;;  %v4441_v9 = vrot.slane %v4436_v59, %v7125_v20 }
 0x894   : > { %v4455_v37 = vadd.f32 %v4423_v57, %v4279_v61 }
 0x895   : > { %v4247_v30 = vpop.permute.xlu1 %4246  ;;  %v4249_v51 = vpop.permute.xlu0 %4248 }
 0x896   : > { %v4280_v11 = vadd.f32 %v4247_v30, %v6917_v2  ;;  %vm4471_vm14 = vcmp.ge.f32.partialorder %v4455_v37, 0.0  ;;  %v4487_v21 = vmul.f32 0.1, %v4455_v37  ;;  %v4281_v25 = vadd.f32 %v4249_v51, %v6914_v32 }
 0x898   : > { %v4456_v47 = vadd.f32 %v4432_v45, %v4280_v11  ;;  %v4503_v15 = vsel %vm4471_vm14, %v4455_v37, %v4487_v21  ;;  %v4457_v5 = vadd.f32 %v4441_v9, %v4281_v25 }
 0x899   : > { %4520 = vst.msk [vmem:[%s7158_s26 + $0xd] sm:$0x1] %vm4506_vm0, %v4503_v15 }
 0x89a   : > { %vm4472_vm15 = vcmp.ge.f32.partialorder %v4456_v47, 0.0  ;;  %v4488_v2 = vmul.f32 0.1, %v4456_v47  ;;  %vm4473_vm1 = vcmp.ge.f32.partialorder %v4457_v5, 0.0  ;;  %v4489_v54 = vmul.f32 0.1, %v4457_v5 }
 0x89c   : > { %v4504_v32 = vsel %vm4472_vm15, %v4456_v47, %v4488_v2  ;;  %v4505_v20 = vsel %vm4473_vm1, %v4457_v5, %v4489_v54 }
 0x89d   : > { %4521 = vst.msk [vmem:[%s7158_s26 + $0xe] sm:$0x1] %vm4506_vm0, %v4504_v32  ;;  %4522 = vst.msk [vmem:[%s7158_s26 + $0xf] sm:$0x1] %vm4506_vm0, %v4505_v20 }
 0x89e   : > { %5379 = shalt.err (!%p5376_p5)
}
 0x89f   : > { %s5380_s9 = scalar_lea.hbm %s7239_s4, 256  ;;  %s5384_s18 = scalar_lea.hbm %s7297_s3, 512 }
 0x8a0   : > { %p5381_p6 = scmp.ne.s32.totalorder %s7239_s4, %s5380_s9  ;;  %p5385_p10 = scmp.lt.s32.totalorder %s7239_s4, %s7297_s3 }
 0x8a1   : > { %p5386_p11 = scmp.lt.s32.totalorder %s5384_s18, %s5380_s9 }
 0x8a2   : > { %p5382_p7 = pnand %p5381_p6, %p5537_p4 }
 0x8a3   : > { %p5387_p12 = por %p5386_p11, %p5385_p10 }
 0x8a4   : > { %p5383_p9 = pneg %p5382_p7 }
 0x8a6   : > { %p5388_p13 = pnand %p5387_p12, %p5383_p9 }
 0x8a8   : > { %5391 = shalt.err (!%p5388_p13)
}
 0x8a9   : > { %s5475_s23 = smov 16   ;;  %s5476_s26 = smov 1  }
 0x8aa   : > { %4648 = dma.vmem_to_hbm [thread:$0]  (%p5537_p4), %s7241_s28, 256, %s7239_s4, %s7249_s15, %s5475_s23, %s5475_s23, %s5476_s26  }
 0x8ab PF: > { %p4654_p0 = scmp.ge.s32.totalorder %s5442_s17, 2  ;;  %s4553_s27 = sand.u32 1, %s5422_s12  }
 0x8ac   : > { %s4554_s29 = scalar_lea.sflag [#allocation3], %s4553_s27 }
 0x8ad   : > { %p4651_p1 = pnand %p4654_p0, %p5544_p8 }
 0x8af   : > { %p4652_p2 = pneg %p4651_p1 }
 0x8b1   : > { %5417 = dma.done.wait (%p4652_p2), %s4554_s29, 256  }
 0x8b2   : > { %5419 = vsyncadd (%p4652_p2), %s4554_s29, 4294967040  ;;  %s16_s17 = sadd.s32 1, %s5442_s17   ;;  %s7594_s12 = smov %s5426_s13 }
 0x8b3   : > { %p13_p3 = scmp.ge.s32.totalorder %s16_s17, 4   ;;  %s7595_s13 = smov %s5430_s14 }
 0x8b4   : > { %s7596_s14 = smov %s5550_s25  ;;  %s7597_s15 = smov %s5438_s16 }
 0x8b5   : > { %s7598_s16 = smov %s7600_s20  ;;  %15 = sbr.rel (!%p13_p3) target bundleno = 4 (0x4), region = 73 }
 0x8ba   :  { %4559 = vsyncpa [#allocation3], 1 }
 0x8bb   :  { %4561 = vsyncpa [#allocation3 + $0x1], 1 }

</bundles_post_ra>
